<compile_context>
chip_gen: v5e
topology: v5e:2x2
jax: 0.10.0
libtpu: 0.0.40
codegen_flags: <defaults>
</compile_context>

<pallas_src>
import functools

import jax
import jax.numpy as jnp
from jax.experimental import pallas as pl
from jax.experimental.pallas import tpu as pltpu


# ----------------------------------------------------------------------------
# Pallas kernel 1: out = relu(x @ W + b)   (conv1, conv2 as im2col matmuls)
# ----------------------------------------------------------------------------
def _matmul_bias_kernel(x_ref, w_ref, b_ref, o_ref, *, relu):
    acc = jnp.dot(x_ref[...], w_ref[...], preferred_element_type=jnp.float32)
    acc = acc + b_ref[...]                       # (1, N) f32 broadcasts over rows
    if relu:
        acc = jnp.maximum(acc, 0.0)
    o_ref[...] = acc.astype(o_ref.dtype)


def conv_matmul(x, w, b2d, relu=True):
    """x: (M, K) bf16, w: (K, N) bf16, b2d: (1, N) f32 -> (M, N) bf16."""
    M, K = x.shape
    N = w.shape[1]
    cost = pl.CostEstimate(
        flops=int(2 * M * K * N),
        transcendentals=0,
        bytes_accessed=int(M * K * 2 + K * N * 2 + N * 4 + M * N * 2),
    )
    return pl.pallas_call(
        functools.partial(_matmul_bias_kernel, relu=relu),
        grid=(1,),
        out_shape=jax.ShapeDtypeStruct((M, N), jnp.bfloat16),
        in_specs=[
            pl.BlockSpec((M, K), lambda i: (0, 0)),
            pl.BlockSpec((K, N), lambda i: (0, 0)),
            pl.BlockSpec((1, N), lambda i: (0, 0)),
        ],
        out_specs=pl.BlockSpec((M, N), lambda i: (0, 0)),
        compiler_params=pltpu.CompilerParams(
            dimension_semantics=("arbitrary",)),
        cost_estimate=cost,
    )(x, w, b2d)


# ----------------------------------------------------------------------------
# Pallas kernel 2: fused  conv3 + policy head (3 linears) + value head.
#   pre   = x3 @ W13 + b13        (W13 = conv3 weights folded into [w1; wv])
#   h1    = relu(pre[:, :32]) ; value = pre[:, 32]
#   h2    = relu(h1 @ W2 + b2)
#   out   = h2 @ W3pad + b3pad ;  out[:, 4] += value
# One lane-dense (B, 128) store: logits in cols 0..3, value in col 4.
# ----------------------------------------------------------------------------
def _conv3_heads_kernel(x3_ref, w13_ref, b13_ref, w2_ref, b2_ref,
                        w3_ref, b3_ref, o_ref):
    pre = jnp.dot(x3_ref[...], w13_ref[...],
                  preferred_element_type=jnp.float32) + b13_ref[...]
    h1 = jnp.maximum(pre[:, :32], 0.0)
    value = pre[:, 32:33]                                    # (B, 1)
    h2 = jnp.dot(h1.astype(jnp.bfloat16), w2_ref[...],
                 preferred_element_type=jnp.float32) + b2_ref[...]
    h2 = jnp.maximum(h2, 0.0)
    out = jnp.dot(h2.astype(jnp.bfloat16), w3_ref[...],
                  preferred_element_type=jnp.float32) + b3_ref[...]
    col = jax.lax.broadcasted_iota(jnp.int32, (1, 128), 1)
    out = out + jnp.where(col == 4, value, 0.0)              # value -> lane 4
    o_ref[...] = out.astype(o_ref.dtype)


def conv3_heads_fused(x3, head):
    B, K = x3.shape                                          # (B, 8192)
    NPAD = 128
    cost = pl.CostEstimate(
        flops=int(2 * B * K * 33 + 2 * B * 32 * 32 + 2 * B * 32 * NPAD),
        transcendentals=0,
        bytes_accessed=int(B * K * 2 + K * 33 * 2 + 33 * 4 + 32 * 32 * 2
                           + 32 * 4 + 32 * NPAD * 2 + NPAD * 4
                           + B * NPAD * 4),
    )
    return pl.pallas_call(
        _conv3_heads_kernel,
        grid=(1,),
        out_shape=jax.ShapeDtypeStruct((B, NPAD), jnp.float32),
        in_specs=[
            pl.BlockSpec((B, K), lambda i: (0, 0)),
            pl.BlockSpec((K, 33), lambda i: (0, 0)),
            pl.BlockSpec((1, 33), lambda i: (0, 0)),
            pl.BlockSpec((32, 32), lambda i: (0, 0)),
            pl.BlockSpec((1, 32), lambda i: (0, 0)),
            pl.BlockSpec((32, NPAD), lambda i: (0, 0)),
            pl.BlockSpec((1, NPAD), lambda i: (0, 0)),
        ],
        out_specs=pl.BlockSpec((B, NPAD), lambda i: (0, 0)),
        compiler_params=pltpu.CompilerParams(
            dimension_semantics=("arbitrary",)),
        cost_estimate=cost,
    )(x3, head["w13"], head["b13"], head["w2"], head["b2"],
      head["w3"], head["b3"])


# ----------------------------------------------------------------------------
# im2col glue (XLA): Conv2d(k=2, s=2, p=1) on even H, W == non-overlapping
# 2x2 blocks of the padded image.  Built from 4 shifted strided slices +
# concat (no 6-D transpose).  Tap order (ky, kx) with channel fastest matches
# the packed conv weight rows.
# ----------------------------------------------------------------------------
def _space_to_patches(x_nhwc, pad_c=0):
    B, H, W, C = x_nhwc.shape
    Cp = C + pad_c
    xp = jnp.pad(x_nhwc, ((0, 0), (1, 1), (1, 1), (0, pad_c)))
    Ho, Wo = (H + 2) // 2, (W + 2) // 2
    taps = [xp[:, ky::2, kx::2, :] for ky in (0, 1) for kx in (0, 1)]
    p = jnp.concatenate(taps, axis=-1)                       # (B, Ho, Wo, 4*Cp)
    return p.reshape(B * Ho * Wo, 4 * Cp), Ho, Wo


# ----------------------------------------------------------------------------
# Parameter init (PyTorch layouts, matching BigModel.__init__)
# ----------------------------------------------------------------------------
def _uniform(key, shape, fan_in):
    bound = 1.0 / jnp.sqrt(jnp.float32(fan_in))
    return jax.random.uniform(key, shape, jnp.float32, -bound, bound)


def init_params(key, n_actors):
    keys = iter(jax.random.split(key, 64))
    params = {
        "conv1_w": _uniform(next(keys), (32, 3, 2, 2), 3 * 4),
        "conv1_b": _uniform(next(keys), (32,), 3 * 4),
        "conv2_w": _uniform(next(keys), (32, 32, 2, 2), 32 * 4),
        "conv2_b": _uniform(next(keys), (32,), 32 * 4),
        "conv3_w": _uniform(next(keys), (32, 32, 2, 2), 32 * 4),
        "conv3_b": _uniform(next(keys), (32,), 32 * 4),
        "value_w": _uniform(next(keys), (1, 32 * 8 * 8), 32 * 8 * 8),
        "value_b": _uniform(next(keys), (1,), 32 * 8 * 8),
        "policy_heads": [],
    }
    for _ in range(n_actors):
        params["policy_heads"].append({
            "w1": _uniform(next(keys), (32, 32 * 8 * 8), 32 * 8 * 8),
            "b1": _uniform(next(keys), (32,), 32 * 8 * 8),
            "w2": _uniform(next(keys), (32, 32), 32),
            "b2": _uniform(next(keys), (32,), 32),
            "w3": _uniform(next(keys), (4, 32), 32),
            "b3": _uniform(next(keys), (4,), 32),
        })
    return params


# ----------------------------------------------------------------------------
# One-time weight packing (runs once, outside the forward / jit)
# ----------------------------------------------------------------------------
def _pack_conv_w(w_torch, pad_cin=0):
    # (Cout, Cin, kH, kW) -> (kH, kW, Cin+pad, Cout) -> ((2*ky+kx)*Cin'+c, Cout)
    w = jnp.transpose(w_torch, (2, 3, 1, 0))
    if pad_cin:
        w = jnp.pad(w, ((0, 0), (0, 0), (0, pad_cin), (0, 0)))
    kH, kW, Cin, Cout = w.shape
    return w.reshape(kH * kW * Cin, Cout)


def pack_params(params):
    NPAD = 128
    HI = jax.lax.Precision.HIGHEST
    packed = {
        "c1_w": _pack_conv_w(params["conv1_w"], pad_cin=1).astype(jnp.bfloat16),
        "c1_b": params["conv1_b"].reshape(1, -1),                # f32
        "c2_w": _pack_conv_w(params["conv2_w"]).astype(jnp.bfloat16),
        "c2_b": params["conv2_b"].reshape(1, -1),                # f32
    }

    # ---- conv3 folded into [policy w1 ; value_w] (exact: no ReLU between) ----
    wc3 = _pack_conv_w(params["conv3_w"])                        # (128, 32) f32
    bc3 = params["conv3_b"]                                      # (32,)
    wv, bv = params["value_w"], params["value_b"]                # (1,2048), (1,)

    heads = []
    for h in params["policy_heads"]:
        wbig = jnp.concatenate([h["w1"], wv], axis=0)            # (33, 2048)
        bbig = jnp.concatenate([h["b1"], bv])                    # (33,)
        wbig_r = wbig.reshape(33, 32, 64)                        # [o, c, s]
        # W13[s*128 + j, o] = sum_c wc3[j, c] * wbig[o, c*64 + s]
        w13 = jnp.einsum("jc,ocs->sjo", wc3, wbig_r,
                         precision=HI).reshape(64 * 128, 33)
        b13 = jnp.einsum("c,ocs->o", bc3, wbig_r, precision=HI) + bbig

        w3_pad = jnp.zeros((32, NPAD), jnp.float32).at[:, :4].set(h["w3"].T)
        b3_pad = jnp.zeros((1, NPAD), jnp.float32).at[0, :4].set(h["b3"])
        heads.append({
            "w13": w13.astype(jnp.bfloat16),                     # (8192, 33)
            "b13": b13.reshape(1, 33).astype(jnp.float32),
            "w2": jnp.transpose(h["w2"]).astype(jnp.bfloat16),   # (32, 32)
            "b2": h["b2"].reshape(1, -1),                        # f32
            "w3": w3_pad.astype(jnp.bfloat16),                   # (32, 128)
            "b3": b3_pad,                                        # f32, col 4 = 0
        })
    packed["heads"] = heads
    return packed


# ----------------------------------------------------------------------------
# Forward pass (matches BigModel.forward(obs, i))
# ----------------------------------------------------------------------------
def big_model_forward(packed, obs_nchw, i, sample_key):
    x = jnp.transpose(obs_nchw, (0, 2, 3, 1)).astype(jnp.bfloat16)   # NCHW->NHWC
    B = x.shape[0]

    p1, h1s, w1s = _space_to_patches(x, pad_c=1)                 # (B*676, 16)
    a1 = conv_matmul(p1, packed["c1_w"], packed["c1_b"])         # (B*676, 32)

    p2, h2s, w2s = _space_to_patches(a1.reshape(B, h1s, w1s, 32))  # (B*196, 128)
    a2 = conv_matmul(p2, packed["c2_w"], packed["c2_b"])         # (B*196, 32)

    p3, h3s, w3s = _space_to_patches(a2.reshape(B, h2s, w2s, 32))  # (B*64, 128)
    # (B*64, 128) and (B, 8192) share the same HBM layout: free reshape.  The
    # conv3 weights and the NCHW-flatten permutation are baked into w13.
    x3 = p3.reshape(B, h3s * w3s * 128)                          # (B, 8192)

    out = conv3_heads_fused(x3, packed["heads"][i])              # (B, 128) f32
    logits = out[:, :4]
    value = out[:, 4:5]

    # TODO(synk): torch.distributions.Categorical has no Pallas equivalent;
    # we return the logits and draw the sample with jax.random.categorical.
    action = jax.random.categorical(sample_key, logits, axis=-1)
    return action, logits, value


if __name__ == "__main__":
    key = jax.random.PRNGKey(0)
    k_params, k_obs, k_sample = jax.random.split(key, 3)

    n_actors = 2
    batch = 2
    # Input spatial size implied by the flatten to 32*8*8: 50 -> 26 -> 14 -> 8.
    obs = jax.random.normal(k_obs, (batch, 3, 50, 50), jnp.float32)

    params = init_params(k_params, n_actors)
    packed = pack_params(params)           # one-time weight packing / folding

    fwd = jax.jit(big_model_forward, static_argnames=("i",))
    action, logits, value = fwd(packed, obs, i=0, sample_key=k_sample)
    jax.block_until_ready((action, logits, value))

    assert action.shape == (batch,)
    assert logits.shape == (batch, 4)
    assert value.shape == (batch, 1)
    assert bool(jnp.all(jnp.isfinite(logits))) and bool(jnp.all(jnp.isfinite(value)))
    print("KERNEL_OK")
</pallas_src>

<mosaic_0001>
module attributes {stable_mosaic.version = 11 : i64} {
  func.func @_matmul_bias_kernel(%arg0: i32, %arg1: memref<1352x16xbf16, #tpu.memory_space<vmem>>, %arg2: memref<16x32xbf16, #tpu.memory_space<vmem>>, %arg3: memref<1x32xf32, #tpu.memory_space<vmem>>, %arg4: memref<1352x32xbf16, #tpu.memory_space<vmem>>) attributes {dimension_semantics = [#tpu.dimension_semantics<arbitrary>], iteration_bounds = array<i64: 1>, scalar_prefetch = 0 : i64, scratch_operands = 0 : i64, tpu.core_type = #tpu.core_type<tc>, window_params = [{pipeline_mode = #tpu.pipeline_mode<synchronous>, transform_indices = @transform_0, window_bounds = array<i64: 1352, 16>}, {pipeline_mode = #tpu.pipeline_mode<synchronous>, transform_indices = @transform_1, window_bounds = array<i64: 16, 32>}, {pipeline_mode = #tpu.pipeline_mode<synchronous>, transform_indices = @transform_2, window_bounds = array<i64: 1, 32>}, {pipeline_mode = #tpu.pipeline_mode<synchronous>, transform_indices = @transform_3, window_bounds = array<i64: 1352, 32>}]} {
    %c0 = arith.constant 0 : index
    %c0_0 = arith.constant 0 : index
    %0 = vector.load %arg1[%c0, %c0_0] : memref<1352x16xbf16, #tpu.memory_space<vmem>>, vector<1352x16xbf16>
    %c0_1 = arith.constant 0 : index
    %c0_2 = arith.constant 0 : index
    %1 = vector.load %arg2[%c0_1, %c0_2] : memref<16x32xbf16, #tpu.memory_space<vmem>>, vector<16x32xbf16>
    %cst = arith.constant dense<0.000000e+00> : vector<1352x32xf32>
    %2 = tpu.matmul %0, %1, %cst {dimension_numbers = #tpu.dot_dimension_numbers<[1], [0], [0], [1], [0, 0, 1, 1], [], []>} : vector<1352x16xbf16>, vector<16x32xbf16>, vector<1352x32xf32> -> vector<1352x32xf32>
    %c0_3 = arith.constant 0 : index
    %c0_4 = arith.constant 0 : index
    %3 = vector.load %arg3[%c0_3, %c0_4] : memref<1x32xf32, #tpu.memory_space<vmem>>, vector<1x32xf32>
    %4 = vector.broadcast %3 : vector<1x32xf32> to vector<1352x32xf32>
    %5 = arith.addf %2, %4 : vector<1352x32xf32>
    %cst_5 = arith.constant 0.000000e+00 : f32
    %6 = vector.broadcast %cst_5 : f32 to vector<1352x32xf32>
    %7 = arith.maximumf %5, %6 : vector<1352x32xf32>
    %8 = arith.truncf %7 : vector<1352x32xf32> to vector<1352x32xbf16>
    %c0_6 = arith.constant 0 : index
    %c0_7 = arith.constant 0 : index
    %9 = vector.load %arg4[%c0_6, %c0_7] : memref<1352x32xbf16, #tpu.memory_space<vmem>>, vector<1352x32xbf16>
    tpu.vector_store %arg4[%c0_6, %c0_7], %8 {strides = array<i32>} : memref<1352x32xbf16, #tpu.memory_space<vmem>>, vector<1352x32xbf16>,
    return
  }
  func.func @transform_0(%arg0: i32) -> (i32, i32) {
    %c0_i32 = arith.constant 0 : i32
    %c0_i32_0 = arith.constant 0 : i32
    %c0_i32_1 = arith.constant 0 : i32
    return %c0_i32, %c0_i32_0 : i32, i32
  }
  func.func @transform_1(%arg0: i32) -> (i32, i32) {
    %c0_i32 = arith.constant 0 : i32
    %c0_i32_0 = arith.constant 0 : i32
    %c0_i32_1 = arith.constant 0 : i32
    return %c0_i32, %c0_i32_0 : i32, i32
  }
  func.func @transform_2(%arg0: i32) -> (i32, i32) {
    %c0_i32 = arith.constant 0 : i32
    %c0_i32_0 = arith.constant 0 : i32
    %c0_i32_1 = arith.constant 0 : i32
    return %c0_i32, %c0_i32_0 : i32, i32
  }
  func.func @transform_3(%arg0: i32) -> (i32, i32) {
    %c0_i32 = arith.constant 0 : i32
    %c0_i32_0 = arith.constant 0 : i32
    %c0_i32_1 = arith.constant 0 : i32
    return %c0_i32, %c0_i32_0 : i32, i32
  }
}

module attributes {stable_mosaic.version = 11 : i64} {
  func.func @_matmul_bias_kernel(%arg0: i32, %arg1: memref<392x128xbf16, #tpu.memory_space<vmem>>, %arg2: memref<128x32xbf16, #tpu.memory_space<vmem>>, %arg3: memref<1x32xf32, #tpu.memory_space<vmem>>, %arg4: memref<392x32xbf16, #tpu.memory_space<vmem>>) attributes {dimension_semantics = [#tpu.dimension_semantics<arbitrary>], iteration_bounds = array<i64: 1>, scalar_prefetch = 0 : i64, scratch_operands = 0 : i64, tpu.core_type = #tpu.core_type<tc>, window_params = [{pipeline_mode = #tpu.pipeline_mode<synchronous>, transform_indices = @transform_0, window_bounds = array<i64: 392, 128>}, {pipeline_mode = #tpu.pipeline_mode<synchronous>, transform_indices = @transform_1, window_bounds = array<i64: 128, 32>}, {pipeline_mode = #tpu.pipeline_mode<synchronous>, transform_indices = @transform_2, window_bounds = array<i64: 1, 32>}, {pipeline_mode = #tpu.pipeline_mode<synchronous>, transform_indices = @transform_3, window_bounds = array<i64: 392, 32>}]} {
    %c0 = arith.constant 0 : index
    %c0_0 = arith.constant 0 : index
    %0 = vector.load %arg1[%c0, %c0_0] : memref<392x128xbf16, #tpu.memory_space<vmem>>, vector<392x128xbf16>
    %c0_1 = arith.constant 0 : index
    %c0_2 = arith.constant 0 : index
    %1 = vector.load %arg2[%c0_1, %c0_2] : memref<128x32xbf16, #tpu.memory_space<vmem>>, vector<128x32xbf16>
    %cst = arith.constant dense<0.000000e+00> : vector<392x32xf32>
    %2 = tpu.matmul %0, %1, %cst {dimension_numbers = #tpu.dot_dimension_numbers<[1], [0], [0], [1], [0, 0, 1, 1], [], []>} : vector<392x128xbf16>, vector<128x32xbf16>, vector<392x32xf32> -> vector<392x32xf32>
    %c0_3 = arith.constant 0 : index
    %c0_4 = arith.constant 0 : index
    %3 = vector.load %arg3[%c0_3, %c0_4] : memref<1x32xf32, #tpu.memory_space<vmem>>, vector<1x32xf32>
    %4 = vector.broadcast %3 : vector<1x32xf32> to vector<392x32xf32>
    %5 = arith.addf %2, %4 : vector<392x32xf32>
    %cst_5 = arith.constant 0.000000e+00 : f32
    %6 = vector.broadcast %cst_5 : f32 to vector<392x32xf32>
    %7 = arith.maximumf %5, %6 : vector<392x32xf32>
    %8 = arith.truncf %7 : vector<392x32xf32> to vector<392x32xbf16>
    %c0_6 = arith.constant 0 : index
    %c0_7 = arith.constant 0 : index
    %9 = vector.load %arg4[%c0_6, %c0_7] : memref<392x32xbf16, #tpu.memory_space<vmem>>, vector<392x32xbf16>
    tpu.vector_store %arg4[%c0_6, %c0_7], %8 {strides = array<i32>} : memref<392x32xbf16, #tpu.memory_space<vmem>>, vector<392x32xbf16>,
    return
  }
  func.func @transform_0(%arg0: i32) -> (i32, i32) {
    %c0_i32 = arith.constant 0 : i32
    %c0_i32_0 = arith.constant 0 : i32
    %c0_i32_1 = arith.constant 0 : i32
    return %c0_i32, %c0_i32_0 : i32, i32
  }
  func.func @transform_1(%arg0: i32) -> (i32, i32) {
    %c0_i32 = arith.constant 0 : i32
    %c0_i32_0 = arith.constant 0 : i32
    %c0_i32_1 = arith.constant 0 : i32
    return %c0_i32, %c0_i32_0 : i32, i32
  }
  func.func @transform_2(%arg0: i32) -> (i32, i32) {
    %c0_i32 = arith.constant 0 : i32
    %c0_i32_0 = arith.constant 0 : i32
    %c0_i32_1 = arith.constant 0 : i32
    return %c0_i32, %c0_i32_0 : i32, i32
  }
  func.func @transform_3(%arg0: i32) -> (i32, i32) {
    %c0_i32 = arith.constant 0 : i32
    %c0_i32_0 = arith.constant 0 : i32
    %c0_i32_1 = arith.constant 0 : i32
    return %c0_i32, %c0_i32_0 : i32, i32
  }
}

module attributes {stable_mosaic.version = 11 : i64} {
  func.func @_conv3_heads_kernel(%arg0: i32, %arg1: memref<2x8192xbf16, #tpu.memory_space<vmem>>, %arg2: memref<8192x33xbf16, #tpu.memory_space<vmem>>, %arg3: memref<1x33xf32, #tpu.memory_space<vmem>>, %arg4: memref<32x32xbf16, #tpu.memory_space<vmem>>, %arg5: memref<1x32xf32, #tpu.memory_space<vmem>>, %arg6: memref<32x128xbf16, #tpu.memory_space<vmem>>, %arg7: memref<1x128xf32, #tpu.memory_space<vmem>>, %arg8: memref<2x128xf32, #tpu.memory_space<vmem>>) attributes {dimension_semantics = [#tpu.dimension_semantics<arbitrary>], iteration_bounds = array<i64: 1>, scalar_prefetch = 0 : i64, scratch_operands = 0 : i64, tpu.core_type = #tpu.core_type<tc>, window_params = [{pipeline_mode = #tpu.pipeline_mode<synchronous>, transform_indices = @transform_0, window_bounds = array<i64: 2, 8192>}, {pipeline_mode = #tpu.pipeline_mode<synchronous>, transform_indices = @transform_1, window_bounds = array<i64: 8192, 33>}, {pipeline_mode = #tpu.pipeline_mode<synchronous>, transform_indices = @transform_2, window_bounds = array<i64: 1, 33>}, {pipeline_mode = #tpu.pipeline_mode<synchronous>, transform_indices = @transform_3, window_bounds = array<i64: 32, 32>}, {pipeline_mode = #tpu.pipeline_mode<synchronous>, transform_indices = @transform_4, window_bounds = array<i64: 1, 32>}, {pipeline_mode = #tpu.pipeline_mode<synchronous>, transform_indices = @transform_5, window_bounds = array<i64: 32, 128>}, {pipeline_mode = #tpu.pipeline_mode<synchronous>, transform_indices = @transform_6, window_bounds = array<i64: 1, 128>}, {pipeline_mode = #tpu.pipeline_mode<synchronous>, transform_indices = @transform_7, window_bounds = array<i64: 2, 128>}]} {
    %c0 = arith.constant 0 : index
    %c0_0 = arith.constant 0 : index
    %0 = vector.load %arg1[%c0, %c0_0] : memref<2x8192xbf16, #tpu.memory_space<vmem>>, vector<2x8192xbf16>
    %c0_1 = arith.constant 0 : index
    %c0_2 = arith.constant 0 : index
    %1 = vector.load %arg2[%c0_1, %c0_2] : memref<8192x33xbf16, #tpu.memory_space<vmem>>, vector<8192x33xbf16>
    %cst = arith.constant dense<0.000000e+00> : vector<2x33xf32>
    %2 = tpu.matmul %0, %1, %cst {dimension_numbers = #tpu.dot_dimension_numbers<[1], [0], [0], [1], [0, 0, 1, 1], [], []>} : vector<2x8192xbf16>, vector<8192x33xbf16>, vector<2x33xf32> -> vector<2x33xf32>
    %c0_3 = arith.constant 0 : index
    %c0_4 = arith.constant 0 : index
    %3 = vector.load %arg3[%c0_3, %c0_4] : memref<1x33xf32, #tpu.memory_space<vmem>>, vector<1x33xf32>
    %4 = vector.broadcast %3 : vector<1x33xf32> to vector<2x33xf32>
    %5 = arith.addf %2, %4 : vector<2x33xf32>
    %6 = vector.extract_strided_slice %5 {offsets = [0, 0], sizes = [2, 32], strides = [1, 1]} : vector<2x33xf32> to vector<2x32xf32>
    %cst_5 = arith.constant 0.000000e+00 : f32
    %7 = vector.broadcast %cst_5 : f32 to vector<2x32xf32>
    %8 = arith.maximumf %6, %7 : vector<2x32xf32>
    %9 = vector.extract_strided_slice %5 {offsets = [0, 32], sizes = [2, 1], strides = [1, 1]} : vector<2x33xf32> to vector<2x1xf32>
    %10 = arith.truncf %8 : vector<2x32xf32> to vector<2x32xbf16>
    %c0_6 = arith.constant 0 : index
    %c0_7 = arith.constant 0 : index
    %11 = vector.load %arg4[%c0_6, %c0_7] : memref<32x32xbf16, #tpu.memory_space<vmem>>, vector<32x32xbf16>
    %cst_8 = arith.constant dense<0.000000e+00> : vector<2x32xf32>
    %12 = tpu.matmul %10, %11, %cst_8 {dimension_numbers = #tpu.dot_dimension_numbers<[1], [0], [0], [1], [0, 0, 1, 1], [], []>} : vector<2x32xbf16>, vector<32x32xbf16>, vector<2x32xf32> -> vector<2x32xf32>
    %c0_9 = arith.constant 0 : index
    %c0_10 = arith.constant 0 : index
    %13 = vector.load %arg5[%c0_9, %c0_10] : memref<1x32xf32, #tpu.memory_space<vmem>>, vector<1x32xf32>
    %14 = vector.broadcast %13 : vector<1x32xf32> to vector<2x32xf32>
    %15 = arith.addf %12, %14 : vector<2x32xf32>
    %cst_11 = arith.constant 0.000000e+00 : f32
    %16 = vector.broadcast %cst_11 : f32 to vector<2x32xf32>
    %17 = arith.maximumf %15, %16 : vector<2x32xf32>
    %18 = arith.truncf %17 : vector<2x32xf32> to vector<2x32xbf16>
    %c0_12 = arith.constant 0 : index
    %c0_13 = arith.constant 0 : index
    %19 = vector.load %arg6[%c0_12, %c0_13] : memref<32x128xbf16, #tpu.memory_space<vmem>>, vector<32x128xbf16>
    %cst_14 = arith.constant dense<0.000000e+00> : vector<2x128xf32>
    %20 = tpu.matmul %18, %19, %cst_14 {dimension_numbers = #tpu.dot_dimension_numbers<[1], [0], [0], [1], [0, 0, 1, 1], [], []>} : vector<2x32xbf16>, vector<32x128xbf16>, vector<2x128xf32> -> vector<2x128xf32>
    %c0_15 = arith.constant 0 : index
    %c0_16 = arith.constant 0 : index
    %21 = vector.load %arg7[%c0_15, %c0_16] : memref<1x128xf32, #tpu.memory_space<vmem>>, vector<1x128xf32>
    %22 = vector.broadcast %21 : vector<1x128xf32> to vector<2x128xf32>
    %23 = arith.addf %20, %22 : vector<2x128xf32>
    %24 = tpu.iota {dimensions = array<i32: 1>} : vector<1x128xi32>
    %c4_i32 = arith.constant 4 : i32
    %25 = vector.broadcast %c4_i32 : i32 to vector<1x128xi32>
    %26 = arith.cmpi eq, %24, %25 : vector<1x128xi32>
    %cst_17 = arith.constant 0.000000e+00 : f32
    %27 = vector.shape_cast %26 : vector<1x128xi1> to vector<1x128xi1>
    %28 = vector.broadcast %27 : vector<1x128xi1> to vector<2x128xi1>
    %29 = vector.shape_cast %9 : vector<2x1xf32> to vector<2x1xf32>
    %30 = vector.broadcast %29 : vector<2x1xf32> to vector<2x128xf32>
    %31 = vector.broadcast %cst_17 : f32 to vector<2x128xf32>
    %32 = arith.select %28, %30, %31 : vector<2x128xi1>, vector<2x128xf32>
    %33 = arith.addf %23, %32 : vector<2x128xf32>
    %c0_18 = arith.constant 0 : index
    %c0_19 = arith.constant 0 : index
    %34 = vector.load %arg8[%c0_18, %c0_19] : memref<2x128xf32, #tpu.memory_space<vmem>>, vector<2x128xf32>
    tpu.vector_store %arg8[%c0_18, %c0_19], %33 {strides = array<i32>} : memref<2x128xf32, #tpu.memory_space<vmem>>, vector<2x128xf32>,
    return
  }
  func.func @transform_0(%arg0: i32) -> (i32, i32) {
    %c0_i32 = arith.constant 0 : i32
    %c0_i32_0 = arith.constant 0 : i32
    %c0_i32_1 = arith.constant 0 : i32
    return %c0_i32, %c0_i32_0 : i32, i32
  }
  func.func @transform_1(%arg0: i32) -> (i32, i32) {
    %c0_i32 = arith.constant 0 : i32
    %c0_i32_0 = arith.constant 0 : i32
    %c0_i32_1 = arith.constant 0 : i32
    return %c0_i32, %c0_i32_0 : i32, i32
  }
  func.func @transform_2(%arg0: i32) -> (i32, i32) {
    %c0_i32 = arith.constant 0 : i32
    %c0_i32_0 = arith.constant 0 : i32
    %c0_i32_1 = arith.constant 0 : i32
    return %c0_i32, %c0_i32_0 : i32, i32
  }
  func.func @transform_3(%arg0: i32) -> (i32, i32) {
    %c0_i32 = arith.constant 0 : i32
    %c0_i32_0 = arith.constant 0 : i32
    %c0_i32_1 = arith.constant 0 : i32
    return %c0_i32, %c0_i32_0 : i32, i32
  }
  func.func @transform_4(%arg0: i32) -> (i32, i32) {
    %c0_i32 = arith.constant 0 : i32
    %c0_i32_0 = arith.constant 0 : i32
    %c0_i32_1 = arith.constant 0 : i32
    return %c0_i32, %c0_i32_0 : i32, i32
  }
  func.func @transform_5(%arg0: i32) -> (i32, i32) {
    %c0_i32 = arith.constant 0 : i32
    %c0_i32_0 = arith.constant 0 : i32
    %c0_i32_1 = arith.constant 0 : i32
    return %c0_i32, %c0_i32_0 : i32, i32
  }
  func.func @transform_6(%arg0: i32) -> (i32, i32) {
    %c0_i32 = arith.constant 0 : i32
    %c0_i32_0 = arith.constant 0 : i32
    %c0_i32_1 = arith.constant 0 : i32
    return %c0_i32, %c0_i32_0 : i32, i32
  }
  func.func @transform_7(%arg0: i32) -> (i32, i32) {
    %c0_i32 = arith.constant 0 : i32
    %c0_i32_0 = arith.constant 0 : i32
    %c0_i32_1 = arith.constant 0 : i32
    return %c0_i32, %c0_i32_0 : i32, i32
  }
}

</mosaic_0001>

<bundles_post_ra>
// kernel: big_model_forward.3
= control target key start
LH: loop header
LB: loop body
LE: loop exit
PB: predicated region body
PF: predicated region fallthrough
CT: control target
= control target key end

     0   :  { %vm619_vm0 = vcmask 130048   ;;  %vm1646_vm1 = vcmask 257024   ;;  %s3553_s1 = inlined_call_operand.vmem [shape: bf16[16,32], index: 1, kind: input, shape index: {}]   ;;  %s3554_s0 = inlined_call_operand.vmem [shape: bf16[1352,16], index: 0, kind: input, shape index: {}]   ;;  %s3555_s2 = inlined_call_operand.vmem [shape: f32[1,32], index: 2, kind: input, shape index: {}]   ;;  %s3556_s3 = inlined_call_operand.vmem [shape: bf16[1352,32], index: 3, kind: output, shape index: {}]  }
   0x1   :  { %v2329_v0 = vld [vmem:[%s3553_s1] sm:$0xff]  ;;  %v2267_v2 = vld [vmem:[%s3554_s0 + $0xb0] sm:$0xff]  ;;  %v2246_v5 = vld [vmem:[%s3554_s0 + $0x8] sm:$0xff] }
   0x2   :  { %v2245_v1 = vld [vmem:[%s3554_s0] sm:$0xff]  ;;  %882 = vmatpush.bf16.msra.mxu0 %v2329_v0  ;;  %2330 = vmatpush.bf16.msra.mxu1 %v2329_v0  ;;  %v2311_v4 = vld [vmem:[%s3554_s0 + $0x210] sm:$0xff]  ;;  %v2268_v6 = vld [vmem:[%s3554_s0 + $0xb8] sm:$0xff] }
   0x3   :  { %v2289_v3 = vld [vmem:[%s3554_s0 + $0x160] sm:$0xff]  ;;  %2331 = vmatpush.bf16.msra.mxu2 %v2329_v0  ;;  %2332 = vmatpush.bf16.msra.mxu3 %v2329_v0  ;;  %v2290_v7 = vld [vmem:[%s3554_s0 + $0x168] sm:$0xff]  ;;  %v2312_v8 = vld [vmem:[%s3554_s0 + $0x218] sm:$0xff] }
   0x4   :  { %v2247_v9 = vld [vmem:[%s3554_s0 + $0x10] sm:$0xff]  ;;  %v2269_v10 = vld [vmem:[%s3554_s0 + $0xc0] sm:$0xff]  ;;  %v2248_v13 = vld [vmem:[%s3554_s0 + $0x18] sm:$0xff] }
   0x5   :  { %2160 = vmatmul.msk.bf16.vlgmr.msra.gmra.mxu0 %vm619_vm0, %v2245_v1  ;;  %2182 = vmatmul.msk.bf16.vlgmr.msra.gmra.mxu1 %vm619_vm0, %v2267_v2  ;;  %v2291_v11 = vld [vmem:[%s3554_s0 + $0x170] sm:$0xff]  ;;  %v2313_v12 = vld [vmem:[%s3554_s0 + $0x220] sm:$0xff]  ;;  %v2270_v14 = vld [vmem:[%s3554_s0 + $0xc8] sm:$0xff] }
   0x6   :  { %2204 = vmatmul.msk.bf16.vlgmr.msra.gmra.mxu2 %vm619_vm0, %v2289_v3  ;;  %2226 = vmatmul.msk.bf16.vlgmr.msra.gmra.mxu3 %vm619_vm0, %v2311_v4  ;;  %v2292_v15 = vld [vmem:[%s3554_s0 + $0x178] sm:$0xff]  ;;  %v2314_v16 = vld [vmem:[%s3554_s0 + $0x228] sm:$0xff]  ;;  %v2249_v17 = vld [vmem:[%s3554_s0 + $0x20] sm:$0xff] }
   0x7   :  { %v2271_v18 = vld [vmem:[%s3554_s0 + $0xd0] sm:$0xff]  ;;  %v2293_v19 = vld [vmem:[%s3554_s0 + $0x180] sm:$0xff]  ;;  %v2250_v21 = vld [vmem:[%s3554_s0 + $0x28] sm:$0xff] }
   0x8   :  { %v2315_v20 = vld [vmem:[%s3554_s0 + $0x230] sm:$0xff]  ;;  %v2272_v22 = vld [vmem:[%s3554_s0 + $0xd8] sm:$0xff]  ;;  %v2294_v23 = vld [vmem:[%s3554_s0 + $0x188] sm:$0xff] }
   0x9   :  { %v2251_v24 = vld [vmem:[%s3554_s0 + $0x30] sm:$0xff]  ;;  %v2273_v25 = vld [vmem:[%s3554_s0 + $0xe0] sm:$0xff]  ;;  %v2316_v27 = vld [vmem:[%s3554_s0 + $0x238] sm:$0xff] }
   0xa   :  { %v2295_v26 = vld [vmem:[%s3554_s0 + $0x190] sm:$0xff]  ;;  %v2252_v28 = vld [vmem:[%s3554_s0 + $0x38] sm:$0xff]  ;;  %v2274_v29 = vld [vmem:[%s3554_s0 + $0xe8] sm:$0xff] }
   0xb   :  { %v2296_v30 = vld [vmem:[%s3554_s0 + $0x198] sm:$0xff]  ;;  %v2317_v31 = vld [vmem:[%s3554_s0 + $0x240] sm:$0xff]  ;;  %v2275_v34 = vld [vmem:[%s3554_s0 + $0xf0] sm:$0xff] }
   0xc   :  { %v2485_v32 = vld [vmem:[%s3555_s2] ss:$0 sm:$0xff]  ;;  %v2318_v40 = vld [vmem:[%s3554_s0 + $0x248] sm:$0xff]  ;;  %v2276_v59 = vld [vmem:[%s3554_s0 + $0xf8] sm:$0xff] }
   0xd   :  { %v2253_v33 = vld [vmem:[%s3554_s0 + $0x40] sm:$0xff]  ;;  %v2254_v58 = vld [vmem:[%s3554_s0 + $0x48] sm:$0xff]  ;;  %v2319_v2 = vld [vmem:[%s3554_s0 + $0x250] sm:$0xff] }
   0xe   :  { %v2297_v37 = vld [vmem:[%s3554_s0 + $0x1a0] sm:$0xff]  ;;  %v2298_v63 = vld [vmem:[%s3554_s0 + $0x1a8] sm:$0xff] }
  0x15   :  { %2161 = vmatmul.msk.bf16.gmra.mxu0 %vm619_vm0, %v2246_v5  ;;  %2183 = vmatmul.msk.bf16.gmra.mxu1 %vm619_vm0, %v2268_v6 }
  0x16   :  { %2205 = vmatmul.msk.bf16.gmra.mxu2 %vm619_vm0, %v2290_v7  ;;  %2227 = vmatmul.msk.bf16.gmra.mxu3 %vm619_vm0, %v2312_v8 }
  0x25   :  { %2162 = vmatmul.msk.bf16.gmra.mxu0 %vm619_vm0, %v2247_v9  ;;  %2184 = vmatmul.msk.bf16.gmra.mxu1 %vm619_vm0, %v2269_v10 }
  0x26   :  { %2206 = vmatmul.msk.bf16.gmra.mxu2 %vm619_vm0, %v2291_v11  ;;  %2228 = vmatmul.msk.bf16.gmra.mxu3 %vm619_vm0, %v2313_v12 }
  0x35   :  { %2163 = vmatmul.msk.bf16.gmra.mxu0 %vm619_vm0, %v2248_v13  ;;  %2185 = vmatmul.msk.bf16.gmra.mxu1 %vm619_vm0, %v2270_v14 }
  0x36   :  { %2207 = vmatmul.msk.bf16.gmra.mxu2 %vm619_vm0, %v2292_v15  ;;  %2229 = vmatmul.msk.bf16.gmra.mxu3 %vm619_vm0, %v2314_v16 }
  0x45   :  { %2164 = vmatmul.msk.bf16.gmra.mxu0 %vm619_vm0, %v2249_v17  ;;  %2186 = vmatmul.msk.bf16.gmra.mxu1 %vm619_vm0, %v2271_v18 }
  0x46   :  { %2208 = vmatmul.msk.bf16.gmra.mxu2 %vm619_vm0, %v2293_v19  ;;  %2230 = vmatmul.msk.bf16.gmra.mxu3 %vm619_vm0, %v2315_v20 }
  0x55   :  { %2165 = vmatmul.msk.bf16.gmra.mxu0 %vm619_vm0, %v2250_v21  ;;  %2187 = vmatmul.msk.bf16.gmra.mxu1 %vm619_vm0, %v2272_v22 }
  0x56   :  { %2209 = vmatmul.msk.bf16.gmra.mxu2 %vm619_vm0, %v2294_v23  ;;  %2231 = vmatmul.msk.bf16.gmra.mxu3 %vm619_vm0, %v2316_v27  ;;  %v2255_v27 = vld [vmem:[%s3554_s0 + $0x50] sm:$0xff] }
  0x65   :  { %2166 = vmatmul.msk.bf16.gmra.mxu0 %vm619_vm0, %v2251_v24  ;;  %2188 = vmatmul.msk.bf16.gmra.mxu1 %vm619_vm0, %v2273_v25 }
  0x66   :  { %2210 = vmatmul.msk.bf16.gmra.mxu2 %vm619_vm0, %v2295_v26  ;;  %2232 = vmatmul.msk.bf16.gmra.mxu3 %vm619_vm0, %v2317_v31 }
  0x75   :  { %2167 = vmatmul.msk.bf16.gmra.mxu0 %vm619_vm0, %v2252_v28  ;;  %2189 = vmatmul.msk.bf16.gmra.mxu1 %vm619_vm0, %v2274_v29  ;;  %v2277_v28 = vld [vmem:[%s3554_s0 + $0x100] sm:$0xff] }
  0x76   :  { %2211 = vmatmul.msk.bf16.gmra.mxu2 %vm619_vm0, %v2296_v30  ;;  %2233 = vmatmul.msk.bf16.gmra.mxu3 %vm619_vm0, %v2318_v40 }
  0x82   :  { %v884_v35 = vpop.f32.mrf.mxu0  ;;  %v994_v36 = vpop.f32.mrf.mxu1 }
  0x83   :  { %v885_v38 = vadd.f32 %v2485_v32, %v884_v35  ;;  %v995_v39 = vadd.f32 %v2485_v32, %v994_v36 }
  0x85   :  { %v1308_v41 = vmax.f32 %v885_v38, 0.0  ;;  %v1352_v42 = vmax.f32 %v995_v39, 0.0  ;;  %2168 = vmatmul.msk.bf16.gmra.mxu0 %vm619_vm0, %v2253_v33  ;;  %2190 = vmatmul.msk.bf16.gmra.mxu1 %vm619_vm0, %v2275_v34  ;;  %v2299_v34 = vld [vmem:[%s3554_s0 + $0x1b0] sm:$0xff]  ;;  %v2320_v38 = vld [vmem:[%s3554_s0 + $0x258] sm:$0xff] }
  0x86   :  { %2212 = vmatmul.msk.bf16.gmra.mxu2 %vm619_vm0, %v2297_v37  ;;  %2234 = vmatmul.msk.bf16.gmra.mxu3 %vm619_vm0, %v2319_v2 }
  0x87   :  { %v1477_v43 = vpack.c.bf16 %v1308_v41, %v1308_v41  ;;  %v1521_v44 = vpack.c.bf16 %v1352_v42, %v1352_v42 }
  0x89   :  { %1647 = vst.msk [vmem:[%s3556_s3] sm:$0xf] %vm1646_vm1, %v1477_v43  ;;  %v1104_v45 = vpop.f32.mrf.mxu2  ;;  %v1214_v9 = vpop.f32.mrf.mxu3 }
  0x8a   :  { %1691 = vst.msk [vmem:[%s3556_s3 + $0xb0] sm:$0xf] %vm1646_vm1, %v1521_v44  ;;  %v1105_v46 = vadd.f32 %v2485_v32, %v1104_v45  ;;  %v886_v47 = vpop.f32.mrf.mxu0  ;;  %v996_v48 = vpop.f32.mrf.mxu1  ;;  %v1215_v14 = vadd.f32 %v2485_v32, %v1214_v9 }
  0x8b   :  { %v887_v49 = vadd.f32 %v2485_v32, %v886_v47  ;;  %v997_v50 = vadd.f32 %v2485_v32, %v996_v48 }
  0x8c   :  { %v1396_v51 = vmax.f32 %v1105_v46, 0.0  ;;  %v1440_v18 = vmax.f32 %v1215_v14, 0.0 }
  0x8d   :  { %v1309_v52 = vmax.f32 %v887_v49, 0.0  ;;  %v1353_v53 = vmax.f32 %v997_v50, 0.0 }
  0x8e   :  { %v1565_v54 = vpack.c.bf16 %v1396_v51, %v1396_v51  ;;  %v1609_v24 = vpack.c.bf16 %v1440_v18, %v1440_v18 }
  0x8f   :  { %v1478_v55 = vpack.c.bf16 %v1309_v52, %v1309_v52  ;;  %v1522_v56 = vpack.c.bf16 %v1353_v53, %v1353_v53 }
  0x90   :  { %1735 = vst.msk [vmem:[%s3556_s3 + $0x160] sm:$0xf] %vm1646_vm1, %v1565_v54 }
  0x91   :  { %1648 = vst.msk [vmem:[%s3556_s3 + $0x4] sm:$0xf] %vm1646_vm1, %v1478_v55  ;;  %v1106_v57 = vpop.f32.mrf.mxu2  ;;  %v1216_v25 = vpop.f32.mrf.mxu3 }
  0x92   :  { %1692 = vst.msk [vmem:[%s3556_s3 + $0xb4] sm:$0xf] %vm1646_vm1, %v1522_v56  ;;  %v1107_v60 = vadd.f32 %v2485_v32, %v1106_v57  ;;  %v889_v61 = vpop.f32.mrf.mxu0  ;;  %v999_v62 = vpop.f32.mrf.mxu1  ;;  %v1217_v29 = vadd.f32 %v2485_v32, %v1216_v25 }
  0x93   :  { %v890_v0 = vadd.f32 %v2485_v32, %v889_v61  ;;  %v1000_v1 = vadd.f32 %v2485_v32, %v999_v62  ;;  %1779 = vst.msk [vmem:[%s3556_s3 + $0x210] sm:$0xf] %vm1646_vm1, %v1609_v24 }
  0x94   :  { %v1397_v3 = vmax.f32 %v1107_v60, 0.0  ;;  %v1441_v37 = vmax.f32 %v1217_v29, 0.0 }
  0x95   :  { %v1310_v4 = vmax.f32 %v890_v0, 0.0  ;;  %v1354_v5 = vmax.f32 %v1000_v1, 0.0  ;;  %2169 = vmatmul.msk.bf16.gmra.mxu0 %vm619_vm0, %v2254_v58  ;;  %2191 = vmatmul.msk.bf16.gmra.mxu1 %vm619_vm0, %v2276_v59  ;;  %v2256_v0 = vld [vmem:[%s3554_s0 + $0x58] sm:$0xff]  ;;  %v2278_v1 = vld [vmem:[%s3554_s0 + $0x108] sm:$0xff] }
  0x96   :  { %v1566_v6 = vpack.c.bf16 %v1397_v3, %v1397_v3  ;;  %2213 = vmatmul.msk.bf16.gmra.mxu2 %vm619_vm0, %v2298_v63  ;;  %v1610_v42 = vpack.c.bf16 %v1441_v37, %v1441_v37  ;;  %2235 = vmatmul.msk.bf16.gmra.mxu3 %vm619_vm0, %v2320_v38  ;;  %v2257_v37 = vld [vmem:[%s3554_s0 + $0x60] sm:$0xff]  ;;  %v2279_v38 = vld [vmem:[%s3554_s0 + $0x110] sm:$0xff] }
  0x97   :  { %v1479_v7 = vpack.c.bf16 %v1310_v4, %v1310_v4  ;;  %v1523_v8 = vpack.c.bf16 %v1354_v5, %v1354_v5 }
  0x98   :  { %1736 = vst.msk [vmem:[%s3556_s3 + $0x164] sm:$0xf] %vm1646_vm1, %v1566_v6  ;;  %v2300_v6 = vld [vmem:[%s3554_s0 + $0x1b8] sm:$0xff] }
  0x99   :  { %1649 = vst.msk [vmem:[%s3556_s3 + $0x8] sm:$0xf] %vm1646_vm1, %v1479_v7  ;;  %v1109_v10 = vpop.f32.mrf.mxu2  ;;  %v1219_v46 = vpop.f32.mrf.mxu3 }
  0x9a   :  { %1693 = vst.msk [vmem:[%s3556_s3 + $0xb8] sm:$0xf] %vm1646_vm1, %v1523_v8  ;;  %v1110_v11 = vadd.f32 %v2485_v32, %v1109_v10  ;;  %v891_v12 = vpop.f32.mrf.mxu0  ;;  %v1001_v13 = vpop.f32.mrf.mxu1  ;;  %v1220_v51 = vadd.f32 %v2485_v32, %v1219_v46  ;;  %v2321_v10 = vld [vmem:[%s3554_s0 + $0x260] sm:$0xff] }
  0x9b   :  { %v892_v15 = vadd.f32 %v2485_v32, %v891_v12  ;;  %v1002_v16 = vadd.f32 %v2485_v32, %v1001_v13  ;;  %1780 = vst.msk [vmem:[%s3556_s3 + $0x214] sm:$0xf] %vm1646_vm1, %v1610_v42 }
  0x9c   :  { %v1398_v17 = vmax.f32 %v1110_v11, 0.0  ;;  %v1442_v55 = vmax.f32 %v1220_v51, 0.0 }
  0x9d   :  { %v1311_v19 = vmax.f32 %v892_v15, 0.0  ;;  %v1355_v20 = vmax.f32 %v1002_v16, 0.0 }
  0x9e   :  { %v1567_v21 = vpack.c.bf16 %v1398_v17, %v1398_v17  ;;  %v1611_v61 = vpack.c.bf16 %v1442_v55, %v1442_v55 }
  0x9f   :  { %v1480_v22 = vpack.c.bf16 %v1311_v19, %v1311_v19  ;;  %v1524_v23 = vpack.c.bf16 %v1355_v20, %v1355_v20 }
  0xa0   :  { %1737 = vst.msk [vmem:[%s3556_s3 + $0x168] sm:$0xf] %vm1646_vm1, %v1567_v21 }
  0xa1   :  { %1650 = vst.msk [vmem:[%s3556_s3 + $0xc] sm:$0xf] %vm1646_vm1, %v1480_v22  ;;  %v1111_v26 = vpop.f32.mrf.mxu2  ;;  %v1221_v62 = vpop.f32.mrf.mxu3 }
  0xa2   :  { %1694 = vst.msk [vmem:[%s3556_s3 + $0xbc] sm:$0xf] %vm1646_vm1, %v1524_v23  ;;  %v1112_v30 = vadd.f32 %v2485_v32, %v1111_v26  ;;  %v894_v31 = vpop.f32.mrf.mxu0  ;;  %v1004_v33 = vpop.f32.mrf.mxu1  ;;  %v1222_v2 = vadd.f32 %v2485_v32, %v1221_v62 }
  0xa3   :  { %v895_v35 = vadd.f32 %v2485_v32, %v894_v31  ;;  %v1005_v36 = vadd.f32 %v2485_v32, %v1004_v33  ;;  %1781 = vst.msk [vmem:[%s3556_s3 + $0x218] sm:$0xf] %vm1646_vm1, %v1611_v61 }
  0xa4   :  { %v1399_v39 = vmax.f32 %v1112_v30, 0.0  ;;  %v1443_v9 = vmax.f32 %v1222_v2, 0.0 }
  0xa5   :  { %v1312_v40 = vmax.f32 %v895_v35, 0.0  ;;  %v1356_v41 = vmax.f32 %v1005_v36, 0.0  ;;  %2170 = vmatmul.msk.bf16.gmra.mxu0 %vm619_vm0, %v2255_v27  ;;  %2192 = vmatmul.msk.bf16.gmra.mxu1 %vm619_vm0, %v2277_v28 }
  0xa6   :  { %v1568_v43 = vpack.c.bf16 %v1399_v39, %v1399_v39  ;;  %2214 = vmatmul.msk.bf16.gmra.mxu2 %vm619_vm0, %v2299_v34  ;;  %v1612_v14 = vpack.c.bf16 %v1443_v9, %v1443_v9  ;;  %2236 = vmatmul.msk.bf16.gmra.mxu3 %vm619_vm0, %v2321_v10  ;;  %v2258_v9 = vld [vmem:[%s3554_s0 + $0x68] sm:$0xff]  ;;  %v2280_v10 = vld [vmem:[%s3554_s0 + $0x118] sm:$0xff] }
  0xa7   :  { %v1481_v44 = vpack.c.bf16 %v1312_v40, %v1312_v40  ;;  %v1525_v45 = vpack.c.bf16 %v1356_v41, %v1356_v41 }
  0xa8   :  { %1738 = vst.msk [vmem:[%s3556_s3 + $0x16c] sm:$0xf] %vm1646_vm1, %v1568_v43  ;;  %v2301_v43 = vld [vmem:[%s3554_s0 + $0x1c0] sm:$0xff] }
  0xa9   :  { %1651 = vst.msk [vmem:[%s3556_s3 + $0x10] sm:$0xf] %vm1646_vm1, %v1481_v44  ;;  %v1114_v47 = vpop.f32.mrf.mxu2  ;;  %v1224_v18 = vpop.f32.mrf.mxu3 }
  0xaa   :  { %1695 = vst.msk [vmem:[%s3556_s3 + $0xc0] sm:$0xf] %vm1646_vm1, %v1525_v45  ;;  %v1115_v48 = vadd.f32 %v2485_v32, %v1114_v47  ;;  %v896_v49 = vpop.f32.mrf.mxu0  ;;  %v1006_v50 = vpop.f32.mrf.mxu1  ;;  %v1225_v23 = vadd.f32 %v2485_v32, %v1224_v18  ;;  %v2322_v47 = vld [vmem:[%s3554_s0 + $0x268] sm:$0xff] }
  0xab   :  { %v897_v52 = vadd.f32 %v2485_v32, %v896_v49  ;;  %v1007_v53 = vadd.f32 %v2485_v32, %v1006_v50  ;;  %1782 = vst.msk [vmem:[%s3556_s3 + $0x21c] sm:$0xf] %vm1646_vm1, %v1612_v14 }
  0xac   :  { %v1400_v54 = vmax.f32 %v1115_v48, 0.0  ;;  %v1444_v27 = vmax.f32 %v1225_v23, 0.0 }
  0xad   :  { %v1313_v56 = vmax.f32 %v897_v52, 0.0  ;;  %v1357_v57 = vmax.f32 %v1007_v53, 0.0 }
  0xae   :  { %v1569_v58 = vpack.c.bf16 %v1400_v54, %v1400_v54  ;;  %v1613_v34 = vpack.c.bf16 %v1444_v27, %v1444_v27 }
  0xaf   :  { %v1482_v59 = vpack.c.bf16 %v1313_v56, %v1313_v56  ;;  %v1526_v60 = vpack.c.bf16 %v1357_v57, %v1357_v57 }
  0xb0   :  { %1739 = vst.msk [vmem:[%s3556_s3 + $0x170] sm:$0xf] %vm1646_vm1, %v1569_v58 }
  0xb1   :  { %1652 = vst.msk [vmem:[%s3556_s3 + $0x14] sm:$0xf] %vm1646_vm1, %v1482_v59  ;;  %v1116_v63 = vpop.f32.mrf.mxu2  ;;  %v1226_v35 = vpop.f32.mrf.mxu3 }
  0xb2   :  { %1696 = vst.msk [vmem:[%s3556_s3 + $0xc4] sm:$0xf] %vm1646_vm1, %v1526_v60  ;;  %v1117_v3 = vadd.f32 %v2485_v32, %v1116_v63  ;;  %v899_v4 = vpop.f32.mrf.mxu0  ;;  %v1009_v5 = vpop.f32.mrf.mxu1  ;;  %v1227_v39 = vadd.f32 %v2485_v32, %v1226_v35 }
  0xb3   :  { %v900_v7 = vadd.f32 %v2485_v32, %v899_v4  ;;  %v1010_v8 = vadd.f32 %v2485_v32, %v1009_v5  ;;  %1783 = vst.msk [vmem:[%s3556_s3 + $0x220] sm:$0xf] %vm1646_vm1, %v1613_v34 }
  0xb4   :  { %v1401_v11 = vmax.f32 %v1117_v3, 0.0  ;;  %v1445_v46 = vmax.f32 %v1227_v39, 0.0 }
  0xb5   :  { %v1314_v12 = vmax.f32 %v900_v7, 0.0  ;;  %v1358_v13 = vmax.f32 %v1010_v8, 0.0  ;;  %2171 = vmatmul.msk.bf16.gmra.mxu0 %vm619_vm0, %v2256_v0  ;;  %2193 = vmatmul.msk.bf16.gmra.mxu1 %vm619_vm0, %v2278_v1 }
  0xb6   :  { %v1570_v15 = vpack.c.bf16 %v1401_v11, %v1401_v11  ;;  %2215 = vmatmul.msk.bf16.gmra.mxu2 %vm619_vm0, %v2300_v6  ;;  %v1614_v51 = vpack.c.bf16 %v1445_v46, %v1445_v46  ;;  %2237 = vmatmul.msk.bf16.gmra.mxu3 %vm619_vm0, %v2322_v47  ;;  %v2259_v46 = vld [vmem:[%s3554_s0 + $0x70] sm:$0xff]  ;;  %v2281_v47 = vld [vmem:[%s3554_s0 + $0x120] sm:$0xff] }
  0xb7   :  { %v1483_v16 = vpack.c.bf16 %v1314_v12, %v1314_v12  ;;  %v1527_v17 = vpack.c.bf16 %v1358_v13, %v1358_v13 }
  0xb8   :  { %1740 = vst.msk [vmem:[%s3556_s3 + $0x174] sm:$0xf] %vm1646_vm1, %v1570_v15  ;;  %v2302_v15 = vld [vmem:[%s3554_s0 + $0x1c8] sm:$0xff] }
  0xb9   :  { %1653 = vst.msk [vmem:[%s3556_s3 + $0x18] sm:$0xf] %vm1646_vm1, %v1483_v16  ;;  %v1119_v19 = vpop.f32.mrf.mxu2  ;;  %v1229_v55 = vpop.f32.mrf.mxu3 }
  0xba   :  { %1697 = vst.msk [vmem:[%s3556_s3 + $0xc8] sm:$0xf] %vm1646_vm1, %v1527_v17  ;;  %v1120_v20 = vadd.f32 %v2485_v32, %v1119_v19  ;;  %v901_v21 = vpop.f32.mrf.mxu0  ;;  %v1011_v22 = vpop.f32.mrf.mxu1  ;;  %v1230_v60 = vadd.f32 %v2485_v32, %v1229_v55  ;;  %v2323_v19 = vld [vmem:[%s3554_s0 + $0x270] sm:$0xff] }
  0xbb   :  { %v902_v24 = vadd.f32 %v2485_v32, %v901_v21  ;;  %v1012_v25 = vadd.f32 %v2485_v32, %v1011_v22  ;;  %1784 = vst.msk [vmem:[%s3556_s3 + $0x224] sm:$0xf] %vm1646_vm1, %v1614_v51 }
  0xbc   :  { %v1402_v26 = vmax.f32 %v1120_v20, 0.0  ;;  %v1446_v0 = vmax.f32 %v1230_v60, 0.0 }
  0xbd   :  { %v1315_v28 = vmax.f32 %v902_v24, 0.0  ;;  %v1359_v29 = vmax.f32 %v1012_v25, 0.0 }
  0xbe   :  { %v1571_v30 = vpack.c.bf16 %v1402_v26, %v1402_v26  ;;  %v1615_v6 = vpack.c.bf16 %v1446_v0, %v1446_v0 }
  0xbf   :  { %v1484_v31 = vpack.c.bf16 %v1315_v28, %v1315_v28  ;;  %v1528_v33 = vpack.c.bf16 %v1359_v29, %v1359_v29 }
  0xc0   :  { %1741 = vst.msk [vmem:[%s3556_s3 + $0x178] sm:$0xf] %vm1646_vm1, %v1571_v30 }
  0xc1   :  { %1654 = vst.msk [vmem:[%s3556_s3 + $0x1c] sm:$0xf] %vm1646_vm1, %v1484_v31  ;;  %v1121_v36 = vpop.f32.mrf.mxu2  ;;  %v1231_v7 = vpop.f32.mrf.mxu3 }
  0xc2   :  { %1698 = vst.msk [vmem:[%s3556_s3 + $0xcc] sm:$0xf] %vm1646_vm1, %v1528_v33  ;;  %v1122_v40 = vadd.f32 %v2485_v32, %v1121_v36  ;;  %v904_v41 = vpop.f32.mrf.mxu0  ;;  %v1014_v42 = vpop.f32.mrf.mxu1  ;;  %v1232_v11 = vadd.f32 %v2485_v32, %v1231_v7 }
  0xc3   :  { %v905_v44 = vadd.f32 %v2485_v32, %v904_v41  ;;  %v1015_v45 = vadd.f32 %v2485_v32, %v1014_v42  ;;  %1785 = vst.msk [vmem:[%s3556_s3 + $0x228] sm:$0xf] %vm1646_vm1, %v1615_v6 }
  0xc4   :  { %v1403_v48 = vmax.f32 %v1122_v40, 0.0  ;;  %v1447_v18 = vmax.f32 %v1232_v11, 0.0 }
  0xc5   :  { %v1316_v49 = vmax.f32 %v905_v44, 0.0  ;;  %v1360_v50 = vmax.f32 %v1015_v45, 0.0  ;;  %2172 = vmatmul.msk.bf16.gmra.mxu0 %vm619_vm0, %v2257_v37  ;;  %2194 = vmatmul.msk.bf16.gmra.mxu1 %vm619_vm0, %v2279_v38 }
  0xc6   :  { %v1572_v52 = vpack.c.bf16 %v1403_v48, %v1403_v48  ;;  %2216 = vmatmul.msk.bf16.gmra.mxu2 %vm619_vm0, %v2301_v43  ;;  %v1616_v23 = vpack.c.bf16 %v1447_v18, %v1447_v18  ;;  %2238 = vmatmul.msk.bf16.gmra.mxu3 %vm619_vm0, %v2323_v19  ;;  %v2282_v18 = vld [vmem:[%s3554_s0 + $0x128] sm:$0xff] }
  0xc7   :  { %v1485_v53 = vpack.c.bf16 %v1316_v49, %v1316_v49  ;;  %v1529_v54 = vpack.c.bf16 %v1360_v50, %v1360_v50 }
  0xc8   :  { %1742 = vst.msk [vmem:[%s3556_s3 + $0x17c] sm:$0xf] %vm1646_vm1, %v1572_v52  ;;  %v2303_v52 = vld [vmem:[%s3554_s0 + $0x1d0] sm:$0xff] }
  0xc9   :  { %1655 = vst.msk [vmem:[%s3556_s3 + $0x20] sm:$0xf] %vm1646_vm1, %v1485_v53  ;;  %v1124_v56 = vpop.f32.mrf.mxu2  ;;  %v1234_v27 = vpop.f32.mrf.mxu3 }
  0xca   :  { %1699 = vst.msk [vmem:[%s3556_s3 + $0xd0] sm:$0xf] %vm1646_vm1, %v1529_v54  ;;  %v1125_v57 = vadd.f32 %v2485_v32, %v1124_v56  ;;  %v906_v58 = vpop.f32.mrf.mxu0  ;;  %v1016_v59 = vpop.f32.mrf.mxu1  ;;  %v1235_v33 = vadd.f32 %v2485_v32, %v1234_v27  ;;  %v2324_v56 = vld [vmem:[%s3554_s0 + $0x278] sm:$0xff]  ;;  %v2325_v27 = vld [vmem:[%s3554_s0 + $0x280] sm:$0xff] }
  0xcb   :  { %v907_v61 = vadd.f32 %v2485_v32, %v906_v58  ;;  %v1017_v62 = vadd.f32 %v2485_v32, %v1016_v59  ;;  %1786 = vst.msk [vmem:[%s3556_s3 + $0x22c] sm:$0xf] %vm1646_vm1, %v1616_v23  ;;  %v2304_v23 = vld [vmem:[%s3554_s0 + $0x1d8] sm:$0xff] }
  0xcc   :  { %v1404_v63 = vmax.f32 %v1125_v57, 0.0  ;;  %v1448_v37 = vmax.f32 %v1235_v33, 0.0 }
  0xcd   :  { %v1317_v1 = vmax.f32 %v907_v61, 0.0  ;;  %v1361_v2 = vmax.f32 %v1017_v62, 0.0 }
  0xce   :  { %v1573_v3 = vpack.c.bf16 %v1404_v63, %v1404_v63  ;;  %v1617_v43 = vpack.c.bf16 %v1448_v37, %v1448_v37 }
  0xcf   :  { %v1486_v4 = vpack.c.bf16 %v1317_v1, %v1317_v1  ;;  %v1530_v5 = vpack.c.bf16 %v1361_v2, %v1361_v2 }
  0xd0   :  { %1743 = vst.msk [vmem:[%s3556_s3 + $0x180] sm:$0xf] %vm1646_vm1, %v1573_v3 }
  0xd1   :  { %1656 = vst.msk [vmem:[%s3556_s3 + $0x24] sm:$0xf] %vm1646_vm1, %v1486_v4  ;;  %v1126_v8 = vpop.f32.mrf.mxu2  ;;  %v1236_v44 = vpop.f32.mrf.mxu3 }
  0xd2   :  { %1700 = vst.msk [vmem:[%s3556_s3 + $0xd4] sm:$0xf] %vm1646_vm1, %v1530_v5  ;;  %v1127_v12 = vadd.f32 %v2485_v32, %v1126_v8  ;;  %v909_v13 = vpop.f32.mrf.mxu0  ;;  %v1019_v14 = vpop.f32.mrf.mxu1  ;;  %v1237_v48 = vadd.f32 %v2485_v32, %v1236_v44 }
  0xd3   :  { %v910_v16 = vadd.f32 %v2485_v32, %v909_v13  ;;  %v1020_v17 = vadd.f32 %v2485_v32, %v1019_v14  ;;  %1787 = vst.msk [vmem:[%s3556_s3 + $0x230] sm:$0xf] %vm1646_vm1, %v1617_v43 }
  0xd4   :  { %v1405_v20 = vmax.f32 %v1127_v12, 0.0  ;;  %v1449_v55 = vmax.f32 %v1237_v48, 0.0 }
  0xd5   :  { %v1318_v21 = vmax.f32 %v910_v16, 0.0  ;;  %v1362_v22 = vmax.f32 %v1020_v17, 0.0  ;;  %2173 = vmatmul.msk.bf16.gmra.mxu0 %vm619_vm0, %v2258_v9  ;;  %2195 = vmatmul.msk.bf16.gmra.mxu1 %vm619_vm0, %v2280_v10  ;;  %v2260_v17 = vld [vmem:[%s3554_s0 + $0x78] sm:$0xff] }
  0xd6   :  { %v1574_v24 = vpack.c.bf16 %v1405_v20, %v1405_v20  ;;  %2217 = vmatmul.msk.bf16.gmra.mxu2 %vm619_vm0, %v2302_v15  ;;  %v1618_v60 = vpack.c.bf16 %v1449_v55, %v1449_v55  ;;  %2239 = vmatmul.msk.bf16.gmra.mxu3 %vm619_vm0, %v2324_v56  ;;  %v2283_v55 = vld [vmem:[%s3554_s0 + $0x130] sm:$0xff] }
  0xd7   :  { %v1487_v25 = vpack.c.bf16 %v1318_v21, %v1318_v21  ;;  %v1531_v26 = vpack.c.bf16 %v1362_v22, %v1362_v22 }
  0xd8   :  { %1744 = vst.msk [vmem:[%s3556_s3 + $0x184] sm:$0xf] %vm1646_vm1, %v1574_v24 }
  0xd9   :  { %1657 = vst.msk [vmem:[%s3556_s3 + $0x28] sm:$0xf] %vm1646_vm1, %v1487_v25  ;;  %v1129_v28 = vpop.f32.mrf.mxu2  ;;  %v1239_v1 = vpop.f32.mrf.mxu3 }
  0xda   :  { %1701 = vst.msk [vmem:[%s3556_s3 + $0xd8] sm:$0xf] %vm1646_vm1, %v1531_v26  ;;  %v1130_v29 = vadd.f32 %v2485_v32, %v1129_v28  ;;  %v911_v30 = vpop.f32.mrf.mxu0  ;;  %v1021_v31 = vpop.f32.mrf.mxu1  ;;  %v1240_v5 = vadd.f32 %v2485_v32, %v1239_v1 }
  0xdb   :  { %v912_v34 = vadd.f32 %v2485_v32, %v911_v30  ;;  %v1022_v35 = vadd.f32 %v2485_v32, %v1021_v31  ;;  %1788 = vst.msk [vmem:[%s3556_s3 + $0x234] sm:$0xf] %vm1646_vm1, %v1618_v60  ;;  %v2305_v60 = vld [vmem:[%s3554_s0 + $0x1e0] sm:$0xff] }
  0xdc   :  { %v1406_v36 = vmax.f32 %v1130_v29, 0.0  ;;  %v1450_v9 = vmax.f32 %v1240_v5, 0.0 }
  0xdd   :  { %v1319_v38 = vmax.f32 %v912_v34, 0.0  ;;  %v1363_v39 = vmax.f32 %v1022_v35, 0.0 }
  0xde   :  { %v1575_v40 = vpack.c.bf16 %v1406_v36, %v1406_v36  ;;  %v1619_v15 = vpack.c.bf16 %v1450_v9, %v1450_v9 }
  0xdf   :  { %v1488_v41 = vpack.c.bf16 %v1319_v38, %v1319_v38  ;;  %v1532_v42 = vpack.c.bf16 %v1363_v39, %v1363_v39 }
  0xe0   :  { %1745 = vst.msk [vmem:[%s3556_s3 + $0x188] sm:$0xf] %vm1646_vm1, %v1575_v40 }
  0xe1   :  { %1658 = vst.msk [vmem:[%s3556_s3 + $0x2c] sm:$0xf] %vm1646_vm1, %v1488_v41  ;;  %v1131_v45 = vpop.f32.mrf.mxu2  ;;  %v1241_v19 = vpop.f32.mrf.mxu3 }
  0xe2   :  { %1702 = vst.msk [vmem:[%s3556_s3 + $0xdc] sm:$0xf] %vm1646_vm1, %v1532_v42  ;;  %v1132_v49 = vadd.f32 %v2485_v32, %v1131_v45  ;;  %v914_v50 = vpop.f32.mrf.mxu0  ;;  %v1024_v51 = vpop.f32.mrf.mxu1  ;;  %v1242_v24 = vadd.f32 %v2485_v32, %v1241_v19 }
  0xe3   :  { %v915_v53 = vadd.f32 %v2485_v32, %v914_v50  ;;  %v1025_v54 = vadd.f32 %v2485_v32, %v1024_v51  ;;  %1789 = vst.msk [vmem:[%s3556_s3 + $0x238] sm:$0xf] %vm1646_vm1, %v1619_v15 }
  0xe4   :  { %v1407_v57 = vmax.f32 %v1132_v49, 0.0  ;;  %v1451_v29 = vmax.f32 %v1242_v24, 0.0 }
  0xe5   :  { %v1320_v58 = vmax.f32 %v915_v53, 0.0  ;;  %v1364_v59 = vmax.f32 %v1025_v54, 0.0  ;;  %2174 = vmatmul.msk.bf16.gmra.mxu0 %vm619_vm0, %v2259_v46  ;;  %2196 = vmatmul.msk.bf16.gmra.mxu1 %vm619_vm0, %v2281_v47  ;;  %v2261_v54 = vld [vmem:[%s3554_s0 + $0x80] sm:$0xff] }
  0xe6   :  { %v1576_v61 = vpack.c.bf16 %v1407_v57, %v1407_v57  ;;  %2218 = vmatmul.msk.bf16.gmra.mxu2 %vm619_vm0, %v2303_v52  ;;  %2240 = vmatmul.msk.bf16.gmra.mxu3 %vm619_vm0, %v2325_v27  ;;  %v1620_v36 = vpack.c.bf16 %v1451_v29, %v1451_v29  ;;  %v2284_v27 = vld [vmem:[%s3554_s0 + $0x138] sm:$0xff] }
  0xe7   :  { %v1489_v62 = vpack.c.bf16 %v1320_v58, %v1320_v58  ;;  %v1533_v63 = vpack.c.bf16 %v1364_v59, %v1364_v59 }
  0xe8   :  { %1746 = vst.msk [vmem:[%s3556_s3 + $0x18c] sm:$0xf] %vm1646_vm1, %v1576_v61 }
  0xe9   :  { %1659 = vst.msk [vmem:[%s3556_s3 + $0x30] sm:$0xf] %vm1646_vm1, %v1489_v62  ;;  %v1134_v0 = vpop.f32.mrf.mxu2  ;;  %v1244_v38 = vpop.f32.mrf.mxu3 }
  0xea   :  { %1703 = vst.msk [vmem:[%s3556_s3 + $0xe0] sm:$0xf] %vm1646_vm1, %v1533_v63  ;;  %v1135_v2 = vadd.f32 %v2485_v32, %v1134_v0  ;;  %v916_v3 = vpop.f32.mrf.mxu0  ;;  %v1026_v4 = vpop.f32.mrf.mxu1  ;;  %v1245_v42 = vadd.f32 %v2485_v32, %v1244_v38  ;;  %v2326_v0 = vld [vmem:[%s3554_s0 + $0x288] sm:$0xff] }
  0xeb   :  { %v917_v6 = vadd.f32 %v2485_v32, %v916_v3  ;;  %v1027_v7 = vadd.f32 %v2485_v32, %v1026_v4  ;;  %1790 = vst.msk [vmem:[%s3556_s3 + $0x23c] sm:$0xf] %vm1646_vm1, %v1620_v36 }
  0xec   :  { %v1408_v8 = vmax.f32 %v1135_v2, 0.0  ;;  %v1452_v46 = vmax.f32 %v1245_v42, 0.0 }
  0xed   :  { %v1321_v10 = vmax.f32 %v917_v6, 0.0  ;;  %v1365_v11 = vmax.f32 %v1027_v7, 0.0 }
  0xee   :  { %v1577_v12 = vpack.c.bf16 %v1408_v8, %v1408_v8  ;;  %v1621_v52 = vpack.c.bf16 %v1452_v46, %v1452_v46 }
  0xef   :  { %v1490_v13 = vpack.c.bf16 %v1321_v10, %v1321_v10  ;;  %v1534_v14 = vpack.c.bf16 %v1365_v11, %v1365_v11 }
  0xf0   :  { %1747 = vst.msk [vmem:[%s3556_s3 + $0x190] sm:$0xf] %vm1646_vm1, %v1577_v12 }
  0xf1   :  { %1660 = vst.msk [vmem:[%s3556_s3 + $0x34] sm:$0xf] %vm1646_vm1, %v1490_v13  ;;  %v1136_v16 = vpop.f32.mrf.mxu2  ;;  %v1246_v56 = vpop.f32.mrf.mxu3 }
  0xf2   :  { %1704 = vst.msk [vmem:[%s3556_s3 + $0xe4] sm:$0xf] %vm1646_vm1, %v1534_v14  ;;  %v1137_v20 = vadd.f32 %v2485_v32, %v1136_v16  ;;  %v919_v21 = vpop.f32.mrf.mxu0  ;;  %v1029_v22 = vpop.f32.mrf.mxu1  ;;  %v1247_v61 = vadd.f32 %v2485_v32, %v1246_v56 }
  0xf3   :  { %v920_v25 = vadd.f32 %v2485_v32, %v919_v21  ;;  %v1030_v26 = vadd.f32 %v2485_v32, %v1029_v22  ;;  %1791 = vst.msk [vmem:[%s3556_s3 + $0x240] sm:$0xf] %vm1646_vm1, %v1621_v52 }
  0xf4   :  { %v1409_v28 = vmax.f32 %v1137_v20, 0.0  ;;  %v1453_v2 = vmax.f32 %v1247_v61, 0.0 }
  0xf5   :  { %v1322_v30 = vmax.f32 %v920_v25, 0.0  ;;  %v1366_v31 = vmax.f32 %v1030_v26, 0.0  ;;  %2175 = vmatmul.msk.bf16.gmra.mxu0 %vm619_vm0, %v2260_v17  ;;  %2197 = vmatmul.msk.bf16.gmra.mxu1 %vm619_vm0, %v2282_v18  ;;  %v2262_v26 = vld [vmem:[%s3554_s0 + $0x88] sm:$0xff] }
  0xf6   :  { %v1578_v33 = vpack.c.bf16 %v1409_v28, %v1409_v28  ;;  %2219 = vmatmul.msk.bf16.gmra.mxu2 %vm619_vm0, %v2304_v23  ;;  %2241 = vmatmul.msk.bf16.gmra.mxu3 %vm619_vm0, %v2326_v0  ;;  %v1622_v8 = vpack.c.bf16 %v1453_v2, %v1453_v2  ;;  %v2285_v0 = vld [vmem:[%s3554_s0 + $0x140] sm:$0xff] }
  0xf7   :  { %v1491_v34 = vpack.c.bf16 %v1322_v30, %v1322_v30  ;;  %v1535_v35 = vpack.c.bf16 %v1366_v31, %v1366_v31 }
  0xf8   :  { %1748 = vst.msk [vmem:[%s3556_s3 + $0x194] sm:$0xf] %vm1646_vm1, %v1578_v33  ;;  %v2306_v33 = vld [vmem:[%s3554_s0 + $0x1e8] sm:$0xff] }
  0xf9   :  { %1661 = vst.msk [vmem:[%s3556_s3 + $0x38] sm:$0xf] %vm1646_vm1, %v1491_v34  ;;  %v1139_v37 = vpop.f32.mrf.mxu2  ;;  %v1249_v10 = vpop.f32.mrf.mxu3 }
  0xfa   :  { %1705 = vst.msk [vmem:[%s3556_s3 + $0xe8] sm:$0xf] %vm1646_vm1, %v1535_v35  ;;  %v1140_v39 = vadd.f32 %v2485_v32, %v1139_v37  ;;  %v921_v40 = vpop.f32.mrf.mxu0  ;;  %v1031_v41 = vpop.f32.mrf.mxu1  ;;  %v1250_v14 = vadd.f32 %v2485_v32, %v1249_v10  ;;  %v2327_v37 = vld [vmem:[%s3554_s0 + $0x290] sm:$0xff] }
  0xfb   :  { %v922_v43 = vadd.f32 %v2485_v32, %v921_v40  ;;  %v1032_v44 = vadd.f32 %v2485_v32, %v1031_v41  ;;  %1792 = vst.msk [vmem:[%s3556_s3 + $0x244] sm:$0xf] %vm1646_vm1, %v1622_v8 }
  0xfc   :  { %v1410_v45 = vmax.f32 %v1140_v39, 0.0  ;;  %v1454_v18 = vmax.f32 %v1250_v14, 0.0 }
  0xfd   :  { %v1323_v47 = vmax.f32 %v922_v43, 0.0  ;;  %v1367_v48 = vmax.f32 %v1032_v44, 0.0 }
  0xfe   :  { %v1579_v49 = vpack.c.bf16 %v1410_v45, %v1410_v45  ;;  %v1623_v24 = vpack.c.bf16 %v1454_v18, %v1454_v18 }
  0xff   :  { %v1492_v50 = vpack.c.bf16 %v1323_v47, %v1323_v47  ;;  %v1536_v51 = vpack.c.bf16 %v1367_v48, %v1367_v48 }
 0x100   :  { %1749 = vst.msk [vmem:[%s3556_s3 + $0x198] sm:$0xf] %vm1646_vm1, %v1579_v49 }
 0x101   :  { %1662 = vst.msk [vmem:[%s3556_s3 + $0x3c] sm:$0xf] %vm1646_vm1, %v1492_v50  ;;  %v1141_v53 = vpop.f32.mrf.mxu2  ;;  %v1251_v28 = vpop.f32.mrf.mxu3 }
 0x102   :  { %1706 = vst.msk [vmem:[%s3556_s3 + $0xec] sm:$0xf] %vm1646_vm1, %v1536_v51  ;;  %v1142_v57 = vadd.f32 %v2485_v32, %v1141_v53  ;;  %v924_v58 = vpop.f32.mrf.mxu0  ;;  %v1034_v59 = vpop.f32.mrf.mxu1  ;;  %v1252_v34 = vadd.f32 %v2485_v32, %v1251_v28 }
 0x103   :  { %v925_v62 = vadd.f32 %v2485_v32, %v924_v58  ;;  %v1035_v63 = vadd.f32 %v2485_v32, %v1034_v59  ;;  %1793 = vst.msk [vmem:[%s3556_s3 + $0x248] sm:$0xf] %vm1646_vm1, %v1623_v24 }
 0x104   :  { %v1411_v1 = vmax.f32 %v1142_v57, 0.0  ;;  %v1455_v39 = vmax.f32 %v1252_v34, 0.0 }
 0x105   :  { %v1324_v3 = vmax.f32 %v925_v62, 0.0  ;;  %v1368_v4 = vmax.f32 %v1035_v63, 0.0  ;;  %2176 = vmatmul.msk.bf16.gmra.mxu0 %vm619_vm0, %v2261_v54  ;;  %2198 = vmatmul.msk.bf16.gmra.mxu1 %vm619_vm0, %v2283_v55  ;;  %v2263_v63 = vld [vmem:[%s3554_s0 + $0x90] sm:$0xff] }
 0x106   :  { %v1580_v5 = vpack.c.bf16 %v1411_v1, %v1411_v1  ;;  %2220 = vmatmul.msk.bf16.gmra.mxu2 %vm619_vm0, %v2305_v60  ;;  %2242 = vmatmul.msk.bf16.gmra.mxu3 %vm619_vm0, %v2327_v37  ;;  %v1624_v45 = vpack.c.bf16 %v1455_v39, %v1455_v39  ;;  %v2286_v37 = vld [vmem:[%s3554_s0 + $0x148] sm:$0xff] }
 0x107   :  { %v1493_v6 = vpack.c.bf16 %v1324_v3, %v1324_v3  ;;  %v1537_v7 = vpack.c.bf16 %v1368_v4, %v1368_v4 }
 0x108   :  { %1750 = vst.msk [vmem:[%s3556_s3 + $0x19c] sm:$0xf] %vm1646_vm1, %v1580_v5  ;;  %v2307_v5 = vld [vmem:[%s3554_s0 + $0x1f0] sm:$0xff] }
 0x109   :  { %1663 = vst.msk [vmem:[%s3556_s3 + $0x40] sm:$0xf] %vm1646_vm1, %v1493_v6  ;;  %v1144_v9 = vpop.f32.mrf.mxu2  ;;  %v1254_v47 = vpop.f32.mrf.mxu3 }
 0x10a   :  { %1707 = vst.msk [vmem:[%s3556_s3 + $0xf0] sm:$0xf] %vm1646_vm1, %v1537_v7  ;;  %v1145_v11 = vadd.f32 %v2485_v32, %v1144_v9  ;;  %v926_v12 = vpop.f32.mrf.mxu0  ;;  %v1036_v13 = vpop.f32.mrf.mxu1  ;;  %v1255_v51 = vadd.f32 %v2485_v32, %v1254_v47  ;;  %v2328_v9 = vld [vmem:[%s3554_s0 + $0x298] sm:$0xff] }
 0x10b   :  { %v927_v15 = vadd.f32 %v2485_v32, %v926_v12  ;;  %v1037_v16 = vadd.f32 %v2485_v32, %v1036_v13  ;;  %1794 = vst.msk [vmem:[%s3556_s3 + $0x24c] sm:$0xf] %vm1646_vm1, %v1624_v45 }
 0x10c   :  { %v1412_v17 = vmax.f32 %v1145_v11, 0.0  ;;  %v1456_v55 = vmax.f32 %v1255_v51, 0.0 }
 0x10d   :  { %v1325_v19 = vmax.f32 %v927_v15, 0.0  ;;  %v1369_v20 = vmax.f32 %v1037_v16, 0.0 }
 0x10e   :  { %v1581_v21 = vpack.c.bf16 %v1412_v17, %v1412_v17  ;;  %v1625_v61 = vpack.c.bf16 %v1456_v55, %v1456_v55 }
 0x10f   :  { %v1494_v22 = vpack.c.bf16 %v1325_v19, %v1325_v19  ;;  %v1538_v23 = vpack.c.bf16 %v1369_v20, %v1369_v20 }
 0x110   :  { %1751 = vst.msk [vmem:[%s3556_s3 + $0x1a0] sm:$0xf] %vm1646_vm1, %v1581_v21 }
 0x111   :  { %1664 = vst.msk [vmem:[%s3556_s3 + $0x44] sm:$0xf] %vm1646_vm1, %v1494_v22  ;;  %v1146_v25 = vpop.f32.mrf.mxu2  ;;  %v1256_v1 = vpop.f32.mrf.mxu3 }
 0x112   :  { %1708 = vst.msk [vmem:[%s3556_s3 + $0xf4] sm:$0xf] %vm1646_vm1, %v1538_v23  ;;  %v1147_v29 = vadd.f32 %v2485_v32, %v1146_v25  ;;  %v929_v30 = vpop.f32.mrf.mxu0  ;;  %v1039_v31 = vpop.f32.mrf.mxu1  ;;  %v1257_v6 = vadd.f32 %v2485_v32, %v1256_v1 }
 0x113   :  { %v930_v35 = vadd.f32 %v2485_v32, %v929_v30  ;;  %v1040_v36 = vadd.f32 %v2485_v32, %v1039_v31  ;;  %1795 = vst.msk [vmem:[%s3556_s3 + $0x250] sm:$0xf] %vm1646_vm1, %v1625_v61 }
 0x114   :  { %v1413_v38 = vmax.f32 %v1147_v29, 0.0  ;;  %v1457_v11 = vmax.f32 %v1257_v6, 0.0 }
 0x115   :  { %v1326_v40 = vmax.f32 %v930_v35, 0.0  ;;  %v1370_v41 = vmax.f32 %v1040_v36, 0.0  ;;  %2177 = vmatmul.msk.bf16.gmra.mxu0 %vm619_vm0, %v2262_v26  ;;  %2199 = vmatmul.msk.bf16.gmra.mxu1 %vm619_vm0, %v2284_v27  ;;  %v2264_v36 = vld [vmem:[%s3554_s0 + $0x98] sm:$0xff] }
 0x116   :  { %v1582_v42 = vpack.c.bf16 %v1413_v38, %v1413_v38  ;;  %2221 = vmatmul.msk.bf16.gmra.mxu2 %vm619_vm0, %v2306_v33  ;;  %2243 = vmatmul.msk.bf16.gmra.mxu3 %vm619_vm0, %v2328_v9  ;;  %v1626_v17 = vpack.c.bf16 %v1457_v11, %v1457_v11  ;;  %v2287_v11 = vld [vmem:[%s3554_s0 + $0x150] sm:$0xff] }
 0x117   :  { %v1495_v43 = vpack.c.bf16 %v1326_v40, %v1326_v40  ;;  %v1539_v44 = vpack.c.bf16 %v1370_v41, %v1370_v41  ;;  %v3091_v40 = vld [vmem:[%s3555_s2] ss:$0 sm:$0xff] }
 0x118   :  { %1752 = vst.msk [vmem:[%s3556_s3 + $0x1a4] sm:$0xf] %vm1646_vm1, %v1582_v42 }
 0x119   :  { %1665 = vst.msk [vmem:[%s3556_s3 + $0x48] sm:$0xf] %vm1646_vm1, %v1495_v43  ;;  %v1149_v46 = vpop.f32.mrf.mxu2  ;;  %v1259_v19 = vpop.f32.mrf.mxu3 }
 0x11a   :  { %1709 = vst.msk [vmem:[%s3556_s3 + $0xf8] sm:$0xf] %vm1646_vm1, %v1539_v44  ;;  %v1150_v48 = vadd.f32 %v2485_v32, %v1149_v46  ;;  %v931_v49 = vpop.f32.mrf.mxu0  ;;  %v1041_v50 = vpop.f32.mrf.mxu1  ;;  %v1260_v23 = vadd.f32 %v2485_v32, %v1259_v19  ;;  %v2308_v44 = vld [vmem:[%s3554_s0 + $0x1f8] sm:$0xff] }
 0x11b   :  { %v932_v52 = vadd.f32 %v2485_v32, %v931_v49  ;;  %v1042_v53 = vadd.f32 %v2485_v32, %v1041_v50  ;;  %1796 = vst.msk [vmem:[%s3556_s3 + $0x254] sm:$0xf] %vm1646_vm1, %v1626_v17 }
 0x11c   :  { %v1414_v54 = vmax.f32 %v1150_v48, 0.0  ;;  %v1458_v27 = vmax.f32 %v1260_v23, 0.0 }
 0x11d   :  { %v1327_v56 = vmax.f32 %v932_v52, 0.0  ;;  %v1371_v57 = vmax.f32 %v1042_v53, 0.0 }
 0x11e   :  { %v1583_v58 = vpack.c.bf16 %v1414_v54, %v1414_v54  ;;  %v1627_v34 = vpack.c.bf16 %v1458_v27, %v1458_v27 }
 0x11f   :  { %v1496_v59 = vpack.c.bf16 %v1327_v56, %v1327_v56  ;;  %v1540_v60 = vpack.c.bf16 %v1371_v57, %v1371_v57 }
 0x120   :  { %1753 = vst.msk [vmem:[%s3556_s3 + $0x1a8] sm:$0xf] %vm1646_vm1, %v1583_v58 }
 0x121   :  { %1666 = vst.msk [vmem:[%s3556_s3 + $0x4c] sm:$0xf] %vm1646_vm1, %v1496_v59  ;;  %v1151_v62 = vpop.f32.mrf.mxu2  ;;  %v1261_v38 = vpop.f32.mrf.mxu3 }
 0x122   :  { %1710 = vst.msk [vmem:[%s3556_s3 + $0xfc] sm:$0xf] %vm1646_vm1, %v1540_v60  ;;  %v1152_v2 = vadd.f32 %v2485_v32, %v1151_v62  ;;  %v934_v3 = vpop.f32.mrf.mxu0  ;;  %v1044_v4 = vpop.f32.mrf.mxu1  ;;  %v1262_v45 = vadd.f32 %v3091_v40, %v1261_v38 }
 0x123   :  { %v935_v7 = vadd.f32 %v2485_v32, %v934_v3  ;;  %v1045_v8 = vadd.f32 %v2485_v32, %v1044_v4  ;;  %1797 = vst.msk [vmem:[%s3556_s3 + $0x258] sm:$0xf] %vm1646_vm1, %v1627_v34 }
 0x124   :  { %v1415_v10 = vmax.f32 %v1152_v2, 0.0  ;;  %v1459_v50 = vmax.f32 %v1262_v45, 0.0 }
 0x125   :  { %v1328_v12 = vmax.f32 %v935_v7, 0.0  ;;  %v1372_v13 = vmax.f32 %v1045_v8, 0.0  ;;  %2178 = vmatmul.msk.bf16.gmra.mxu0 %vm619_vm0, %v2263_v63  ;;  %2200 = vmatmul.msk.bf16.gmra.mxu1 %vm619_vm0, %v2285_v0 }
 0x126   :  { %v1584_v14 = vpack.c.bf16 %v1415_v10, %v1415_v10  ;;  %2222 = vmatmul.msk.bf16.gmra.mxu2 %vm619_vm0, %v2307_v5  ;;  %v1628_v56 = vpack.c.bf16 %v1459_v50, %v1459_v50  ;;  %v2265_v10 = vld [vmem:[%s3554_s0 + $0xa0] sm:$0xff] }
 0x127   :  { %v1497_v15 = vpack.c.bf16 %v1328_v12, %v1328_v12  ;;  %v1541_v16 = vpack.c.bf16 %v1372_v13, %v1372_v13 }
 0x128   :  { %1754 = vst.msk [vmem:[%s3556_s3 + $0x1ac] sm:$0xf] %vm1646_vm1, %v1584_v14 }
 0x129   :  { %1667 = vst.msk [vmem:[%s3556_s3 + $0x50] sm:$0xf] %vm1646_vm1, %v1497_v15  ;;  %v1154_v18 = vpop.f32.mrf.mxu2  ;;  %v1264_v58 = vpop.f32.mrf.mxu3 }
 0x12a   :  { %1711 = vst.msk [vmem:[%s3556_s3 + $0x100] sm:$0xf] %vm1646_vm1, %v1541_v16  ;;  %v1155_v20 = vadd.f32 %v2485_v32, %v1154_v18  ;;  %v936_v21 = vpop.f32.mrf.mxu0  ;;  %v1046_v22 = vpop.f32.mrf.mxu1  ;;  %v1265_v62 = vadd.f32 %v3091_v40, %v1264_v58  ;;  %v2309_v16 = vld [vmem:[%s3554_s0 + $0x200] sm:$0xff] }
 0x12b   :  { %v937_v24 = vadd.f32 %v2485_v32, %v936_v21  ;;  %v1047_v25 = vadd.f32 %v2485_v32, %v1046_v22  ;;  %v183_v32 = vld [vmem:[%s3554_s0 + $0x2a0] sm:$0xf]  ;;  %1798 = vst.msk [vmem:[%s3556_s3 + $0x25c] sm:$0xf] %vm1646_vm1, %v1628_v56 }
 0x12c   :  { %v1416_v26 = vmax.f32 %v1155_v20, 0.0  ;;  %v527_v39 = vunpack.c.l.b16 %v183_v32  ;;  %v1460_v2 = vmax.f32 %v1265_v62, 0.0 }
 0x12d   :  { %v1329_v28 = vmax.f32 %v937_v24, 0.0  ;;  %v1373_v29 = vmax.f32 %v1047_v25, 0.0 }
 0x12e   :  { %v1585_v30 = vpack.c.bf16 %v1416_v26, %v1416_v26  ;;  %v612_v48 = vpack.c.b16 %v527_v39, %v527_v39  ;;  %v1629_v8 = vpack.c.bf16 %v1460_v2, %v1460_v2 }
 0x12f   :  { %v1498_v31 = vpack.c.bf16 %v1329_v28, %v1329_v28  ;;  %v1542_v33 = vpack.c.bf16 %v1373_v29, %v1373_v29 }
 0x130   :  { %1755 = vst.msk [vmem:[%s3556_s3 + $0x1b0] sm:$0xf] %vm1646_vm1, %v1585_v30  ;;  %2244 = vmatmul.msk.bf16.gmra.mxu3 %vm619_vm0, %v612_v48 }
 0x131   :  { %1668 = vst.msk [vmem:[%s3556_s3 + $0x54] sm:$0xf] %vm1646_vm1, %v1498_v31  ;;  %v1156_v35 = vpop.f32.mrf.mxu2  ;;  %v1266_v12 = vpop.f32.mrf.mxu3 }
 0x132   :  { %1712 = vst.msk [vmem:[%s3556_s3 + $0x104] sm:$0xf] %vm1646_vm1, %v1542_v33  ;;  %v1157_v41 = vadd.f32 %v3091_v40, %v1156_v35  ;;  %v939_v42 = vpop.f32.mrf.mxu0  ;;  %v1049_v43 = vpop.f32.mrf.mxu1  ;;  %v1267_v17 = vadd.f32 %v3091_v40, %v1266_v12 }
 0x133   :  { %v940_v46 = vadd.f32 %v3091_v40, %v939_v42  ;;  %v1050_v47 = vadd.f32 %v3091_v40, %v1049_v43  ;;  %1799 = vst.msk [vmem:[%s3556_s3 + $0x260] sm:$0xf] %vm1646_vm1, %v1629_v8 }
 0x134   :  { %v1417_v49 = vmax.f32 %v1157_v41, 0.0  ;;  %v1461_v21 = vmax.f32 %v1267_v17, 0.0 }
 0x135   :  { %v1330_v51 = vmax.f32 %v940_v46, 0.0  ;;  %v1374_v52 = vmax.f32 %v1050_v47, 0.0  ;;  %2179 = vmatmul.msk.bf16.gmra.mxu0 %vm619_vm0, %v2264_v36  ;;  %2201 = vmatmul.msk.bf16.gmra.mxu1 %vm619_vm0, %v2286_v37  ;;  %v2266_v46 = vld [vmem:[%s3554_s0 + $0xa8] sm:$0xff]  ;;  %v2288_v47 = vld [vmem:[%s3554_s0 + $0x158] sm:$0xff] }
 0x136   :  { %v1586_v53 = vpack.c.bf16 %v1417_v49, %v1417_v49  ;;  %2223 = vmatmul.msk.bf16.gmra.mxu2 %vm619_vm0, %v2308_v44  ;;  %v1630_v27 = vpack.c.bf16 %v1461_v21, %v1461_v21 }
 0x137   :  { %v1499_v54 = vpack.c.bf16 %v1330_v51, %v1330_v51  ;;  %v1543_v55 = vpack.c.bf16 %v1374_v52, %v1374_v52  ;;  %v2310_v52 = vld [vmem:[%s3554_s0 + $0x208] sm:$0xff] }
 0x138   :  { %1756 = vst.msk [vmem:[%s3556_s3 + $0x1b4] sm:$0xf] %vm1646_vm1, %v1586_v53 }
 0x139   :  { %1669 = vst.msk [vmem:[%s3556_s3 + $0x58] sm:$0xf] %vm1646_vm1, %v1499_v54  ;;  %v1159_v57 = vpop.f32.mrf.mxu2  ;;  %v1269_v29 = vpop.f32.mrf.mxu3 }
 0x13a   :  { %1713 = vst.msk [vmem:[%s3556_s3 + $0x108] sm:$0xf] %vm1646_vm1, %v1543_v55  ;;  %v1160_v59 = vadd.f32 %v3091_v40, %v1159_v57  ;;  %v941_v60 = vpop.f32.mrf.mxu0  ;;  %v1051_v61 = vpop.f32.mrf.mxu1  ;;  %v1270_v34 = vadd.f32 %v3091_v40, %v1269_v29 }
 0x13b   :  { %v942_v63 = vadd.f32 %v3091_v40, %v941_v60  ;;  %v1052_v0 = vadd.f32 %v3091_v40, %v1051_v61  ;;  %1800 = vst.msk [vmem:[%s3556_s3 + $0x264] sm:$0xf] %vm1646_vm1, %v1630_v27 }
 0x13c   :  { %v1418_v1 = vmax.f32 %v1160_v59, 0.0  ;;  %v1462_v37 = vmax.f32 %v1270_v34, 0.0 }
 0x13d   :  { %v1331_v3 = vmax.f32 %v942_v63, 0.0  ;;  %v1375_v4 = vmax.f32 %v1052_v0, 0.0 }
 0x13e   :  { %v1587_v5 = vpack.c.bf16 %v1418_v1, %v1418_v1  ;;  %v1631_v44 = vpack.c.bf16 %v1462_v37, %v1462_v37 }
 0x13f   :  { %v1500_v6 = vpack.c.bf16 %v1331_v3, %v1331_v3  ;;  %v1544_v7 = vpack.c.bf16 %v1375_v4, %v1375_v4 }
 0x140   :  { %1757 = vst.msk [vmem:[%s3556_s3 + $0x1b8] sm:$0xf] %vm1646_vm1, %v1587_v5 }
 0x141   :  { %1670 = vst.msk [vmem:[%s3556_s3 + $0x5c] sm:$0xf] %vm1646_vm1, %v1500_v6  ;;  %v1161_v9 = vpop.f32.mrf.mxu2  ;;  %v1271_v48 = vpop.f32.mrf.mxu3 }
 0x142   :  { %1714 = vst.msk [vmem:[%s3556_s3 + $0x10c] sm:$0xf] %vm1646_vm1, %v1544_v7  ;;  %v1162_v13 = vadd.f32 %v3091_v40, %v1161_v9  ;;  %v944_v14 = vpop.f32.mrf.mxu0  ;;  %v1054_v15 = vpop.f32.mrf.mxu1  ;;  %v1272_v53 = vadd.f32 %v3091_v40, %v1271_v48 }
 0x143   :  { %v945_v18 = vadd.f32 %v3091_v40, %v944_v14  ;;  %v1055_v19 = vadd.f32 %v3091_v40, %v1054_v15  ;;  %1801 = vst.msk [vmem:[%s3556_s3 + $0x268] sm:$0xf] %vm1646_vm1, %v1631_v44 }
 0x144   :  { %v1419_v20 = vmax.f32 %v1162_v13, 0.0  ;;  %v1463_v57 = vmax.f32 %v1272_v53, 0.0 }
 0x145   :  { %v1332_v22 = vmax.f32 %v945_v18, 0.0  ;;  %v1376_v23 = vmax.f32 %v1055_v19, 0.0  ;;  %2180 = vmatmul.msk.bf16.gmra.mxu0 %vm619_vm0, %v2265_v10  ;;  %2202 = vmatmul.msk.bf16.gmra.mxu1 %vm619_vm0, %v2287_v11 }
 0x146   :  { %v1588_v24 = vpack.c.bf16 %v1419_v20, %v1419_v20  ;;  %2224 = vmatmul.msk.bf16.gmra.mxu2 %vm619_vm0, %v2309_v16  ;;  %v1632_v63 = vpack.c.bf16 %v1463_v57, %v1463_v57 }
 0x147   :  { %v1501_v25 = vpack.c.bf16 %v1332_v22, %v1332_v22  ;;  %v1545_v26 = vpack.c.bf16 %v1376_v23, %v1376_v23 }
 0x148   :  { %1758 = vst.msk [vmem:[%s3556_s3 + $0x1bc] sm:$0xf] %vm1646_vm1, %v1588_v24 }
 0x149   :  { %1671 = vst.msk [vmem:[%s3556_s3 + $0x60] sm:$0xf] %vm1646_vm1, %v1501_v25  ;;  %v1164_v28 = vpop.f32.mrf.mxu2  ;;  %v1274_v1 = vpop.f32.mrf.mxu3 }
 0x14a   :  { %1715 = vst.msk [vmem:[%s3556_s3 + $0x110] sm:$0xf] %vm1646_vm1, %v1545_v26  ;;  %v1165_v30 = vadd.f32 %v3091_v40, %v1164_v28  ;;  %v946_v31 = vpop.f32.mrf.mxu0  ;;  %v1056_v33 = vpop.f32.mrf.mxu1  ;;  %v1275_v5 = vadd.f32 %v3091_v40, %v1274_v1 }
 0x14b   :  { %v947_v32 = vadd.f32 %v3091_v40, %v946_v31  ;;  %v1057_v35 = vadd.f32 %v3091_v40, %v1056_v33  ;;  %1802 = vst.msk [vmem:[%s3556_s3 + $0x26c] sm:$0xf] %vm1646_vm1, %v1632_v63 }
 0x14c   :  { %v1420_v36 = vmax.f32 %v1165_v30, 0.0  ;;  %v1464_v9 = vmax.f32 %v1275_v5, 0.0 }
 0x14d   :  { %v1333_v38 = vmax.f32 %v947_v32, 0.0  ;;  %v1377_v39 = vmax.f32 %v1057_v35, 0.0 }
 0x14e   :  { %v1589_v41 = vpack.c.bf16 %v1420_v36, %v1420_v36  ;;  %v1633_v15 = vpack.c.bf16 %v1464_v9, %v1464_v9 }
 0x14f   :  { %v1502_v42 = vpack.c.bf16 %v1333_v38, %v1333_v38  ;;  %v1546_v43 = vpack.c.bf16 %v1377_v39, %v1377_v39 }
 0x150   :  { %1759 = vst.msk [vmem:[%s3556_s3 + $0x1c0] sm:$0xf] %vm1646_vm1, %v1589_v41 }
 0x151   :  { %1672 = vst.msk [vmem:[%s3556_s3 + $0x64] sm:$0xf] %vm1646_vm1, %v1502_v42  ;;  %v1166_v45 = vpop.f32.mrf.mxu2  ;;  %v1276_v17 = vpop.f32.mrf.mxu3 }
 0x152   :  { %1716 = vst.msk [vmem:[%s3556_s3 + $0x114] sm:$0xf] %vm1646_vm1, %v1546_v43  ;;  %v1167_v49 = vadd.f32 %v3091_v40, %v1166_v45  ;;  %v949_v50 = vpop.f32.mrf.mxu0  ;;  %v1059_v51 = vpop.f32.mrf.mxu1  ;;  %v1277_v21 = vadd.f32 %v3091_v40, %v1276_v17 }
 0x153   :  { %v950_v54 = vadd.f32 %v3091_v40, %v949_v50  ;;  %v1060_v55 = vadd.f32 %v3091_v40, %v1059_v51  ;;  %1803 = vst.msk [vmem:[%s3556_s3 + $0x270] sm:$0xf] %vm1646_vm1, %v1633_v15 }
 0x154   :  { %v1421_v56 = vmax.f32 %v1167_v49, 0.0  ;;  %v1465_v25 = vmax.f32 %v1277_v21, 0.0 }
 0x155   :  { %v1334_v58 = vmax.f32 %v950_v54, 0.0  ;;  %v1378_v59 = vmax.f32 %v1060_v55, 0.0  ;;  %2181 = vmatmul.msk.bf16.gmra.mxu0 %vm619_vm0, %v2266_v46  ;;  %2203 = vmatmul.msk.bf16.gmra.mxu1 %vm619_vm0, %v2288_v47 }
 0x156   :  { %v1590_v60 = vpack.c.bf16 %v1421_v56, %v1421_v56  ;;  %2225 = vmatmul.msk.bf16.gmra.mxu2 %vm619_vm0, %v2310_v52  ;;  %v1634_v31 = vpack.c.bf16 %v1465_v25, %v1465_v25 }
 0x157   :  { %v1503_v61 = vpack.c.bf16 %v1334_v58, %v1334_v58  ;;  %v1547_v62 = vpack.c.bf16 %v1378_v59, %v1378_v59 }
 0x158   :  { %1760 = vst.msk [vmem:[%s3556_s3 + $0x1c4] sm:$0xf] %vm1646_vm1, %v1590_v60 }
 0x159   :  { %1673 = vst.msk [vmem:[%s3556_s3 + $0x68] sm:$0xf] %vm1646_vm1, %v1503_v61  ;;  %v1169_v0 = vpop.f32.mrf.mxu2  ;;  %v1279_v34 = vpop.f32.mrf.mxu3 }
 0x15a   :  { %1717 = vst.msk [vmem:[%s3556_s3 + $0x118] sm:$0xf] %vm1646_vm1, %v1547_v62  ;;  %v1170_v2 = vadd.f32 %v3091_v40, %v1169_v0  ;;  %v951_v3 = vpop.f32.mrf.mxu0  ;;  %v1061_v4 = vpop.f32.mrf.mxu1  ;;  %v1280_v37 = vadd.f32 %v3091_v40, %v1279_v34 }
 0x15b   :  { %v952_v6 = vadd.f32 %v3091_v40, %v951_v3  ;;  %v1062_v7 = vadd.f32 %v3091_v40, %v1061_v4  ;;  %1804 = vst.msk [vmem:[%s3556_s3 + $0x274] sm:$0xf] %vm1646_vm1, %v1634_v31 }
 0x15c   :  { %v1422_v8 = vmax.f32 %v1170_v2, 0.0  ;;  %v1466_v42 = vmax.f32 %v1280_v37, 0.0 }
 0x15d   :  { %v1335_v10 = vmax.f32 %v952_v6, 0.0  ;;  %v1379_v11 = vmax.f32 %v1062_v7, 0.0 }
 0x15e   :  { %v1591_v12 = vpack.c.bf16 %v1422_v8, %v1422_v8  ;;  %v1635_v48 = vpack.c.bf16 %v1466_v42, %v1466_v42 }
 0x15f   :  { %v1504_v13 = vpack.c.bf16 %v1335_v10, %v1335_v10  ;;  %v1548_v14 = vpack.c.bf16 %v1379_v11, %v1379_v11 }
 0x160   :  { %1761 = vst.msk [vmem:[%s3556_s3 + $0x1c8] sm:$0xf] %vm1646_vm1, %v1591_v12 }
 0x161   :  { %1674 = vst.msk [vmem:[%s3556_s3 + $0x6c] sm:$0xf] %vm1646_vm1, %v1504_v13  ;;  %v1171_v16 = vpop.f32.mrf.mxu2  ;;  %v1281_v50 = vpop.f32.mrf.mxu3 }
 0x162   :  { %1718 = vst.msk [vmem:[%s3556_s3 + $0x11c] sm:$0xf] %vm1646_vm1, %v1548_v14  ;;  %v1172_v18 = vadd.f32 %v3091_v40, %v1171_v16  ;;  %v954_v19 = vpop.f32.mrf.mxu0  ;;  %v1064_v20 = vpop.f32.mrf.mxu1  ;;  %v1282_v54 = vadd.f32 %v3091_v40, %v1281_v50 }
 0x163   :  { %v955_v22 = vadd.f32 %v3091_v40, %v954_v19  ;;  %v1065_v23 = vadd.f32 %v3091_v40, %v1064_v20  ;;  %1805 = vst.msk [vmem:[%s3556_s3 + $0x278] sm:$0xf] %vm1646_vm1, %v1635_v48 }
 0x164   :  { %v1423_v24 = vmax.f32 %v1172_v18, 0.0  ;;  %v1467_v58 = vmax.f32 %v1282_v54, 0.0 }
 0x165   :  { %v1336_v26 = vmax.f32 %v955_v22, 0.0  ;;  %v1380_v27 = vmax.f32 %v1065_v23, 0.0 }
 0x166   :  { %v1592_v28 = vpack.c.bf16 %v1423_v24, %v1423_v24  ;;  %v1636_v0 = vpack.c.bf16 %v1467_v58, %v1467_v58 }
 0x167   :  { %v1505_v29 = vpack.c.bf16 %v1336_v26, %v1336_v26  ;;  %v1549_v30 = vpack.c.bf16 %v1380_v27, %v1380_v27 }
 0x168   :  { %1762 = vst.msk [vmem:[%s3556_s3 + $0x1cc] sm:$0xf] %vm1646_vm1, %v1592_v28 }
 0x169   :  { %1675 = vst.msk [vmem:[%s3556_s3 + $0x70] sm:$0xf] %vm1646_vm1, %v1505_v29  ;;  %v1174_v33 = vpop.f32.mrf.mxu2  ;;  %v1284_v2 = vpop.f32.mrf.mxu3 }
 0x16a   :  { %1719 = vst.msk [vmem:[%s3556_s3 + $0x120] sm:$0xf] %vm1646_vm1, %v1549_v30  ;;  %v1175_v32 = vadd.f32 %v3091_v40, %v1174_v33  ;;  %v956_v35 = vpop.f32.mrf.mxu0  ;;  %v1066_v36 = vpop.f32.mrf.mxu1  ;;  %v1285_v6 = vadd.f32 %v3091_v40, %v1284_v2 }
 0x16b   :  { %v957_v38 = vadd.f32 %v3091_v40, %v956_v35  ;;  %v1067_v39 = vadd.f32 %v3091_v40, %v1066_v36  ;;  %1806 = vst.msk [vmem:[%s3556_s3 + $0x27c] sm:$0xf] %vm1646_vm1, %v1636_v0 }
 0x16c   :  { %v1424_v41 = vmax.f32 %v1175_v32, 0.0  ;;  %v1468_v10 = vmax.f32 %v1285_v6, 0.0 }
 0x16d   :  { %v1337_v43 = vmax.f32 %v957_v38, 0.0  ;;  %v1381_v44 = vmax.f32 %v1067_v39, 0.0 }
 0x16e   :  { %v1593_v45 = vpack.c.bf16 %v1424_v41, %v1424_v41  ;;  %v1637_v16 = vpack.c.bf16 %v1468_v10, %v1468_v10 }
 0x16f   :  { %v1506_v46 = vpack.c.bf16 %v1337_v43, %v1337_v43  ;;  %v1550_v47 = vpack.c.bf16 %v1381_v44, %v1381_v44 }
 0x170   :  { %1763 = vst.msk [vmem:[%s3556_s3 + $0x1d0] sm:$0xf] %vm1646_vm1, %v1593_v45 }
 0x171   :  { %1676 = vst.msk [vmem:[%s3556_s3 + $0x74] sm:$0xf] %vm1646_vm1, %v1506_v46  ;;  %v1176_v49 = vpop.f32.mrf.mxu2  ;;  %v1286_v18 = vpop.f32.mrf.mxu3 }
 0x172   :  { %1720 = vst.msk [vmem:[%s3556_s3 + $0x124] sm:$0xf] %vm1646_vm1, %v1550_v47  ;;  %v1177_v51 = vadd.f32 %v3091_v40, %v1176_v49  ;;  %v959_v52 = vpop.f32.mrf.mxu0  ;;  %v1069_v53 = vpop.f32.mrf.mxu1  ;;  %v1287_v22 = vadd.f32 %v3091_v40, %v1286_v18 }
 0x173   :  { %v960_v55 = vadd.f32 %v3091_v40, %v959_v52  ;;  %v1070_v56 = vadd.f32 %v3091_v40, %v1069_v53  ;;  %1807 = vst.msk [vmem:[%s3556_s3 + $0x280] sm:$0xf] %vm1646_vm1, %v1637_v16 }
 0x174   :  { %v1425_v57 = vmax.f32 %v1177_v51, 0.0  ;;  %v1469_v26 = vmax.f32 %v1287_v22, 0.0 }
 0x175   :  { %v1338_v59 = vmax.f32 %v960_v55, 0.0  ;;  %v1382_v60 = vmax.f32 %v1070_v56, 0.0 }
 0x176   :  { %v1594_v61 = vpack.c.bf16 %v1425_v57, %v1425_v57  ;;  %v1638_v33 = vpack.c.bf16 %v1469_v26, %v1469_v26 }
 0x177   :  { %v1507_v62 = vpack.c.bf16 %v1338_v59, %v1338_v59  ;;  %v1551_v63 = vpack.c.bf16 %v1382_v60, %v1382_v60 }
 0x178   :  { %1764 = vst.msk [vmem:[%s3556_s3 + $0x1d4] sm:$0xf] %vm1646_vm1, %v1594_v61 }
 0x179   :  { %1677 = vst.msk [vmem:[%s3556_s3 + $0x78] sm:$0xf] %vm1646_vm1, %v1507_v62  ;;  %v1179_v1 = vpop.f32.mrf.mxu2  ;;  %v1289_v32 = vpop.f32.mrf.mxu3 }
 0x17a   :  { %1721 = vst.msk [vmem:[%s3556_s3 + $0x128] sm:$0xf] %vm1646_vm1, %v1551_v63  ;;  %v1180_v3 = vadd.f32 %v3091_v40, %v1179_v1  ;;  %v961_v4 = vpop.f32.mrf.mxu0  ;;  %v1071_v5 = vpop.f32.mrf.mxu1  ;;  %v1290_v38 = vadd.f32 %v3091_v40, %v1289_v32 }
 0x17b   :  { %v962_v7 = vadd.f32 %v3091_v40, %v961_v4  ;;  %v1072_v8 = vadd.f32 %v3091_v40, %v1071_v5  ;;  %1808 = vst.msk [vmem:[%s3556_s3 + $0x284] sm:$0xf] %vm1646_vm1, %v1638_v33 }
 0x17c   :  { %v1426_v9 = vmax.f32 %v1180_v3, 0.0  ;;  %v1470_v43 = vmax.f32 %v1290_v38, 0.0 }
 0x17d   :  { %v1339_v11 = vmax.f32 %v962_v7, 0.0  ;;  %v1383_v12 = vmax.f32 %v1072_v8, 0.0 }
 0x17e   :  { %v1595_v13 = vpack.c.bf16 %v1426_v9, %v1426_v9  ;;  %v1639_v49 = vpack.c.bf16 %v1470_v43, %v1470_v43 }
 0x17f   :  { %v1508_v14 = vpack.c.bf16 %v1339_v11, %v1339_v11  ;;  %v1552_v15 = vpack.c.bf16 %v1383_v12, %v1383_v12 }
 0x180   :  { %1765 = vst.msk [vmem:[%s3556_s3 + $0x1d8] sm:$0xf] %vm1646_vm1, %v1595_v13 }
 0x181   :  { %1678 = vst.msk [vmem:[%s3556_s3 + $0x7c] sm:$0xf] %vm1646_vm1, %v1508_v14  ;;  %v1181_v17 = vpop.f32.mrf.mxu2  ;;  %v1291_v51 = vpop.f32.mrf.mxu3 }
 0x182   :  { %1722 = vst.msk [vmem:[%s3556_s3 + $0x12c] sm:$0xf] %vm1646_vm1, %v1552_v15  ;;  %v1182_v19 = vadd.f32 %v3091_v40, %v1181_v17  ;;  %v964_v20 = vpop.f32.mrf.mxu0  ;;  %v1074_v21 = vpop.f32.mrf.mxu1  ;;  %v1292_v55 = vadd.f32 %v3091_v40, %v1291_v51 }
 0x183   :  { %v965_v23 = vadd.f32 %v3091_v40, %v964_v20  ;;  %v1075_v24 = vadd.f32 %v3091_v40, %v1074_v21  ;;  %1809 = vst.msk [vmem:[%s3556_s3 + $0x288] sm:$0xf] %vm1646_vm1, %v1639_v49 }
 0x184   :  { %v1427_v25 = vmax.f32 %v1182_v19, 0.0  ;;  %v1471_v59 = vmax.f32 %v1292_v55, 0.0 }
 0x185   :  { %v1340_v27 = vmax.f32 %v965_v23, 0.0  ;;  %v1384_v28 = vmax.f32 %v1075_v24, 0.0 }
 0x186   :  { %v1596_v29 = vpack.c.bf16 %v1427_v25, %v1427_v25  ;;  %v1640_v1 = vpack.c.bf16 %v1471_v59, %v1471_v59 }
 0x187   :  { %v1509_v30 = vpack.c.bf16 %v1340_v27, %v1340_v27  ;;  %v1553_v31 = vpack.c.bf16 %v1384_v28, %v1384_v28 }
 0x188   :  { %1766 = vst.msk [vmem:[%s3556_s3 + $0x1dc] sm:$0xf] %vm1646_vm1, %v1596_v29 }
 0x189   :  { %1679 = vst.msk [vmem:[%s3556_s3 + $0x80] sm:$0xf] %vm1646_vm1, %v1509_v30  ;;  %v1184_v34 = vpop.f32.mrf.mxu2  ;;  %v1294_v3 = vpop.f32.mrf.mxu3 }
 0x18a   :  { %1723 = vst.msk [vmem:[%s3556_s3 + $0x130] sm:$0xf] %vm1646_vm1, %v1553_v31  ;;  %v1185_v35 = vadd.f32 %v3091_v40, %v1184_v34  ;;  %v966_v36 = vpop.f32.mrf.mxu0  ;;  %v1076_v37 = vpop.f32.mrf.mxu1  ;;  %v1295_v7 = vadd.f32 %v3091_v40, %v1294_v3 }
 0x18b   :  { %v967_v39 = vadd.f32 %v3091_v40, %v966_v36  ;;  %v1077_v41 = vadd.f32 %v3091_v40, %v1076_v37  ;;  %1810 = vst.msk [vmem:[%s3556_s3 + $0x28c] sm:$0xf] %vm1646_vm1, %v1640_v1 }
 0x18c   :  { %v1428_v42 = vmax.f32 %v1185_v35, 0.0  ;;  %v1472_v11 = vmax.f32 %v1295_v7, 0.0 }
 0x18d   :  { %v1341_v44 = vmax.f32 %v967_v39, 0.0  ;;  %v1385_v45 = vmax.f32 %v1077_v41, 0.0 }
 0x18e   :  { %v1597_v46 = vpack.c.bf16 %v1428_v42, %v1428_v42  ;;  %v1641_v17 = vpack.c.bf16 %v1472_v11, %v1472_v11 }
 0x18f   :  { %v1510_v47 = vpack.c.bf16 %v1341_v44, %v1341_v44  ;;  %v1554_v48 = vpack.c.bf16 %v1385_v45, %v1385_v45 }
 0x190   :  { %1767 = vst.msk [vmem:[%s3556_s3 + $0x1e0] sm:$0xf] %vm1646_vm1, %v1597_v46 }
 0x191   :  { %1680 = vst.msk [vmem:[%s3556_s3 + $0x84] sm:$0xf] %vm1646_vm1, %v1510_v47  ;;  %v1186_v50 = vpop.f32.mrf.mxu2  ;;  %v1296_v19 = vpop.f32.mrf.mxu3 }
 0x192   :  { %1724 = vst.msk [vmem:[%s3556_s3 + $0x134] sm:$0xf] %vm1646_vm1, %v1554_v48  ;;  %v1187_v52 = vadd.f32 %v3091_v40, %v1186_v50  ;;  %v969_v53 = vpop.f32.mrf.mxu0  ;;  %v1079_v54 = vpop.f32.mrf.mxu1  ;;  %v1297_v23 = vadd.f32 %v3091_v40, %v1296_v19 }
 0x193   :  { %v970_v56 = vadd.f32 %v3091_v40, %v969_v53  ;;  %v1080_v57 = vadd.f32 %v3091_v40, %v1079_v54  ;;  %1811 = vst.msk [vmem:[%s3556_s3 + $0x290] sm:$0xf] %vm1646_vm1, %v1641_v17 }
 0x194   :  { %v1429_v58 = vmax.f32 %v1187_v52, 0.0  ;;  %v1473_v27 = vmax.f32 %v1297_v23, 0.0 }
 0x195   :  { %v1342_v60 = vmax.f32 %v970_v56, 0.0  ;;  %v1386_v61 = vmax.f32 %v1080_v57, 0.0 }
 0x196   :  { %v1598_v62 = vpack.c.bf16 %v1429_v58, %v1429_v58  ;;  %v1642_v34 = vpack.c.bf16 %v1473_v27, %v1473_v27 }
 0x197   :  { %v1511_v63 = vpack.c.bf16 %v1342_v60, %v1342_v60  ;;  %v1555_v0 = vpack.c.bf16 %v1386_v61, %v1386_v61 }
 0x198   :  { %1768 = vst.msk [vmem:[%s3556_s3 + $0x1e4] sm:$0xf] %vm1646_vm1, %v1598_v62 }
 0x199   :  { %1681 = vst.msk [vmem:[%s3556_s3 + $0x88] sm:$0xf] %vm1646_vm1, %v1511_v63  ;;  %v1189_v2 = vpop.f32.mrf.mxu2  ;;  %v1299_v35 = vpop.f32.mrf.mxu3 }
 0x19a   :  { %1725 = vst.msk [vmem:[%s3556_s3 + $0x138] sm:$0xf] %vm1646_vm1, %v1555_v0  ;;  %v1190_v4 = vadd.f32 %v3091_v40, %v1189_v2  ;;  %v971_v5 = vpop.f32.mrf.mxu0  ;;  %v1081_v6 = vpop.f32.mrf.mxu1  ;;  %v1300_v39 = vadd.f32 %v3091_v40, %v1299_v35 }
 0x19b   :  { %v972_v8 = vadd.f32 %v3091_v40, %v971_v5  ;;  %v1082_v9 = vadd.f32 %v3091_v40, %v1081_v6  ;;  %1812 = vst.msk [vmem:[%s3556_s3 + $0x294] sm:$0xf] %vm1646_vm1, %v1642_v34 }
 0x19c   :  { %v1430_v10 = vmax.f32 %v1190_v4, 0.0  ;;  %v1474_v44 = vmax.f32 %v1300_v39, 0.0 }
 0x19d   :  { %v1343_v12 = vmax.f32 %v972_v8, 0.0  ;;  %v1387_v13 = vmax.f32 %v1082_v9, 0.0 }
 0x19e   :  { %v1599_v14 = vpack.c.bf16 %v1430_v10, %v1430_v10  ;;  %v1643_v50 = vpack.c.bf16 %v1474_v44, %v1474_v44 }
 0x19f   :  { %v1512_v15 = vpack.c.bf16 %v1343_v12, %v1343_v12  ;;  %v1556_v16 = vpack.c.bf16 %v1387_v13, %v1387_v13 }
 0x1a0   :  { %1769 = vst.msk [vmem:[%s3556_s3 + $0x1e8] sm:$0xf] %vm1646_vm1, %v1599_v14 }
 0x1a1   :  { %1682 = vst.msk [vmem:[%s3556_s3 + $0x8c] sm:$0xf] %vm1646_vm1, %v1512_v15  ;;  %v1191_v18 = vpop.f32.mrf.mxu2  ;;  %v1301_v52 = vpop.f32.mrf.mxu3 }
 0x1a2   :  { %1726 = vst.msk [vmem:[%s3556_s3 + $0x13c] sm:$0xf] %vm1646_vm1, %v1556_v16  ;;  %v1192_v20 = vadd.f32 %v3091_v40, %v1191_v18  ;;  %v974_v21 = vpop.f32.mrf.mxu0  ;;  %v1084_v22 = vpop.f32.mrf.mxu1  ;;  %v1302_v56 = vadd.f32 %v3091_v40, %v1301_v52 }
 0x1a3   :  { %v975_v24 = vadd.f32 %v3091_v40, %v974_v21  ;;  %v1085_v25 = vadd.f32 %v3091_v40, %v1084_v22  ;;  %1813 = vst.msk [vmem:[%s3556_s3 + $0x298] sm:$0xf] %vm1646_vm1, %v1643_v50 }
 0x1a4   :  { %v1431_v26 = vmax.f32 %v1192_v20, 0.0  ;;  %v1475_v60 = vmax.f32 %v1302_v56, 0.0 }
 0x1a5   :  { %v1344_v28 = vmax.f32 %v975_v24, 0.0  ;;  %v1388_v29 = vmax.f32 %v1085_v25, 0.0 }
 0x1a6   :  { %v1600_v30 = vpack.c.bf16 %v1431_v26, %v1431_v26  ;;  %v1644_v2 = vpack.c.bf16 %v1475_v60, %v1475_v60 }
 0x1a7   :  { %v1513_v31 = vpack.c.bf16 %v1344_v28, %v1344_v28  ;;  %v1557_v33 = vpack.c.bf16 %v1388_v29, %v1388_v29 }
 0x1a8   :  { %1770 = vst.msk [vmem:[%s3556_s3 + $0x1ec] sm:$0xf] %vm1646_vm1, %v1600_v30 }
 0x1a9   :  { %1683 = vst.msk [vmem:[%s3556_s3 + $0x90] sm:$0xf] %vm1646_vm1, %v1513_v31  ;;  %v1194_v32 = vpop.f32.mrf.mxu2 }
 0x1aa   :  { %1727 = vst.msk [vmem:[%s3556_s3 + $0x140] sm:$0xf] %vm1646_vm1, %v1557_v33  ;;  %v1195_v36 = vadd.f32 %v3091_v40, %v1194_v32  ;;  %v976_v37 = vpop.f32.mrf.mxu0  ;;  %v1086_v38 = vpop.f32.mrf.mxu1 }
 0x1ab   :  { %v977_v41 = vadd.f32 %v3091_v40, %v976_v37  ;;  %v1087_v42 = vadd.f32 %v3091_v40, %v1086_v38  ;;  %1814 = vst.msk [vmem:[%s3556_s3 + $0x29c] sm:$0xf] %vm1646_vm1, %v1644_v2 }
 0x1ac   :  { %v1432_v43 = vmax.f32 %v1195_v36, 0.0 }
 0x1ad   :  { %v1345_v45 = vmax.f32 %v977_v41, 0.0  ;;  %v1389_v46 = vmax.f32 %v1087_v42, 0.0 }
 0x1ae   :  { %v1601_v47 = vpack.c.bf16 %v1432_v43, %v1432_v43 }
 0x1af   :  { %v1514_v48 = vpack.c.bf16 %v1345_v45, %v1345_v45  ;;  %v1558_v49 = vpack.c.bf16 %v1389_v46, %v1389_v46 }
 0x1b0   :  { %1771 = vst.msk [vmem:[%s3556_s3 + $0x1f0] sm:$0xf] %vm1646_vm1, %v1601_v47 }
 0x1b1   :  { %1684 = vst.msk [vmem:[%s3556_s3 + $0x94] sm:$0xf] %vm1646_vm1, %v1514_v48  ;;  %v1196_v51 = vpop.f32.mrf.mxu2 }
 0x1b2   :  { %1728 = vst.msk [vmem:[%s3556_s3 + $0x144] sm:$0xf] %vm1646_vm1, %v1558_v49  ;;  %v1197_v53 = vadd.f32 %v3091_v40, %v1196_v51  ;;  %v979_v54 = vpop.f32.mrf.mxu0  ;;  %v1089_v55 = vpop.f32.mrf.mxu1 }
 0x1b3   :  { %v980_v57 = vadd.f32 %v3091_v40, %v979_v54  ;;  %v1090_v58 = vadd.f32 %v3091_v40, %v1089_v55  ;;  %v1304_v4 = vpop.f32.mrf.mxu3 }
 0x1b4   :  { %v1433_v59 = vmax.f32 %v1197_v53, 0.0  ;;  %v1305_v8 = vadd.f32 %v3091_v40, %v1304_v4 }
 0x1b5   :  { %v1346_v61 = vmax.f32 %v980_v57, 0.0  ;;  %v1390_v62 = vmax.f32 %v1090_v58, 0.0 }
 0x1b6   :  { %v1602_v63 = vpack.c.bf16 %v1433_v59, %v1433_v59  ;;  %v1476_v12 = vmax.f32 %v1305_v8, 0.0 }
 0x1b7   :  { %v1515_v0 = vpack.c.bf16 %v1346_v61, %v1346_v61  ;;  %v1559_v1 = vpack.c.bf16 %v1390_v62, %v1390_v62 }
 0x1b8   :  { %1772 = vst.msk [vmem:[%s3556_s3 + $0x1f4] sm:$0xf] %vm1646_vm1, %v1602_v63  ;;  %v1645_v18 = vpack.c.bf16 %v1476_v12, %v1476_v12 }
 0x1b9   :  { %1685 = vst.msk [vmem:[%s3556_s3 + $0x98] sm:$0xf] %vm1646_vm1, %v1515_v0  ;;  %v1199_v3 = vpop.f32.mrf.mxu2 }
 0x1ba   :  { %1729 = vst.msk [vmem:[%s3556_s3 + $0x148] sm:$0xf] %vm1646_vm1, %v1559_v1  ;;  %v1200_v5 = vadd.f32 %v3091_v40, %v1199_v3  ;;  %v981_v6 = vpop.f32.mrf.mxu0  ;;  %v1091_v7 = vpop.f32.mrf.mxu1 }
 0x1bb   :  { %v982_v9 = vadd.f32 %v3091_v40, %v981_v6  ;;  %v1092_v10 = vadd.f32 %v3091_v40, %v1091_v7  ;;  %v1306_v20 = vpop.f32.mrf.mxu3  ;;  %1815 = vst.msk [vmem:[%s3556_s3 + $0x2a0] sm:$0xf] %vm1646_vm1, %v1645_v18 }
 0x1bc   :  { %v1434_v11 = vmax.f32 %v1200_v5, 0.0 }
 0x1bd   :  { %v1347_v13 = vmax.f32 %v982_v9, 0.0  ;;  %v1391_v14 = vmax.f32 %v1092_v10, 0.0 }
 0x1be   :  { %v1603_v15 = vpack.c.bf16 %v1434_v11, %v1434_v11 }
 0x1bf   :  { %v1516_v16 = vpack.c.bf16 %v1347_v13, %v1347_v13  ;;  %v1560_v17 = vpack.c.bf16 %v1391_v14, %v1391_v14 }
 0x1c0   :  { %1773 = vst.msk [vmem:[%s3556_s3 + $0x1f8] sm:$0xf] %vm1646_vm1, %v1603_v15 }
 0x1c1   :  { %1686 = vst.msk [vmem:[%s3556_s3 + $0x9c] sm:$0xf] %vm1646_vm1, %v1516_v16  ;;  %v1201_v19 = vpop.f32.mrf.mxu2 }
 0x1c2   :  { %1730 = vst.msk [vmem:[%s3556_s3 + $0x14c] sm:$0xf] %vm1646_vm1, %v1560_v17  ;;  %v1202_v21 = vadd.f32 %v3091_v40, %v1201_v19  ;;  %v984_v22 = vpop.f32.mrf.mxu0  ;;  %v1094_v23 = vpop.f32.mrf.mxu1 }
 0x1c3   :  { %v985_v24 = vadd.f32 %v3091_v40, %v984_v22  ;;  %v1095_v25 = vadd.f32 %v3091_v40, %v1094_v23 }
 0x1c4   :  { %v1435_v26 = vmax.f32 %v1202_v21, 0.0 }
 0x1c5   :  { %v1348_v27 = vmax.f32 %v985_v24, 0.0  ;;  %v1392_v28 = vmax.f32 %v1095_v25, 0.0 }
 0x1c6   :  { %v1604_v29 = vpack.c.bf16 %v1435_v26, %v1435_v26 }
 0x1c7   :  { %v1517_v30 = vpack.c.bf16 %v1348_v27, %v1348_v27  ;;  %v1561_v31 = vpack.c.bf16 %v1392_v28, %v1392_v28 }
 0x1c8   :  { %1774 = vst.msk [vmem:[%s3556_s3 + $0x1fc] sm:$0xf] %vm1646_vm1, %v1604_v29 }
 0x1c9   :  { %1687 = vst.msk [vmem:[%s3556_s3 + $0xa0] sm:$0xf] %vm1646_vm1, %v1517_v30  ;;  %v1204_v33 = vpop.f32.mrf.mxu2 }
 0x1ca   :  { %1731 = vst.msk [vmem:[%s3556_s3 + $0x150] sm:$0xf] %vm1646_vm1, %v1561_v31  ;;  %v1205_v34 = vadd.f32 %v3091_v40, %v1204_v33  ;;  %v986_v32 = vpop.f32.mrf.mxu0  ;;  %v1096_v35 = vpop.f32.mrf.mxu1 }
 0x1cb   :  { %v987_v36 = vadd.f32 %v3091_v40, %v986_v32  ;;  %v1097_v37 = vadd.f32 %v3091_v40, %v1096_v35 }
 0x1cc   :  { %v1436_v38 = vmax.f32 %v1205_v34, 0.0 }
 0x1cd   :  { %v1349_v39 = vmax.f32 %v987_v36, 0.0  ;;  %v1393_v41 = vmax.f32 %v1097_v37, 0.0 }
 0x1ce   :  { %v1605_v42 = vpack.c.bf16 %v1436_v38, %v1436_v38 }
 0x1cf   :  { %v1518_v43 = vpack.c.bf16 %v1349_v39, %v1349_v39  ;;  %v1562_v44 = vpack.c.bf16 %v1393_v41, %v1393_v41 }
 0x1d0   :  { %1775 = vst.msk [vmem:[%s3556_s3 + $0x200] sm:$0xf] %vm1646_vm1, %v1605_v42 }
 0x1d1   :  { %1688 = vst.msk [vmem:[%s3556_s3 + $0xa4] sm:$0xf] %vm1646_vm1, %v1518_v43  ;;  %v1206_v45 = vpop.f32.mrf.mxu2 }
 0x1d2   :  { %1732 = vst.msk [vmem:[%s3556_s3 + $0x154] sm:$0xf] %vm1646_vm1, %v1562_v44  ;;  %v1207_v46 = vadd.f32 %v3091_v40, %v1206_v45  ;;  %v989_v47 = vpop.f32.mrf.mxu0  ;;  %v1099_v48 = vpop.f32.mrf.mxu1 }
 0x1d3   :  { %v990_v49 = vadd.f32 %v3091_v40, %v989_v47  ;;  %v1100_v50 = vadd.f32 %v3091_v40, %v1099_v48 }
 0x1d4   :  { %v1437_v51 = vmax.f32 %v1207_v46, 0.0 }
 0x1d5   :  { %v1350_v52 = vmax.f32 %v990_v49, 0.0  ;;  %v1394_v53 = vmax.f32 %v1100_v50, 0.0 }
 0x1d6   :  { %v1606_v54 = vpack.c.bf16 %v1437_v51, %v1437_v51 }
 0x1d7   :  { %v1519_v55 = vpack.c.bf16 %v1350_v52, %v1350_v52  ;;  %v1563_v56 = vpack.c.bf16 %v1394_v53, %v1394_v53 }
 0x1d8   :  { %1776 = vst.msk [vmem:[%s3556_s3 + $0x204] sm:$0xf] %vm1646_vm1, %v1606_v54 }
 0x1d9   :  { %1689 = vst.msk [vmem:[%s3556_s3 + $0xa8] sm:$0xf] %vm1646_vm1, %v1519_v55  ;;  %v1209_v57 = vpop.f32.mrf.mxu2 }
 0x1da   :  { %1733 = vst.msk [vmem:[%s3556_s3 + $0x158] sm:$0xf] %vm1646_vm1, %v1563_v56  ;;  %v1210_v58 = vadd.f32 %v3091_v40, %v1209_v57  ;;  %v991_v59 = vpop.f32.mrf.mxu0  ;;  %v1101_v60 = vpop.f32.mrf.mxu1 }
 0x1db   :  { %v992_v61 = vadd.f32 %v3091_v40, %v991_v59  ;;  %v1102_v62 = vadd.f32 %v3091_v40, %v1101_v60 }
 0x1dc   :  { %v1438_v63 = vmax.f32 %v1210_v58, 0.0 }
 0x1dd   :  { %v1351_v0 = vmax.f32 %v992_v61, 0.0  ;;  %v1395_v1 = vmax.f32 %v1102_v62, 0.0 }
 0x1de   :  { %v1607_v2 = vpack.c.bf16 %v1438_v63, %v1438_v63 }
 0x1df   :  { %v1520_v3 = vpack.c.bf16 %v1351_v0, %v1351_v0  ;;  %v1564_v4 = vpack.c.bf16 %v1395_v1, %v1395_v1 }
 0x1e0   :  { %1777 = vst.msk [vmem:[%s3556_s3 + $0x208] sm:$0xf] %vm1646_vm1, %v1607_v2 }
 0x1e1   :  { %1690 = vst.msk [vmem:[%s3556_s3 + $0xac] sm:$0xf] %vm1646_vm1, %v1520_v3  ;;  %v1211_v5 = vpop.f32.mrf.mxu2 }
 0x1e2   :  { %1734 = vst.msk [vmem:[%s3556_s3 + $0x15c] sm:$0xf] %vm1646_vm1, %v1564_v4  ;;  %v1212_v6 = vadd.f32 %v3091_v40, %v1211_v5 }
 0x1e4   :  { %v1439_v7 = vmax.f32 %v1212_v6, 0.0 }
 0x1e6   :  { %v1608_v8 = vpack.c.bf16 %v1439_v7, %v1439_v7 }
 0x1e8   :  { %1778 = vst.msk [vmem:[%s3556_s3 + $0x20c] sm:$0xf] %vm1646_vm1, %v1608_v8 }

// kernel: big_model_forward.4
= control target key start
LH: loop header
LB: loop body
LE: loop exit
PB: predicated region body
PF: predicated region fallthrough
CT: control target
= control target key end

     0   :  { %vm510_vm0 = vcmask 257024   ;;  %s1118_s1 = inlined_call_operand.vmem [shape: bf16[128,32], index: 1, kind: input, shape index: {}]   ;;  %s1119_s2 = inlined_call_operand.vmem [shape: f32[1,32], index: 2, kind: input, shape index: {}]   ;;  %s1120_s0 = inlined_call_operand.vmem [shape: bf16[392,128], index: 0, kind: input, shape index: {}]   ;;  %s1121_s3 = inlined_call_operand.vmem [shape: bf16[392,32], index: 3, kind: output, shape index: {}]  }
   0x1   :  { %v723_v0 = vld [vmem:[%s1118_s1 + $0x38] sm:$0xff]  ;;  %v722_v1 = vld [vmem:[%s1118_s1 + $0x30] sm:$0xff]  ;;  %v721_v2 = vld [vmem:[%s1118_s1 + $0x28] sm:$0xff] }
   0x2   :  { %725 = vmatpush.bf16.msra.mxu2 %v723_v0  ;;  %279 = vmatpush.bf16.msra.mxu0 %v723_v0  ;;  %v720_v3 = vld [vmem:[%s1118_s1 + $0x20] sm:$0xff]  ;;  %v719_v4 = vld [vmem:[%s1118_s1 + $0x18] sm:$0xff]  ;;  %v718_v5 = vld [vmem:[%s1118_s1 + $0x10] sm:$0xff] }
   0x3   :  { %724 = vmatpush.bf16.msra.mxu1 %v723_v0  ;;  %726 = vmatpush.bf16.msra.mxu3 %v723_v0  ;;  %v717_v6 = vld [vmem:[%s1118_s1 + $0x8] sm:$0xff]  ;;  %v716_v7 = vld [vmem:[%s1118_s1] sm:$0xff]  ;;  %v698_v10 = vld [vmem:[%s1120_s0 + $0x30] sm:$0xff] }
   0x4   :  { %v704_v8 = vld [vmem:[%s1120_s0 + $0x60] sm:$0xff]  ;;  %v711_v11 = vld [vmem:[%s1120_s0 + $0x98] sm:$0xff]  ;;  %v705_v12 = vld [vmem:[%s1120_s0 + $0x68] sm:$0xff] }
   0x5   :  { %v692_v9 = vld [vmem:[%s1120_s0] sm:$0xff]  ;;  %v693_v13 = vld [vmem:[%s1120_s0 + $0x8] sm:$0xff]  ;;  %v699_v14 = vld [vmem:[%s1120_s0 + $0x38] sm:$0xff] }
   0x6   :  { %728 = vmatpush.bf16.msra.mxu2 %v722_v1  ;;  %280 = vmatpush.bf16.msra.mxu0 %v722_v1  ;;  %v712_v15 = vld [vmem:[%s1120_s0 + $0xa0] sm:$0xff]  ;;  %v706_v16 = vld [vmem:[%s1120_s0 + $0x70] sm:$0xff]  ;;  %v713_v19 = vld [vmem:[%s1120_s0 + $0xa8] sm:$0xff] }
   0x7   :  { %727 = vmatpush.bf16.msra.mxu1 %v722_v1  ;;  %729 = vmatpush.bf16.msra.mxu3 %v722_v1  ;;  %v694_v17 = vld [vmem:[%s1120_s0 + $0x10] sm:$0xff]  ;;  %v700_v18 = vld [vmem:[%s1120_s0 + $0x40] sm:$0xff]  ;;  %v707_v20 = vld [vmem:[%s1120_s0 + $0x78] sm:$0xff] }
   0x8   :  { %v695_v21 = vld [vmem:[%s1120_s0 + $0x18] sm:$0xff]  ;;  %v701_v22 = vld [vmem:[%s1120_s0 + $0x48] sm:$0xff]  ;;  %v714_v23 = vld [vmem:[%s1120_s0 + $0xb0] sm:$0xff] }
   0x9   :  { %v708_v24 = vld [vmem:[%s1120_s0 + $0x80] sm:$0xff]  ;;  %v702_v26 = vld [vmem:[%s1120_s0 + $0x50] sm:$0xff]  ;;  %v715_v27 = vld [vmem:[%s1120_s0 + $0xb8] sm:$0xff] }
   0xa   :  { %731 = vmatpush.bf16.msra.mxu2 %v721_v2  ;;  %281 = vmatpush.bf16.msra.mxu0 %v721_v2  ;;  %v696_v25 = vld [vmem:[%s1120_s0 + $0x20] sm:$0xff]  ;;  %v709_v30 = vld [vmem:[%s1120_s0 + $0x88] sm:$0xff]  ;;  %v703_v32 = vld [vmem:[%s1120_s0 + $0x58] sm:$0xff] }
   0xb   :  { %730 = vmatpush.bf16.msra.mxu1 %v721_v2  ;;  %732 = vmatpush.bf16.msra.mxu3 %v721_v2  ;;  %v62_v28 = vld [vmem:[%s1120_s0 + $0xc0] sm:$0xf]  ;;  %v697_v31 = vld [vmem:[%s1120_s0 + $0x28] sm:$0xff]  ;;  %v710_v34 = vld [vmem:[%s1120_s0 + $0x90] sm:$0xff] }
   0xc   :  { %v180_v29 = vunpack.c.l.b16 %v62_v28  ;;  %v871_v35 = vld [vmem:[%s1119_s2] ss:$0 sm:$0xff] }
   0xe   :  { %734 = vmatpush.bf16.msra.mxu2 %v720_v3  ;;  %282 = vmatpush.bf16.msra.mxu0 %v720_v3  ;;  %v205_v33 = vpack.c.b16 %v180_v29, %v180_v29 }
   0xf   :  { %733 = vmatpush.bf16.msra.mxu1 %v720_v3  ;;  %735 = vmatpush.bf16.msra.mxu3 %v720_v3 }
  0x12   :  { %737 = vmatpush.bf16.msra.mxu2 %v719_v4  ;;  %283 = vmatpush.bf16.msra.mxu0 %v719_v4 }
  0x13   :  { %736 = vmatpush.bf16.msra.mxu1 %v719_v4  ;;  %738 = vmatpush.bf16.msra.mxu3 %v719_v4 }
  0x16   :  { %740 = vmatpush.bf16.msra.mxu2 %v718_v5  ;;  %284 = vmatpush.bf16.msra.mxu0 %v718_v5 }
  0x17   :  { %739 = vmatpush.bf16.msra.mxu1 %v718_v5  ;;  %741 = vmatpush.bf16.msra.mxu3 %v718_v5 }
  0x1a   :  { %743 = vmatpush.bf16.msra.mxu2 %v717_v6  ;;  %285 = vmatpush.bf16.msra.mxu0 %v717_v6 }
  0x1b   :  { %742 = vmatpush.bf16.msra.mxu1 %v717_v6  ;;  %744 = vmatpush.bf16.msra.mxu3 %v717_v6 }
  0x1e   :  { %746 = vmatpush.bf16.msra.mxu2 %v716_v7  ;;  %286 = vmatpush.bf16.msra.mxu0 %v716_v7 }
  0x1f   :  { %745 = vmatpush.bf16.msra.mxu1 %v716_v7  ;;  %747 = vmatpush.bf16.msra.mxu3 %v716_v7 }
  0x21   :  { %347 = vmatmul.bf16.vlgmr.msra.gmra.mxu2 %v704_v8  ;;  %287 = vmatmul.bf16.vlgmr.msra.gmra.mxu0 %v692_v9 }
  0x22   :  { %317 = vmatmul.bf16.vlgmr.msra.gmra.mxu1 %v698_v10  ;;  %382 = vmatmul.bf16.vlgmr.msra.gmra.mxu3 %v711_v11 }
  0x31   :  { %352 = vmatmul.bf16.gmra.mxu2 %v705_v12  ;;  %292 = vmatmul.bf16.gmra.mxu0 %v693_v13 }
  0x32   :  { %322 = vmatmul.bf16.gmra.mxu1 %v699_v14  ;;  %387 = vmatmul.bf16.gmra.mxu3 %v712_v15 }
  0x41   :  { %357 = vmatmul.bf16.gmra.mxu2 %v706_v16  ;;  %297 = vmatmul.bf16.gmra.mxu0 %v694_v17 }
  0x42   :  { %327 = vmatmul.bf16.gmra.mxu1 %v700_v18  ;;  %392 = vmatmul.bf16.gmra.mxu3 %v713_v19 }
  0x51   :  { %362 = vmatmul.bf16.gmra.mxu2 %v707_v20  ;;  %302 = vmatmul.bf16.gmra.mxu0 %v695_v21 }
  0x52   :  { %332 = vmatmul.bf16.gmra.mxu1 %v701_v22  ;;  %397 = vmatmul.bf16.gmra.mxu3 %v714_v23 }
  0x61   :  { %367 = vmatmul.bf16.gmra.mxu2 %v708_v24  ;;  %307 = vmatmul.bf16.gmra.mxu0 %v696_v25 }
  0x62   :  { %337 = vmatmul.bf16.gmra.mxu1 %v702_v26  ;;  %402 = vmatmul.bf16.gmra.mxu3 %v715_v27 }
  0x71   :  { %372 = vmatmul.bf16.gmra.mxu2 %v709_v30  ;;  %312 = vmatmul.bf16.gmra.mxu0 %v697_v31 }
  0x72   :  { %342 = vmatmul.bf16.gmra.mxu1 %v703_v32  ;;  %407 = vmatmul.bf16.gmra.mxu3 %v205_v33 }
  0x81   :  { %377 = vmatmul.bf16.gmra.mxu2 %v710_v34 }
  0x9e   :  { %v288_v36 = vpop.f32.mrf.mxu0 }
  0x9f   :  { %v289_v37 = vadd.f32 %v871_v35, %v288_v36  ;;  %v318_v38 = vpop.f32.mrf.mxu1 }
  0xa0   :  { %v319_v39 = vadd.f32 %v871_v35, %v318_v38 }
  0xa1   :  { %v412_v40 = vmax.f32 %v289_v37, 0.0 }
  0xa2   :  { %v424_v41 = vmax.f32 %v319_v39, 0.0 }
  0xa3   :  { %v461_v42 = vpack.c.bf16 %v412_v40, %v412_v40 }
  0xa4   :  { %v348_v43 = vpop.f32.mrf.mxu2  ;;  %v473_v44 = vpack.c.bf16 %v424_v41, %v424_v41 }
  0xa5   :  { %v349_v45 = vadd.f32 %v871_v35, %v348_v43  ;;  %511 = vst.msk [vmem:[%s1121_s3] sm:$0xf] %vm510_vm0, %v461_v42  ;;  %v383_v46 = vpop.f32.mrf.mxu3 }
  0xa6   :  { %523 = vst.msk [vmem:[%s1121_s3 + $0x30] sm:$0xf] %vm510_vm0, %v473_v44  ;;  %v384_v47 = vadd.f32 %v871_v35, %v383_v46  ;;  %v290_v48 = vpop.f32.mrf.mxu0 }
  0xa7   :  { %v436_v49 = vmax.f32 %v349_v45, 0.0  ;;  %v291_v50 = vadd.f32 %v871_v35, %v290_v48  ;;  %v320_v51 = vpop.f32.mrf.mxu1 }
  0xa8   :  { %v450_v52 = vmax.f32 %v384_v47, 0.0  ;;  %v321_v53 = vadd.f32 %v871_v35, %v320_v51 }
  0xa9   :  { %v485_v54 = vpack.c.bf16 %v436_v49, %v436_v49  ;;  %v413_v55 = vmax.f32 %v291_v50, 0.0 }
  0xaa   :  { %v499_v56 = vpack.c.bf16 %v450_v52, %v450_v52  ;;  %v425_v57 = vmax.f32 %v321_v53, 0.0 }
  0xab   :  { %535 = vst.msk [vmem:[%s1121_s3 + $0x60] sm:$0xf] %vm510_vm0, %v485_v54  ;;  %v462_v58 = vpack.c.bf16 %v413_v55, %v413_v55 }
  0xac   :  { %v350_v59 = vpop.f32.mrf.mxu2  ;;  %549 = vst.msk [vmem:[%s1121_s3 + $0x98] sm:$0xf] %vm510_vm0, %v499_v56  ;;  %v474_v60 = vpack.c.bf16 %v425_v57, %v425_v57 }
  0xad   :  { %v351_v61 = vadd.f32 %v871_v35, %v350_v59  ;;  %512 = vst.msk [vmem:[%s1121_s3 + $0x4] sm:$0xf] %vm510_vm0, %v462_v58  ;;  %v385_v62 = vpop.f32.mrf.mxu3 }
  0xae   :  { %524 = vst.msk [vmem:[%s1121_s3 + $0x34] sm:$0xf] %vm510_vm0, %v474_v60  ;;  %v386_v63 = vadd.f32 %v871_v35, %v385_v62  ;;  %v293_v0 = vpop.f32.mrf.mxu0 }
  0xaf   :  { %v437_v1 = vmax.f32 %v351_v61, 0.0  ;;  %v294_v2 = vadd.f32 %v871_v35, %v293_v0  ;;  %v323_v3 = vpop.f32.mrf.mxu1 }
  0xb0   :  { %v451_v4 = vmax.f32 %v386_v63, 0.0  ;;  %v324_v5 = vadd.f32 %v871_v35, %v323_v3 }
  0xb1   :  { %v486_v6 = vpack.c.bf16 %v437_v1, %v437_v1  ;;  %v414_v7 = vmax.f32 %v294_v2, 0.0 }
  0xb2   :  { %v500_v8 = vpack.c.bf16 %v451_v4, %v451_v4  ;;  %v426_v9 = vmax.f32 %v324_v5, 0.0 }
  0xb3   :  { %536 = vst.msk [vmem:[%s1121_s3 + $0x64] sm:$0xf] %vm510_vm0, %v486_v6  ;;  %v463_v10 = vpack.c.bf16 %v414_v7, %v414_v7 }
  0xb4   :  { %v353_v11 = vpop.f32.mrf.mxu2  ;;  %550 = vst.msk [vmem:[%s1121_s3 + $0x9c] sm:$0xf] %vm510_vm0, %v500_v8  ;;  %v475_v12 = vpack.c.bf16 %v426_v9, %v426_v9 }
  0xb5   :  { %v354_v13 = vadd.f32 %v871_v35, %v353_v11  ;;  %513 = vst.msk [vmem:[%s1121_s3 + $0x8] sm:$0xf] %vm510_vm0, %v463_v10  ;;  %v388_v14 = vpop.f32.mrf.mxu3 }
  0xb6   :  { %525 = vst.msk [vmem:[%s1121_s3 + $0x38] sm:$0xf] %vm510_vm0, %v475_v12  ;;  %v389_v15 = vadd.f32 %v871_v35, %v388_v14  ;;  %v295_v16 = vpop.f32.mrf.mxu0 }
  0xb7   :  { %v438_v17 = vmax.f32 %v354_v13, 0.0  ;;  %v296_v18 = vadd.f32 %v871_v35, %v295_v16  ;;  %v325_v19 = vpop.f32.mrf.mxu1 }
  0xb8   :  { %v452_v20 = vmax.f32 %v389_v15, 0.0  ;;  %v326_v21 = vadd.f32 %v871_v35, %v325_v19 }
  0xb9   :  { %v487_v22 = vpack.c.bf16 %v438_v17, %v438_v17  ;;  %v415_v23 = vmax.f32 %v296_v18, 0.0 }
  0xba   :  { %v501_v24 = vpack.c.bf16 %v452_v20, %v452_v20  ;;  %v427_v25 = vmax.f32 %v326_v21, 0.0 }
  0xbb   :  { %537 = vst.msk [vmem:[%s1121_s3 + $0x68] sm:$0xf] %vm510_vm0, %v487_v22  ;;  %v464_v26 = vpack.c.bf16 %v415_v23, %v415_v23 }
  0xbc   :  { %v355_v27 = vpop.f32.mrf.mxu2  ;;  %551 = vst.msk [vmem:[%s1121_s3 + $0xa0] sm:$0xf] %vm510_vm0, %v501_v24  ;;  %v476_v28 = vpack.c.bf16 %v427_v25, %v427_v25 }
  0xbd   :  { %v356_v29 = vadd.f32 %v871_v35, %v355_v27  ;;  %514 = vst.msk [vmem:[%s1121_s3 + $0xc] sm:$0xf] %vm510_vm0, %v464_v26  ;;  %v390_v30 = vpop.f32.mrf.mxu3 }
  0xbe   :  { %526 = vst.msk [vmem:[%s1121_s3 + $0x3c] sm:$0xf] %vm510_vm0, %v476_v28  ;;  %v391_v31 = vadd.f32 %v871_v35, %v390_v30  ;;  %v298_v32 = vpop.f32.mrf.mxu0 }
  0xbf   :  { %v439_v33 = vmax.f32 %v356_v29, 0.0  ;;  %v299_v34 = vadd.f32 %v871_v35, %v298_v32  ;;  %v328_v36 = vpop.f32.mrf.mxu1 }
  0xc0   :  { %v453_v37 = vmax.f32 %v391_v31, 0.0  ;;  %v329_v38 = vadd.f32 %v871_v35, %v328_v36 }
  0xc1   :  { %v488_v39 = vpack.c.bf16 %v439_v33, %v439_v33  ;;  %v416_v40 = vmax.f32 %v299_v34, 0.0 }
  0xc2   :  { %v502_v41 = vpack.c.bf16 %v453_v37, %v453_v37  ;;  %v428_v42 = vmax.f32 %v329_v38, 0.0 }
  0xc3   :  { %538 = vst.msk [vmem:[%s1121_s3 + $0x6c] sm:$0xf] %vm510_vm0, %v488_v39  ;;  %v465_v43 = vpack.c.bf16 %v416_v40, %v416_v40 }
  0xc4   :  { %v358_v44 = vpop.f32.mrf.mxu2  ;;  %552 = vst.msk [vmem:[%s1121_s3 + $0xa4] sm:$0xf] %vm510_vm0, %v502_v41  ;;  %v477_v45 = vpack.c.bf16 %v428_v42, %v428_v42 }
  0xc5   :  { %v359_v46 = vadd.f32 %v871_v35, %v358_v44  ;;  %515 = vst.msk [vmem:[%s1121_s3 + $0x10] sm:$0xf] %vm510_vm0, %v465_v43  ;;  %v393_v47 = vpop.f32.mrf.mxu3 }
  0xc6   :  { %527 = vst.msk [vmem:[%s1121_s3 + $0x40] sm:$0xf] %vm510_vm0, %v477_v45  ;;  %v394_v48 = vadd.f32 %v871_v35, %v393_v47  ;;  %v300_v49 = vpop.f32.mrf.mxu0 }
  0xc7   :  { %v440_v50 = vmax.f32 %v359_v46, 0.0  ;;  %v301_v51 = vadd.f32 %v871_v35, %v300_v49  ;;  %v330_v52 = vpop.f32.mrf.mxu1 }
  0xc8   :  { %v454_v53 = vmax.f32 %v394_v48, 0.0  ;;  %v331_v54 = vadd.f32 %v871_v35, %v330_v52 }
  0xc9   :  { %v489_v55 = vpack.c.bf16 %v440_v50, %v440_v50  ;;  %v417_v56 = vmax.f32 %v301_v51, 0.0 }
  0xca   :  { %v503_v57 = vpack.c.bf16 %v454_v53, %v454_v53  ;;  %v429_v58 = vmax.f32 %v331_v54, 0.0 }
  0xcb   :  { %539 = vst.msk [vmem:[%s1121_s3 + $0x70] sm:$0xf] %vm510_vm0, %v489_v55  ;;  %v466_v59 = vpack.c.bf16 %v417_v56, %v417_v56 }
  0xcc   :  { %v360_v60 = vpop.f32.mrf.mxu2  ;;  %553 = vst.msk [vmem:[%s1121_s3 + $0xa8] sm:$0xf] %vm510_vm0, %v503_v57  ;;  %v478_v61 = vpack.c.bf16 %v429_v58, %v429_v58 }
  0xcd   :  { %v361_v62 = vadd.f32 %v871_v35, %v360_v60  ;;  %516 = vst.msk [vmem:[%s1121_s3 + $0x14] sm:$0xf] %vm510_vm0, %v466_v59  ;;  %v395_v63 = vpop.f32.mrf.mxu3 }
  0xce   :  { %528 = vst.msk [vmem:[%s1121_s3 + $0x44] sm:$0xf] %vm510_vm0, %v478_v61  ;;  %v396_v0 = vadd.f32 %v871_v35, %v395_v63  ;;  %v303_v1 = vpop.f32.mrf.mxu0 }
  0xcf   :  { %v441_v2 = vmax.f32 %v361_v62, 0.0  ;;  %v304_v3 = vadd.f32 %v871_v35, %v303_v1  ;;  %v333_v4 = vpop.f32.mrf.mxu1 }
  0xd0   :  { %v455_v5 = vmax.f32 %v396_v0, 0.0  ;;  %v334_v6 = vadd.f32 %v871_v35, %v333_v4 }
  0xd1   :  { %v490_v7 = vpack.c.bf16 %v441_v2, %v441_v2  ;;  %v418_v8 = vmax.f32 %v304_v3, 0.0 }
  0xd2   :  { %v504_v9 = vpack.c.bf16 %v455_v5, %v455_v5  ;;  %v430_v10 = vmax.f32 %v334_v6, 0.0 }
  0xd3   :  { %540 = vst.msk [vmem:[%s1121_s3 + $0x74] sm:$0xf] %vm510_vm0, %v490_v7  ;;  %v467_v11 = vpack.c.bf16 %v418_v8, %v418_v8 }
  0xd4   :  { %v363_v12 = vpop.f32.mrf.mxu2  ;;  %554 = vst.msk [vmem:[%s1121_s3 + $0xac] sm:$0xf] %vm510_vm0, %v504_v9  ;;  %v479_v13 = vpack.c.bf16 %v430_v10, %v430_v10 }
  0xd5   :  { %v364_v14 = vadd.f32 %v871_v35, %v363_v12  ;;  %517 = vst.msk [vmem:[%s1121_s3 + $0x18] sm:$0xf] %vm510_vm0, %v467_v11  ;;  %v398_v15 = vpop.f32.mrf.mxu3 }
  0xd6   :  { %529 = vst.msk [vmem:[%s1121_s3 + $0x48] sm:$0xf] %vm510_vm0, %v479_v13  ;;  %v399_v16 = vadd.f32 %v871_v35, %v398_v15  ;;  %v305_v17 = vpop.f32.mrf.mxu0 }
  0xd7   :  { %v442_v18 = vmax.f32 %v364_v14, 0.0  ;;  %v306_v19 = vadd.f32 %v871_v35, %v305_v17  ;;  %v335_v20 = vpop.f32.mrf.mxu1 }
  0xd8   :  { %v456_v21 = vmax.f32 %v399_v16, 0.0  ;;  %v336_v22 = vadd.f32 %v871_v35, %v335_v20 }
  0xd9   :  { %v491_v23 = vpack.c.bf16 %v442_v18, %v442_v18  ;;  %v419_v24 = vmax.f32 %v306_v19, 0.0 }
  0xda   :  { %v505_v25 = vpack.c.bf16 %v456_v21, %v456_v21  ;;  %v431_v26 = vmax.f32 %v336_v22, 0.0 }
  0xdb   :  { %541 = vst.msk [vmem:[%s1121_s3 + $0x78] sm:$0xf] %vm510_vm0, %v491_v23  ;;  %v468_v27 = vpack.c.bf16 %v419_v24, %v419_v24 }
  0xdc   :  { %v365_v28 = vpop.f32.mrf.mxu2  ;;  %555 = vst.msk [vmem:[%s1121_s3 + $0xb0] sm:$0xf] %vm510_vm0, %v505_v25  ;;  %v480_v29 = vpack.c.bf16 %v431_v26, %v431_v26 }
  0xdd   :  { %v366_v30 = vadd.f32 %v871_v35, %v365_v28  ;;  %518 = vst.msk [vmem:[%s1121_s3 + $0x1c] sm:$0xf] %vm510_vm0, %v468_v27  ;;  %v400_v31 = vpop.f32.mrf.mxu3 }
  0xde   :  { %530 = vst.msk [vmem:[%s1121_s3 + $0x4c] sm:$0xf] %vm510_vm0, %v480_v29  ;;  %v401_v32 = vadd.f32 %v871_v35, %v400_v31  ;;  %v308_v33 = vpop.f32.mrf.mxu0 }
  0xdf   :  { %v443_v34 = vmax.f32 %v366_v30, 0.0  ;;  %v309_v36 = vadd.f32 %v871_v35, %v308_v33  ;;  %v338_v37 = vpop.f32.mrf.mxu1 }
  0xe0   :  { %v457_v38 = vmax.f32 %v401_v32, 0.0  ;;  %v339_v39 = vadd.f32 %v871_v35, %v338_v37 }
  0xe1   :  { %v492_v40 = vpack.c.bf16 %v443_v34, %v443_v34  ;;  %v420_v41 = vmax.f32 %v309_v36, 0.0 }
  0xe2   :  { %v506_v42 = vpack.c.bf16 %v457_v38, %v457_v38  ;;  %v432_v43 = vmax.f32 %v339_v39, 0.0 }
  0xe3   :  { %542 = vst.msk [vmem:[%s1121_s3 + $0x7c] sm:$0xf] %vm510_vm0, %v492_v40  ;;  %v469_v44 = vpack.c.bf16 %v420_v41, %v420_v41 }
  0xe4   :  { %v368_v45 = vpop.f32.mrf.mxu2  ;;  %556 = vst.msk [vmem:[%s1121_s3 + $0xb4] sm:$0xf] %vm510_vm0, %v506_v42  ;;  %v481_v46 = vpack.c.bf16 %v432_v43, %v432_v43 }
  0xe5   :  { %v369_v47 = vadd.f32 %v871_v35, %v368_v45  ;;  %519 = vst.msk [vmem:[%s1121_s3 + $0x20] sm:$0xf] %vm510_vm0, %v469_v44  ;;  %v403_v48 = vpop.f32.mrf.mxu3 }
  0xe6   :  { %531 = vst.msk [vmem:[%s1121_s3 + $0x50] sm:$0xf] %vm510_vm0, %v481_v46  ;;  %v404_v49 = vadd.f32 %v871_v35, %v403_v48  ;;  %v310_v50 = vpop.f32.mrf.mxu0 }
  0xe7   :  { %v444_v51 = vmax.f32 %v369_v47, 0.0  ;;  %v311_v52 = vadd.f32 %v871_v35, %v310_v50  ;;  %v340_v53 = vpop.f32.mrf.mxu1 }
  0xe8   :  { %v458_v54 = vmax.f32 %v404_v49, 0.0  ;;  %v341_v55 = vadd.f32 %v871_v35, %v340_v53 }
  0xe9   :  { %v493_v56 = vpack.c.bf16 %v444_v51, %v444_v51  ;;  %v421_v57 = vmax.f32 %v311_v52, 0.0 }
  0xea   :  { %v507_v58 = vpack.c.bf16 %v458_v54, %v458_v54  ;;  %v433_v59 = vmax.f32 %v341_v55, 0.0 }
  0xeb   :  { %543 = vst.msk [vmem:[%s1121_s3 + $0x80] sm:$0xf] %vm510_vm0, %v493_v56  ;;  %v470_v60 = vpack.c.bf16 %v421_v57, %v421_v57 }
  0xec   :  { %v370_v61 = vpop.f32.mrf.mxu2  ;;  %557 = vst.msk [vmem:[%s1121_s3 + $0xb8] sm:$0xf] %vm510_vm0, %v507_v58  ;;  %v482_v62 = vpack.c.bf16 %v433_v59, %v433_v59 }
  0xed   :  { %v371_v63 = vadd.f32 %v871_v35, %v370_v61  ;;  %520 = vst.msk [vmem:[%s1121_s3 + $0x24] sm:$0xf] %vm510_vm0, %v470_v60  ;;  %v405_v0 = vpop.f32.mrf.mxu3 }
  0xee   :  { %532 = vst.msk [vmem:[%s1121_s3 + $0x54] sm:$0xf] %vm510_vm0, %v482_v62  ;;  %v406_v1 = vadd.f32 %v871_v35, %v405_v0  ;;  %v313_v2 = vpop.f32.mrf.mxu0 }
  0xef   :  { %v445_v3 = vmax.f32 %v371_v63, 0.0  ;;  %v314_v4 = vadd.f32 %v871_v35, %v313_v2  ;;  %v343_v5 = vpop.f32.mrf.mxu1 }
  0xf0   :  { %v459_v6 = vmax.f32 %v406_v1, 0.0  ;;  %v344_v7 = vadd.f32 %v871_v35, %v343_v5 }
  0xf1   :  { %v494_v8 = vpack.c.bf16 %v445_v3, %v445_v3  ;;  %v422_v9 = vmax.f32 %v314_v4, 0.0 }
  0xf2   :  { %v508_v10 = vpack.c.bf16 %v459_v6, %v459_v6  ;;  %v434_v11 = vmax.f32 %v344_v7, 0.0 }
  0xf3   :  { %544 = vst.msk [vmem:[%s1121_s3 + $0x84] sm:$0xf] %vm510_vm0, %v494_v8  ;;  %v471_v12 = vpack.c.bf16 %v422_v9, %v422_v9 }
  0xf4   :  { %v373_v13 = vpop.f32.mrf.mxu2  ;;  %558 = vst.msk [vmem:[%s1121_s3 + $0xbc] sm:$0xf] %vm510_vm0, %v508_v10  ;;  %v483_v14 = vpack.c.bf16 %v434_v11, %v434_v11 }
  0xf5   :  { %v374_v15 = vadd.f32 %v871_v35, %v373_v13  ;;  %521 = vst.msk [vmem:[%s1121_s3 + $0x28] sm:$0xf] %vm510_vm0, %v471_v12  ;;  %v408_v16 = vpop.f32.mrf.mxu3 }
  0xf6   :  { %533 = vst.msk [vmem:[%s1121_s3 + $0x58] sm:$0xf] %vm510_vm0, %v483_v14  ;;  %v409_v17 = vadd.f32 %v871_v35, %v408_v16  ;;  %v315_v18 = vpop.f32.mrf.mxu0 }
  0xf7   :  { %v446_v19 = vmax.f32 %v374_v15, 0.0  ;;  %v316_v20 = vadd.f32 %v871_v35, %v315_v18  ;;  %v345_v21 = vpop.f32.mrf.mxu1 }
  0xf8   :  { %v460_v22 = vmax.f32 %v409_v17, 0.0  ;;  %v346_v23 = vadd.f32 %v871_v35, %v345_v21 }
  0xf9   :  { %v495_v24 = vpack.c.bf16 %v446_v19, %v446_v19  ;;  %v423_v25 = vmax.f32 %v316_v20, 0.0 }
  0xfa   :  { %v509_v26 = vpack.c.bf16 %v460_v22, %v460_v22  ;;  %v435_v27 = vmax.f32 %v346_v23, 0.0 }
  0xfb   :  { %545 = vst.msk [vmem:[%s1121_s3 + $0x88] sm:$0xf] %vm510_vm0, %v495_v24  ;;  %v472_v28 = vpack.c.bf16 %v423_v25, %v423_v25 }
  0xfc   :  { %v375_v29 = vpop.f32.mrf.mxu2  ;;  %559 = vst.msk [vmem:[%s1121_s3 + $0xc0] sm:$0xf] %vm510_vm0, %v509_v26  ;;  %v484_v30 = vpack.c.bf16 %v435_v27, %v435_v27 }
  0xfd   :  { %v376_v31 = vadd.f32 %v871_v35, %v375_v29  ;;  %522 = vst.msk [vmem:[%s1121_s3 + $0x2c] sm:$0xf] %vm510_vm0, %v472_v28  ;;  %v410_v32 = vpop.f32.mrf.mxu3 }
  0xfe   :  { %534 = vst.msk [vmem:[%s1121_s3 + $0x5c] sm:$0xf] %vm510_vm0, %v484_v30 }
  0xff   :  { %v447_v33 = vmax.f32 %v376_v31, 0.0 }
 0x101   :  { %v496_v34 = vpack.c.bf16 %v447_v33, %v447_v33 }
 0x103   :  { %546 = vst.msk [vmem:[%s1121_s3 + $0x8c] sm:$0xf] %vm510_vm0, %v496_v34 }
 0x104   :  { %v378_v36 = vpop.f32.mrf.mxu2 }
 0x105   :  { %v379_v37 = vadd.f32 %v871_v35, %v378_v36 }
 0x107   :  { %v448_v38 = vmax.f32 %v379_v37, 0.0 }
 0x109   :  { %v497_v39 = vpack.c.bf16 %v448_v38, %v448_v38 }
 0x10b   :  { %547 = vst.msk [vmem:[%s1121_s3 + $0x90] sm:$0xf] %vm510_vm0, %v497_v39 }
 0x10c   :  { %v380_v40 = vpop.f32.mrf.mxu2 }
 0x10d   :  { %v381_v41 = vadd.f32 %v871_v35, %v380_v40 }
 0x10f   :  { %v449_v42 = vmax.f32 %v381_v41, 0.0 }
 0x111   :  { %v498_v43 = vpack.c.bf16 %v449_v42, %v449_v42 }
 0x113   :  { %548 = vst.msk [vmem:[%s1121_s3 + $0x94] sm:$0xf] %vm510_vm0, %v498_v43 }

// kernel: big_model_forward.5
= control target key start
LH: loop header
LB: loop body
LE: loop exit
PB: predicated region body
PF: predicated region fallthrough
CT: control target
= control target key end

     0   :  { %vm5133_vm0 = vcmask 261120   ;;  %s9503_s1 = inlined_call_operand.vmem [shape: bf16[8192,33], index: 1, kind: input, shape index: {}]   ;;  %s9504_s0 = inlined_call_operand.vmem [shape: bf16[2,8192], index: 0, kind: input, shape index: {}]   ;;  %s9505_s2 = inlined_call_operand.vmem [shape: f32[1,33], index: 2, kind: input, shape index: {}]   ;;  %s9506_s3 = inlined_call_operand.vmem [shape: bf16[32,32], index: 3, kind: input, shape index: {}]   ;;  %s9507_s4 = inlined_call_operand.vmem [shape: f32[1,32], index: 4, kind: input, shape index: {}]   ;;  %s9508_s6 = inlined_call_operand.vmem [shape: f32[1,128], index: 6, kind: input, shape index: {}]   ;;  %s9509_s5 = inlined_call_operand.vmem [shape: bf16[32,128], index: 5, kind: input, shape index: {}]   ;;  %s9510_s7 = inlined_call_operand.vmem [shape: f32[2,128], index: 7, kind: output, shape index: {}]  }
   0x1   :  { %v7278_v0 = vld [vmem:[%s9503_s1 + $0x38] sm:$0xff]  ;;  %v7277_v4 = vld [vmem:[%s9503_s1 + $0x30] sm:$0xff]  ;;  %v7276_v8 = vld [vmem:[%s9503_s1 + $0x28] sm:$0xff] }
   0x2   :  { %v7286_v1 = vld [vmem:[%s9503_s1 + $0x78] sm:$0xff]  ;;  %4279 = vmatpush.bf16.msra.mxu0 %v7278_v0  ;;  %v7285_v5 = vld [vmem:[%s9503_s1 + $0x70] sm:$0xff]  ;;  %v7284_v9 = vld [vmem:[%s9503_s1 + $0x68] sm:$0xff] }
   0x3   :  { %v7294_v2 = vld [vmem:[%s9503_s1 + $0xb8] sm:$0xff]  ;;  %4292 = vmatpush.bf16.msra.mxu1 %v7286_v1  ;;  %v7293_v6 = vld [vmem:[%s9503_s1 + $0xb0] sm:$0xff]  ;;  %v7292_v10 = vld [vmem:[%s9503_s1 + $0xa8] sm:$0xff] }
   0x4   :  { %v7302_v3 = vld [vmem:[%s9503_s1 + $0xf8] sm:$0xff]  ;;  %4305 = vmatpush.bf16.msra.mxu2 %v7294_v2  ;;  %v7301_v7 = vld [vmem:[%s9503_s1 + $0xf0] sm:$0xff]  ;;  %v7300_v11 = vld [vmem:[%s9503_s1 + $0xe8] sm:$0xff] }
   0x5   :  { %4318 = vmatpush.bf16.msra.mxu3 %v7302_v3  ;;  %v7275_v12 = vld [vmem:[%s9503_s1 + $0x20] sm:$0xff]  ;;  %v7274_v16 = vld [vmem:[%s9503_s1 + $0x18] sm:$0xff]  ;;  %v7273_v21 = vld [vmem:[%s9503_s1 + $0x10] sm:$0xff] }
   0x6   :  { %4280 = vmatpush.bf16.msra.mxu0 %v7277_v4  ;;  %v7283_v13 = vld [vmem:[%s9503_s1 + $0x60] sm:$0xff]  ;;  %v7282_v17 = vld [vmem:[%s9503_s1 + $0x58] sm:$0xff]  ;;  %v7281_v22 = vld [vmem:[%s9503_s1 + $0x50] sm:$0xff] }
   0x7   :  { %4293 = vmatpush.bf16.msra.mxu1 %v7285_v5  ;;  %v7291_v14 = vld [vmem:[%s9503_s1 + $0xa0] sm:$0xff]  ;;  %v7290_v18 = vld [vmem:[%s9503_s1 + $0x98] sm:$0xff]  ;;  %v7289_v23 = vld [vmem:[%s9503_s1 + $0x90] sm:$0xff] }
   0x8   :  { %4306 = vmatpush.bf16.msra.mxu2 %v7293_v6  ;;  %v7299_v15 = vld [vmem:[%s9503_s1 + $0xe0] sm:$0xff]  ;;  %v7298_v19 = vld [vmem:[%s9503_s1 + $0xd8] sm:$0xff]  ;;  %v7297_v24 = vld [vmem:[%s9503_s1 + $0xd0] sm:$0xff] }
   0x9   :  { %4319 = vmatpush.bf16.msra.mxu3 %v7301_v7  ;;  %v27_v20 = vld [vmem:[%s9504_s0] sm:$0xff]  ;;  %v7272_v25 = vld [vmem:[%s9503_s1 + $0x8] sm:$0xff]  ;;  %v7310_v33 = vld [vmem:[%s9503_s1 + $0x138] sm:$0xff] }
   0xa   :  { %4281 = vmatpush.bf16.msra.mxu0 %v7276_v8  ;;  %1064 = vst [vmem:[#allocation1] ss:$9 sm:$0xff] %v27_v20  ;;  %v7280_v26 = vld [vmem:[%s9503_s1 + $0x48] sm:$0xff]  ;;  %v7271_v29 = vld [vmem:[%s9503_s1] sm:$0xff]  ;;  %v7318_v34 = vld [vmem:[%s9503_s1 + $0x178] sm:$0xff] }
   0xb   :  { %4294 = vmatpush.bf16.msra.mxu1 %v7284_v9  ;;  %v7288_v27 = vld [vmem:[%s9503_s1 + $0x88] sm:$0xff]  ;;  %v7279_v30 = vld [vmem:[%s9503_s1 + $0x40] sm:$0xff]  ;;  %v7326_v35 = vld [vmem:[%s9503_s1 + $0x1b8] sm:$0xff] }
   0xc   :  { %4307 = vmatpush.bf16.msra.mxu2 %v7292_v10  ;;  %v7296_v28 = vld [vmem:[%s9503_s1 + $0xc8] sm:$0xff]  ;;  %v7287_v31 = vld [vmem:[%s9503_s1 + $0x80] sm:$0xff]  ;;  %v7334_v36 = vld [vmem:[%s9503_s1 + $0x1f8] sm:$0xff] }
   0xd   :  { %4320 = vmatpush.bf16.msra.mxu3 %v7300_v11  ;;  %v7295_v32 = vld [vmem:[%s9503_s1 + $0xc0] sm:$0xff]  ;;  %v7309_v37 = vld [vmem:[%s9503_s1 + $0x130] sm:$0xff]  ;;  %v7308_v45 = vld [vmem:[%s9503_s1 + $0x128] sm:$0xff] }
   0xe   :  { %4282 = vmatpush.bf16.msra.mxu0 %v7275_v12  ;;  %v7317_v40 = vld [vmem:[%s9503_s1 + $0x170] sm:$0xff]  ;;  %v7316_v46 = vld [vmem:[%s9503_s1 + $0x168] sm:$0xff]  ;;  %v7307_v49 = vld [vmem:[%s9503_s1 + $0x120] sm:$0xff] }
   0xf   :  { %4295 = vmatpush.bf16.msra.mxu1 %v7283_v13  ;;  %v7325_v43 = vld [vmem:[%s9503_s1 + $0x1b0] sm:$0xff]  ;;  %v7324_v47 = vld [vmem:[%s9503_s1 + $0x1a8] sm:$0xff]  ;;  %v7315_v50 = vld [vmem:[%s9503_s1 + $0x160] sm:$0xff] }
  0x10   :  { %4308 = vmatpush.bf16.msra.mxu2 %v7291_v14  ;;  %v7333_v44 = vld [vmem:[%s9503_s1 + $0x1f0] sm:$0xff]  ;;  %v7332_v48 = vld [vmem:[%s9503_s1 + $0x1e8] sm:$0xff]  ;;  %v7323_v56 = vld [vmem:[%s9503_s1 + $0x1a0] sm:$0xff] }
  0x11   :  { %4321 = vmatpush.bf16.msra.mxu3 %v7299_v15  ;;  %v1067_v38 = vld [vmem:[#allocation1 + $0x12] sm:$0xff]  ;;  %v1065_v39 = vld [vmem:[#allocation1] sm:$0xff]  ;;  %v1066_v42 = vld [vmem:[#allocation1 + $0x9] sm:$0xff] }
  0x12   :  { %4283 = vmatpush.bf16.msra.mxu0 %v7274_v16  ;;  %v1068_v41 = vld [vmem:[#allocation1 + $0x1b] sm:$0xff]  ;;  %v28_v52 = vld [vmem:[%s9504_s0 + $0x8] sm:$0xff]  ;;  %v7305_v62 = vld [vmem:[%s9503_s1 + $0x110] sm:$0xff] }
  0x13   :  { %4296 = vmatpush.bf16.msra.mxu1 %v7282_v17  ;;  %v1071_v51 = vld [vmem:[#allocation1 + $0x36] sm:$0xff]  ;;  %v1069_v53 = vld [vmem:[#allocation1 + $0x24] sm:$0xff]  ;;  %v1070_v55 = vld [vmem:[#allocation1 + $0x2d] sm:$0xff] }
  0x14   :  { %4309 = vmatpush.bf16.msra.mxu2 %v7290_v18  ;;  %v1072_v54 = vld [vmem:[#allocation1 + $0x3f] sm:$0xff]  ;;  %v7313_v63 = vld [vmem:[%s9503_s1 + $0x150] sm:$0xff]  ;;  %v7304_v2 = vld [vmem:[%s9503_s1 + $0x108] sm:$0xff] }
  0x15   :  { %4322 = vmatpush.bf16.msra.mxu3 %v7298_v19  ;;  %v7331_v57 = vld [vmem:[%s9503_s1 + $0x1e0] sm:$0xff]  ;;  %1074 = vst [vmem:[#allocation1] ss:$9 sm:$0xff] %v28_v52  ;;  %v7306_v58 = vld [vmem:[%s9503_s1 + $0x118] sm:$0xff]  ;;  %v7321_v0 = vld [vmem:[%s9503_s1 + $0x190] sm:$0xff] }
  0x16   :  { %4284 = vmatpush.bf16.msra.mxu0 %v7273_v21  ;;  %v7314_v59 = vld [vmem:[%s9503_s1 + $0x158] sm:$0xff]  ;;  %v7329_v1 = vld [vmem:[%s9503_s1 + $0x1d0] sm:$0xff]  ;;  %v7312_v3 = vld [vmem:[%s9503_s1 + $0x148] sm:$0xff] }
  0x17   :  { %4297 = vmatpush.bf16.msra.mxu1 %v7281_v22  ;;  %v7322_v60 = vld [vmem:[%s9503_s1 + $0x198] sm:$0xff]  ;;  %v7320_v4 = vld [vmem:[%s9503_s1 + $0x188] sm:$0xff]  ;;  %v7303_v6 = vld [vmem:[%s9503_s1 + $0x100] sm:$0xff] }
  0x18   :  { %4310 = vmatpush.bf16.msra.mxu2 %v7289_v23  ;;  %v7330_v61 = vld [vmem:[%s9503_s1 + $0x1d8] sm:$0xff]  ;;  %v7328_v5 = vld [vmem:[%s9503_s1 + $0x1c8] sm:$0xff]  ;;  %v7311_v7 = vld [vmem:[%s9503_s1 + $0x140] sm:$0xff] }
  0x19   :  { %4323 = vmatpush.bf16.msra.mxu3 %v7297_v24  ;;  %v7319_v8 = vld [vmem:[%s9503_s1 + $0x180] sm:$0xff]  ;;  %v7342_v10 = vld [vmem:[%s9503_s1 + $0x238] sm:$0xff]  ;;  %v7341_v14 = vld [vmem:[%s9503_s1 + $0x230] sm:$0xff] }
  0x1a   :  { %4285 = vmatpush.bf16.msra.mxu0 %v7272_v25  ;;  %v7327_v9 = vld [vmem:[%s9503_s1 + $0x1c0] sm:$0xff]  ;;  %v7350_v11 = vld [vmem:[%s9503_s1 + $0x278] sm:$0xff]  ;;  %v7349_v15 = vld [vmem:[%s9503_s1 + $0x270] sm:$0xff] }
  0x1b   :  { %4298 = vmatpush.bf16.msra.mxu1 %v7280_v26  ;;  %v7358_v12 = vld [vmem:[%s9503_s1 + $0x2b8] sm:$0xff]  ;;  %v7357_v16 = vld [vmem:[%s9503_s1 + $0x2b0] sm:$0xff]  ;;  %v7340_v18 = vld [vmem:[%s9503_s1 + $0x228] sm:$0xff] }
  0x1c   :  { %4311 = vmatpush.bf16.msra.mxu2 %v7288_v27  ;;  %v7366_v13 = vld [vmem:[%s9503_s1 + $0x2f8] sm:$0xff]  ;;  %v7365_v17 = vld [vmem:[%s9503_s1 + $0x2f0] sm:$0xff]  ;;  %v7348_v19 = vld [vmem:[%s9503_s1 + $0x268] sm:$0xff] }
  0x1d   :  { %4324 = vmatpush.bf16.msra.mxu3 %v7296_v28  ;;  %v7356_v20 = vld [vmem:[%s9503_s1 + $0x2a8] sm:$0xff]  ;;  %v7339_v22 = vld [vmem:[%s9503_s1 + $0x220] sm:$0xff]  ;;  %v7338_v26 = vld [vmem:[%s9503_s1 + $0x218] sm:$0xff] }
  0x1e   :  { %4286 = vmatpush.bf16.msra.mxu0 %v7271_v29  ;;  %v7364_v21 = vld [vmem:[%s9503_s1 + $0x2e8] sm:$0xff]  ;;  %v7347_v23 = vld [vmem:[%s9503_s1 + $0x260] sm:$0xff]  ;;  %v7346_v27 = vld [vmem:[%s9503_s1 + $0x258] sm:$0xff] }
  0x1f   :  { %4299 = vmatpush.bf16.msra.mxu1 %v7279_v30  ;;  %v7355_v24 = vld [vmem:[%s9503_s1 + $0x2a0] sm:$0xff]  ;;  %v7354_v28 = vld [vmem:[%s9503_s1 + $0x298] sm:$0xff]  ;;  %v7337_v30 = vld [vmem:[%s9503_s1 + $0x210] sm:$0xff] }
  0x20   :  { %4312 = vmatpush.bf16.msra.mxu2 %v7287_v31  ;;  %v7363_v25 = vld [vmem:[%s9503_s1 + $0x2e0] sm:$0xff]  ;;  %v7362_v29 = vld [vmem:[%s9503_s1 + $0x2d8] sm:$0xff]  ;;  %v7345_v31 = vld [vmem:[%s9503_s1 + $0x250] sm:$0xff] }
  0x21   :  { %4325 = vmatpush.bf16.msra.mxu3 %v7295_v32  ;;  %4287 = vmatmul.bf16.vlgmr.msra.gmra.mxu0 %v1065_v39  ;;  %v7353_v32 = vld [vmem:[%s9503_s1 + $0x290] sm:$0xff]  ;;  %v7343_v39 = vld [vmem:[%s9503_s1 + $0x240] sm:$0xff] }
  0x22   :  { %4331 = vmatpush.bf16.msrb.mxu0 %v7310_v33  ;;  %4300 = vmatmul.bf16.vlgmr.msra.gmra.mxu1 %v1066_v42  ;;  %v7361_v33 = vld [vmem:[%s9503_s1 + $0x2d0] sm:$0xff]  ;;  %v7374_v42 = vld [vmem:[%s9503_s1 + $0x338] sm:$0xff] }
  0x23   :  { %4344 = vmatpush.bf16.msrb.mxu1 %v7318_v34  ;;  %4313 = vmatmul.bf16.vlgmr.msra.gmra.mxu2 %v1067_v38  ;;  %v7336_v34 = vld [vmem:[%s9503_s1 + $0x208] sm:$0xff]  ;;  %v7335_v38 = vld [vmem:[%s9503_s1 + $0x200] sm:$0xff]  ;;  %v7381_v52 = vld [vmem:[%s9503_s1 + $0x370] sm:$0xff] }
  0x24   :  { %4357 = vmatpush.bf16.msrb.mxu2 %v7326_v35  ;;  %4326 = vmatmul.bf16.vlgmr.msra.gmra.mxu3 %v1068_v41  ;;  %v7344_v35 = vld [vmem:[%s9503_s1 + $0x248] sm:$0xff]  ;;  %v7359_v41 = vld [vmem:[%s9503_s1 + $0x2c0] sm:$0xff] }
  0x25   :  { %4370 = vmatpush.bf16.msrb.mxu3 %v7334_v36  ;;  %v7352_v36 = vld [vmem:[%s9503_s1 + $0x288] sm:$0xff] }
  0x26   :  { %4332 = vmatpush.bf16.msrb.mxu0 %v7309_v37  ;;  %v7360_v37 = vld [vmem:[%s9503_s1 + $0x2c8] sm:$0xff] }
  0x27   :  { %4345 = vmatpush.bf16.msrb.mxu1 %v7317_v40  ;;  %v7351_v40 = vld [vmem:[%s9503_s1 + $0x280] sm:$0xff] }
  0x28   :  { %4358 = vmatpush.bf16.msrb.mxu2 %v7325_v43  ;;  %v7382_v43 = vld [vmem:[%s9503_s1 + $0x378] sm:$0xff] }
  0x29   :  { %4371 = vmatpush.bf16.msrb.mxu3 %v7333_v44  ;;  %v29_v44 = vld [vmem:[%s9504_s0 + $0x10] sm:$0xff] }
  0x2a   :  { %4333 = vmatpush.bf16.msrb.mxu0 %v7308_v45  ;;  %v7390_v45 = vld [vmem:[%s9503_s1 + $0x3b8] sm:$0xff] }
  0x2b   :  { %4346 = vmatpush.bf16.msrb.mxu1 %v7316_v46  ;;  %v7398_v46 = vld [vmem:[%s9503_s1 + $0x3f8] sm:$0xff] }
  0x2c   :  { %4359 = vmatpush.bf16.msrb.mxu2 %v7324_v47  ;;  %v1075_v47 = vld [vmem:[#allocation1] sm:$0xff] }
  0x2d   :  { %4372 = vmatpush.bf16.msrb.mxu3 %v7332_v48  ;;  %v1077_v48 = vld [vmem:[#allocation1 + $0x12] sm:$0xff] }
  0x2e   :  { %4334 = vmatpush.bf16.msrb.mxu0 %v7307_v49  ;;  %v1076_v49 = vld [vmem:[#allocation1 + $0x9] sm:$0xff] }
  0x2f   :  { %4347 = vmatpush.bf16.msrb.mxu1 %v7315_v50  ;;  %v1078_v50 = vld [vmem:[#allocation1 + $0x1b] sm:$0xff] }
  0x30   :  { %4360 = vmatpush.bf16.msrb.mxu2 %v7323_v56  ;;  %v8156_v56 = vld [vmem:[#allocation1 + $0x36] sm:$0xff] }
  0x31   :  { %4373 = vmatpush.bf16.msrb.mxu3 %v7331_v57  ;;  %v8158_v57 = vld [vmem:[#allocation1 + $0x2d] sm:$0xff] }
  0x32   :  { %4335 = vmatpush.bf16.msrb.mxu0 %v7306_v58  ;;  %v8160_v58 = vld [vmem:[#allocation1 + $0x3f] sm:$0xff] }
  0x33   :  { %4348 = vmatpush.bf16.msrb.mxu1 %v7314_v59  ;;  %v7372_v59 = vld [vmem:[%s9503_s1 + $0x328] sm:$0xff] }
  0x34   :  { %4361 = vmatpush.bf16.msrb.mxu2 %v7322_v60  ;;  %v7380_v60 = vld [vmem:[%s9503_s1 + $0x368] sm:$0xff] }
  0x35   :  { %4374 = vmatpush.bf16.msrb.mxu3 %v7330_v61  ;;  %v7388_v61 = vld [vmem:[%s9503_s1 + $0x3a8] sm:$0xff] }
  0x36   :  { %4336 = vmatpush.bf16.msrb.mxu0 %v7305_v62  ;;  %v7396_v62 = vld [vmem:[%s9503_s1 + $0x3e8] sm:$0xff] }
  0x37   :  { %4349 = vmatpush.bf16.msrb.mxu1 %v7313_v63  ;;  %v7371_v63 = vld [vmem:[%s9503_s1 + $0x320] sm:$0xff] }
  0x38   :  { %4362 = vmatpush.bf16.msrb.mxu2 %v7321_v0  ;;  %v7379_v0 = vld [vmem:[%s9503_s1 + $0x360] sm:$0xff] }
  0x39   :  { %4375 = vmatpush.bf16.msrb.mxu3 %v7329_v1  ;;  %v7387_v1 = vld [vmem:[%s9503_s1 + $0x3a0] sm:$0xff] }
  0x3a   :  { %4337 = vmatpush.bf16.msrb.mxu0 %v7304_v2  ;;  %v7395_v2 = vld [vmem:[%s9503_s1 + $0x3e0] sm:$0xff] }
  0x3b   :  { %4350 = vmatpush.bf16.msrb.mxu1 %v7312_v3  ;;  %v7370_v3 = vld [vmem:[%s9503_s1 + $0x318] sm:$0xff] }
  0x3c   :  { %4363 = vmatpush.bf16.msrb.mxu2 %v7320_v4  ;;  %v7378_v4 = vld [vmem:[%s9503_s1 + $0x358] sm:$0xff] }
  0x3d   :  { %4376 = vmatpush.bf16.msrb.mxu3 %v7328_v5  ;;  %v7386_v5 = vld [vmem:[%s9503_s1 + $0x398] sm:$0xff] }
  0x3e   :  { %4338 = vmatpush.bf16.msrb.mxu0 %v7303_v6  ;;  %v7394_v6 = vld [vmem:[%s9503_s1 + $0x3d8] sm:$0xff] }
  0x3f   :  { %4351 = vmatpush.bf16.msrb.mxu1 %v7311_v7  ;;  %v7369_v7 = vld [vmem:[%s9503_s1 + $0x310] sm:$0xff] }
  0x40   :  { %4364 = vmatpush.bf16.msrb.mxu2 %v7319_v8  ;;  %v7377_v8 = vld [vmem:[%s9503_s1 + $0x350] sm:$0xff] }
  0x41   :  { %4377 = vmatpush.bf16.msrb.mxu3 %v7327_v9  ;;  %4339 = vmatmul.bf16.vlgmr.msrb.gmra.mxu0 %v1069_v53  ;;  %v7389_v53 = vld [vmem:[%s9503_s1 + $0x3b0] sm:$0xff] }
  0x42   :  { %4383 = vmatpush.bf16.msra.mxu0 %v7342_v10  ;;  %4352 = vmatmul.bf16.vlgmr.msrb.gmra.mxu1 %v1070_v55  ;;  %v8154_v55 = vld [vmem:[#allocation1 + $0x24] sm:$0xff]  ;;  %v7385_v9 = vld [vmem:[%s9503_s1 + $0x390] sm:$0xff] }
  0x43   :  { %4396 = vmatpush.bf16.msra.mxu1 %v7350_v11  ;;  %4365 = vmatmul.bf16.vlgmr.msrb.gmra.mxu2 %v1071_v51  ;;  %v7373_v51 = vld [vmem:[%s9503_s1 + $0x330] sm:$0xff]  ;;  %1084 = vst [vmem:[#allocation1] ss:$9 sm:$0xff] %v29_v44  ;;  %v7368_v11 = vld [vmem:[%s9503_s1 + $0x308] sm:$0xff] }
  0x44   :  { %4409 = vmatpush.bf16.msra.mxu2 %v7358_v12  ;;  %4378 = vmatmul.bf16.vlgmr.msrb.gmra.mxu3 %v1072_v54  ;;  %v7397_v54 = vld [vmem:[%s9503_s1 + $0x3f0] sm:$0xff]  ;;  %v7376_v12 = vld [vmem:[%s9503_s1 + $0x348] sm:$0xff] }
  0x45   :  { %4422 = vmatpush.bf16.msra.mxu3 %v7366_v13  ;;  %v7393_v10 = vld [vmem:[%s9503_s1 + $0x3d0] sm:$0xff]  ;;  %v7384_v13 = vld [vmem:[%s9503_s1 + $0x388] sm:$0xff] }
  0x46   :  { %4384 = vmatpush.bf16.msra.mxu0 %v7341_v14  ;;  %v7392_v14 = vld [vmem:[%s9503_s1 + $0x3c8] sm:$0xff] }
  0x47   :  { %4397 = vmatpush.bf16.msra.mxu1 %v7349_v15  ;;  %v7367_v15 = vld [vmem:[%s9503_s1 + $0x300] sm:$0xff]  ;;  %v7408_v44 = vld [vmem:[%s9503_s1 + $0x448] sm:$0xff] }
  0x48   :  { %4410 = vmatpush.bf16.msra.mxu2 %v7357_v16  ;;  %v7375_v16 = vld [vmem:[%s9503_s1 + $0x340] sm:$0xff] }
  0x49   :  { %4423 = vmatpush.bf16.msra.mxu3 %v7365_v17  ;;  %v7383_v17 = vld [vmem:[%s9503_s1 + $0x380] sm:$0xff] }
  0x4a   :  { %4385 = vmatpush.bf16.msra.mxu0 %v7340_v18  ;;  %v7391_v18 = vld [vmem:[%s9503_s1 + $0x3c0] sm:$0xff] }
  0x4b   :  { %4398 = vmatpush.bf16.msra.mxu1 %v7348_v19  ;;  %v7406_v19 = vld [vmem:[%s9503_s1 + $0x438] sm:$0xff] }
  0x4c   :  { %4411 = vmatpush.bf16.msra.mxu2 %v7356_v20  ;;  %v7414_v20 = vld [vmem:[%s9503_s1 + $0x478] sm:$0xff] }
  0x4d   :  { %4424 = vmatpush.bf16.msra.mxu3 %v7364_v21  ;;  %v7422_v21 = vld [vmem:[%s9503_s1 + $0x4b8] sm:$0xff] }
  0x4e   :  { %4386 = vmatpush.bf16.msra.mxu0 %v7339_v22  ;;  %v7430_v22 = vld [vmem:[%s9503_s1 + $0x4f8] sm:$0xff] }
  0x4f   :  { %4399 = vmatpush.bf16.msra.mxu1 %v7347_v23  ;;  %v7405_v23 = vld [vmem:[%s9503_s1 + $0x430] sm:$0xff] }
  0x50   :  { %4412 = vmatpush.bf16.msra.mxu2 %v7355_v24  ;;  %v7413_v24 = vld [vmem:[%s9503_s1 + $0x470] sm:$0xff] }
  0x51   :  { %4425 = vmatpush.bf16.msra.mxu3 %v7363_v25  ;;  %v7421_v25 = vld [vmem:[%s9503_s1 + $0x4b0] sm:$0xff] }
  0x52   :  { %4387 = vmatpush.bf16.msra.mxu0 %v7338_v26  ;;  %v7429_v26 = vld [vmem:[%s9503_s1 + $0x4f0] sm:$0xff] }
  0x53   :  { %4400 = vmatpush.bf16.msra.mxu1 %v7346_v27  ;;  %v7404_v27 = vld [vmem:[%s9503_s1 + $0x428] sm:$0xff] }
  0x54   :  { %4413 = vmatpush.bf16.msra.mxu2 %v7354_v28  ;;  %v7412_v28 = vld [vmem:[%s9503_s1 + $0x468] sm:$0xff] }
  0x55   :  { %4426 = vmatpush.bf16.msra.mxu3 %v7362_v29  ;;  %v7420_v29 = vld [vmem:[%s9503_s1 + $0x4a8] sm:$0xff] }
  0x56   :  { %4388 = vmatpush.bf16.msra.mxu0 %v7337_v30  ;;  %v7428_v30 = vld [vmem:[%s9503_s1 + $0x4e8] sm:$0xff] }
  0x57   :  { %4401 = vmatpush.bf16.msra.mxu1 %v7345_v31  ;;  %v7403_v31 = vld [vmem:[%s9503_s1 + $0x420] sm:$0xff] }
  0x58   :  { %4414 = vmatpush.bf16.msra.mxu2 %v7353_v32  ;;  %v7411_v32 = vld [vmem:[%s9503_s1 + $0x460] sm:$0xff] }
  0x59   :  { %4427 = vmatpush.bf16.msra.mxu3 %v7361_v33  ;;  %v7419_v33 = vld [vmem:[%s9503_s1 + $0x4a0] sm:$0xff] }
  0x5a   :  { %4389 = vmatpush.bf16.msra.mxu0 %v7336_v34  ;;  %v7427_v34 = vld [vmem:[%s9503_s1 + $0x4e0] sm:$0xff] }
  0x5b   :  { %4402 = vmatpush.bf16.msra.mxu1 %v7344_v35  ;;  %v7402_v35 = vld [vmem:[%s9503_s1 + $0x418] sm:$0xff] }
  0x5c   :  { %4415 = vmatpush.bf16.msra.mxu2 %v7352_v36  ;;  %v7410_v36 = vld [vmem:[%s9503_s1 + $0x458] sm:$0xff] }
  0x5d   :  { %4428 = vmatpush.bf16.msra.mxu3 %v7360_v37  ;;  %v7418_v37 = vld [vmem:[%s9503_s1 + $0x498] sm:$0xff] }
  0x5e   :  { %4390 = vmatpush.bf16.msra.mxu0 %v7335_v38  ;;  %v7426_v38 = vld [vmem:[%s9503_s1 + $0x4d8] sm:$0xff] }
  0x5f   :  { %4403 = vmatpush.bf16.msra.mxu1 %v7343_v39  ;;  %v7401_v39 = vld [vmem:[%s9503_s1 + $0x410] sm:$0xff] }
  0x60   :  { %4416 = vmatpush.bf16.msra.mxu2 %v7351_v40  ;;  %v7409_v40 = vld [vmem:[%s9503_s1 + $0x450] sm:$0xff] }
  0x61   :  { %4429 = vmatpush.bf16.msra.mxu3 %v7359_v41  ;;  %4391 = vmatmul.bf16.vlgmr.msra.gmra.mxu0 %v1075_v47  ;;  %v7417_v41 = vld [vmem:[%s9503_s1 + $0x490] sm:$0xff]  ;;  %v7399_v47 = vld [vmem:[%s9503_s1 + $0x400] sm:$0xff] }
  0x62   :  { %4435 = vmatpush.bf16.msrb.mxu0 %v7374_v42  ;;  %4404 = vmatmul.bf16.vlgmr.msra.gmra.mxu1 %v1076_v49  ;;  %v7425_v42 = vld [vmem:[%s9503_s1 + $0x4d0] sm:$0xff]  ;;  %v7415_v49 = vld [vmem:[%s9503_s1 + $0x480] sm:$0xff] }
  0x63   :  { %4448 = vmatpush.bf16.msrb.mxu1 %v7382_v43  ;;  %4417 = vmatmul.bf16.vlgmr.msra.gmra.mxu2 %v1077_v48  ;;  %v7400_v43 = vld [vmem:[%s9503_s1 + $0x408] sm:$0xff]  ;;  %v7407_v48 = vld [vmem:[%s9503_s1 + $0x440] sm:$0xff] }
  0x64   :  { %4461 = vmatpush.bf16.msrb.mxu2 %v7390_v45  ;;  %4430 = vmatmul.bf16.vlgmr.msra.gmra.mxu3 %v1078_v50  ;;  %v7416_v45 = vld [vmem:[%s9503_s1 + $0x488] sm:$0xff]  ;;  %v7423_v50 = vld [vmem:[%s9503_s1 + $0x4c0] sm:$0xff] }
  0x65   :  { %4474 = vmatpush.bf16.msrb.mxu3 %v7398_v46  ;;  %v7424_v46 = vld [vmem:[%s9503_s1 + $0x4c8] sm:$0xff] }
  0x66   :  { %4436 = vmatpush.bf16.msrb.mxu0 %v7373_v51  ;;  %v7438_v51 = vld [vmem:[%s9503_s1 + $0x538] sm:$0xff] }
  0x67   :  { %4449 = vmatpush.bf16.msrb.mxu1 %v7381_v52  ;;  %v7446_v52 = vld [vmem:[%s9503_s1 + $0x578] sm:$0xff] }
  0x68   :  { %4462 = vmatpush.bf16.msrb.mxu2 %v7389_v53  ;;  %v30_v53 = vld [vmem:[%s9504_s0 + $0x18] sm:$0xff] }
  0x69   :  { %4475 = vmatpush.bf16.msrb.mxu3 %v7397_v54  ;;  %v7454_v54 = vld [vmem:[%s9503_s1 + $0x5b8] sm:$0xff] }
  0x6a   :  { %4437 = vmatpush.bf16.msrb.mxu0 %v7372_v59  ;;  %v1088_v59 = vld [vmem:[#allocation1 + $0x1b] sm:$0xff] }
  0x6b   :  { %4450 = vmatpush.bf16.msrb.mxu1 %v7380_v60  ;;  %v7437_v60 = vld [vmem:[%s9503_s1 + $0x530] sm:$0xff] }
  0x6c   :  { %4463 = vmatpush.bf16.msrb.mxu2 %v7388_v61  ;;  %v7445_v61 = vld [vmem:[%s9503_s1 + $0x570] sm:$0xff] }
  0x6d   :  { %4476 = vmatpush.bf16.msrb.mxu3 %v7396_v62  ;;  %v7453_v62 = vld [vmem:[%s9503_s1 + $0x5b0] sm:$0xff] }
  0x6e   :  { %4438 = vmatpush.bf16.msrb.mxu0 %v7371_v63  ;;  %v7461_v63 = vld [vmem:[%s9503_s1 + $0x5f0] sm:$0xff] }
  0x6f   :  { %4451 = vmatpush.bf16.msrb.mxu1 %v7379_v0  ;;  %v8361_v0 = vld [vmem:[#allocation1 + $0x24] sm:$0xff] }
  0x70   :  { %4464 = vmatpush.bf16.msrb.mxu2 %v7387_v1  ;;  %v8363_v1 = vld [vmem:[#allocation1 + $0x36] sm:$0xff] }
  0x71   :  { %4477 = vmatpush.bf16.msrb.mxu3 %v7395_v2  ;;  %v8365_v2 = vld [vmem:[#allocation1 + $0x2d] sm:$0xff] }
  0x72   :  { %4439 = vmatpush.bf16.msrb.mxu0 %v7370_v3  ;;  %v8367_v3 = vld [vmem:[#allocation1 + $0x3f] sm:$0xff] }
  0x73   :  { %4452 = vmatpush.bf16.msrb.mxu1 %v7378_v4  ;;  %v7436_v4 = vld [vmem:[%s9503_s1 + $0x528] sm:$0xff] }
  0x74   :  { %4465 = vmatpush.bf16.msrb.mxu2 %v7386_v5  ;;  %v7444_v5 = vld [vmem:[%s9503_s1 + $0x568] sm:$0xff] }
  0x75   :  { %4478 = vmatpush.bf16.msrb.mxu3 %v7394_v6  ;;  %v7789_v6 = vld [vmem:[%s9505_s2] ss:$0 sm:$0xff] }
  0x76   :  { %4440 = vmatpush.bf16.msrb.mxu0 %v7369_v7  ;;  %v7452_v7 = vld [vmem:[%s9503_s1 + $0x5a8] sm:$0xff] }
  0x77   :  { %4453 = vmatpush.bf16.msrb.mxu1 %v7377_v8  ;;  %v7460_v8 = vld [vmem:[%s9503_s1 + $0x5e8] sm:$0xff] }
  0x78   :  { %4466 = vmatpush.bf16.msrb.mxu2 %v7385_v9 }
  0x79   :  { %4479 = vmatpush.bf16.msrb.mxu3 %v7393_v10  ;;  %v7435_v10 = vld [vmem:[%s9503_s1 + $0x520] sm:$0xff] }
  0x7a   :  { %4441 = vmatpush.bf16.msrb.mxu0 %v7368_v11  ;;  %v7443_v11 = vld [vmem:[%s9503_s1 + $0x560] sm:$0xff] }
  0x7b   :  { %4454 = vmatpush.bf16.msrb.mxu1 %v7376_v12 }
  0x7c   :  { %4467 = vmatpush.bf16.msrb.mxu2 %v7384_v13 }
  0x7d   :  { %4480 = vmatpush.bf16.msrb.mxu3 %v7392_v14  ;;  %v7451_v14 = vld [vmem:[%s9503_s1 + $0x5a0] sm:$0xff] }
  0x7e   :  { %4442 = vmatpush.bf16.msrb.mxu0 %v7367_v15  ;;  %v7459_v15 = vld [vmem:[%s9503_s1 + $0x5e0] sm:$0xff] }
  0x7f   :  { %4455 = vmatpush.bf16.msrb.mxu1 %v7375_v16 }
  0x80   :  { %4468 = vmatpush.bf16.msrb.mxu2 %v7383_v17  ;;  %v7434_v17 = vld [vmem:[%s9503_s1 + $0x518] sm:$0xff] }
  0x81   :  { %4481 = vmatpush.bf16.msrb.mxu3 %v7391_v18  ;;  %4443 = vmatmul.bf16.vlgmr.msrb.gmra.mxu0 %v8154_v55  ;;  %v7462_v55 = vld [vmem:[%s9503_s1 + $0x5f8] sm:$0xff] }
  0x82   :  { %4487 = vmatpush.bf16.msra.mxu0 %v7406_v19  ;;  %4456 = vmatmul.bf16.vlgmr.msrb.gmra.mxu1 %v8158_v57  ;;  %v1087_v57 = vld [vmem:[#allocation1 + $0x12] sm:$0xff] }
  0x83   :  { %4500 = vmatpush.bf16.msra.mxu1 %v7414_v20  ;;  %4469 = vmatmul.bf16.vlgmr.msrb.gmra.mxu2 %v8156_v56  ;;  %v1085_v56 = vld [vmem:[#allocation1] sm:$0xff]  ;;  %v7442_v18 = vld [vmem:[%s9503_s1 + $0x558] sm:$0xff] }
  0x84   :  { %4513 = vmatpush.bf16.msra.mxu2 %v7422_v21  ;;  %4482 = vmatmul.bf16.vlgmr.msrb.gmra.mxu3 %v8160_v58  ;;  %v1086_v58 = vld [vmem:[#allocation1 + $0x9] sm:$0xff]  ;;  %v7450_v19 = vld [vmem:[%s9503_s1 + $0x598] sm:$0xff] }
  0x85   :  { %4526 = vmatpush.bf16.msra.mxu3 %v7430_v22  ;;  %1094 = vst [vmem:[#allocation1] ss:$9 sm:$0xff] %v30_v53  ;;  %v7458_v20 = vld [vmem:[%s9503_s1 + $0x5d8] sm:$0xff] }
  0x86   :  { %4488 = vmatpush.bf16.msra.mxu0 %v7405_v23 }
  0x87   :  { %4501 = vmatpush.bf16.msra.mxu1 %v7413_v24 }
  0x88   :  { %4514 = vmatpush.bf16.msra.mxu2 %v7421_v25  ;;  %v7433_v25 = vld [vmem:[%s9503_s1 + $0x510] sm:$0xff] }
  0x89   :  { %4527 = vmatpush.bf16.msra.mxu3 %v7429_v26  ;;  %v7441_v26 = vld [vmem:[%s9503_s1 + $0x550] sm:$0xff] }
  0x8a   :  { %4489 = vmatpush.bf16.msra.mxu0 %v7404_v27 }
  0x8b   :  { %4502 = vmatpush.bf16.msra.mxu1 %v7412_v28 }
  0x8c   :  { %4515 = vmatpush.bf16.msra.mxu2 %v7420_v29  ;;  %v7449_v29 = vld [vmem:[%s9503_s1 + $0x590] sm:$0xff] }
  0x8d   :  { %4528 = vmatpush.bf16.msra.mxu3 %v7428_v30  ;;  %v7457_v30 = vld [vmem:[%s9503_s1 + $0x5d0] sm:$0xff] }
  0x8e   :  { %4490 = vmatpush.bf16.msra.mxu0 %v7403_v31  ;;  %v7432_v31 = vld [vmem:[%s9503_s1 + $0x508] sm:$0xff] }
  0x8f   :  { %4503 = vmatpush.bf16.msra.mxu1 %v7411_v32  ;;  %v7440_v32 = vld [vmem:[%s9503_s1 + $0x548] sm:$0xff] }
  0x90   :  { %4516 = vmatpush.bf16.msra.mxu2 %v7419_v33  ;;  %v7448_v33 = vld [vmem:[%s9503_s1 + $0x588] sm:$0xff] }
  0x91   :  { %4529 = vmatpush.bf16.msra.mxu3 %v7427_v34  ;;  %v7456_v34 = vld [vmem:[%s9503_s1 + $0x5c8] sm:$0xff] }
  0x92   :  { %4491 = vmatpush.bf16.msra.mxu0 %v7402_v35 }
  0x93   :  { %4504 = vmatpush.bf16.msra.mxu1 %v7410_v36 }
  0x94   :  { %4517 = vmatpush.bf16.msra.mxu2 %v7418_v37  ;;  %v7431_v37 = vld [vmem:[%s9503_s1 + $0x500] sm:$0xff] }
  0x95   :  { %4530 = vmatpush.bf16.msra.mxu3 %v7426_v38  ;;  %v7439_v38 = vld [vmem:[%s9503_s1 + $0x540] sm:$0xff] }
  0x96   :  { %4492 = vmatpush.bf16.msra.mxu0 %v7401_v39  ;;  %v7447_v39 = vld [vmem:[%s9503_s1 + $0x580] sm:$0xff] }
  0x97   :  { %4505 = vmatpush.bf16.msra.mxu1 %v7409_v40  ;;  %v7455_v40 = vld [vmem:[%s9503_s1 + $0x5c0] sm:$0xff] }
  0x98   :  { %4518 = vmatpush.bf16.msra.mxu2 %v7417_v41  ;;  %v7470_v41 = vld [vmem:[%s9503_s1 + $0x638] sm:$0xff] }
  0x99   :  { %4531 = vmatpush.bf16.msra.mxu3 %v7425_v42  ;;  %v7478_v42 = vld [vmem:[%s9503_s1 + $0x678] sm:$0xff] }
  0x9a   :  { %4493 = vmatpush.bf16.msra.mxu0 %v7400_v43  ;;  %v7486_v43 = vld [vmem:[%s9503_s1 + $0x6b8] sm:$0xff] }
  0x9b   :  { %4506 = vmatpush.bf16.msra.mxu1 %v7408_v44  ;;  %v7494_v44 = vld [vmem:[%s9503_s1 + $0x6f8] sm:$0xff] }
  0x9c   :  { %4519 = vmatpush.bf16.msra.mxu2 %v7416_v45  ;;  %v7469_v45 = vld [vmem:[%s9503_s1 + $0x630] sm:$0xff] }
  0x9d   :  { %4532 = vmatpush.bf16.msra.mxu3 %v7424_v46  ;;  %v7477_v46 = vld [vmem:[%s9503_s1 + $0x670] sm:$0xff] }
  0x9e   :  { %4494 = vmatpush.bf16.msra.mxu0 %v7399_v47  ;;  %v4288_v9 = vpop.f32.mrf.mxu0  ;;  %v7485_v47 = vld [vmem:[%s9503_s1 + $0x6b0] sm:$0xff] }
  0x9f   :  { %4507 = vmatpush.bf16.msra.mxu1 %v7407_v48  ;;  %v4289_v12 = vadd.f32 %v7789_v6, %v4288_v9  ;;  %v4301_v13 = vpop.f32.mrf.mxu1  ;;  %v7493_v48 = vld [vmem:[%s9503_s1 + $0x6f0] sm:$0xff] }
  0xa0   :  { %4520 = vmatpush.bf16.msra.mxu2 %v7415_v49  ;;  %v7468_v49 = vld [vmem:[%s9503_s1 + $0x628] sm:$0xff]  ;;  %v7473_v6 = vld [vmem:[%s9503_s1 + $0x650] sm:$0xff] }
  0xa1   :  { %4533 = vmatpush.bf16.msra.mxu3 %v7423_v50  ;;  %4495 = vmatmul.bf16.vlgmr.msra.gmra.mxu0 %v1085_v56  ;;  %v4302_v16 = vadd.f32 %v4301_v13, %v4289_v12  ;;  %v7476_v50 = vld [vmem:[%s9503_s1 + $0x668] sm:$0xff]  ;;  %v7481_v9 = vld [vmem:[%s9503_s1 + $0x690] sm:$0xff] }
  0xa2   :  { %4539 = vmatpush.bf16.msrb.mxu0 %v7438_v51  ;;  %4508 = vmatmul.bf16.vlgmr.msra.gmra.mxu1 %v1086_v58  ;;  %v7484_v51 = vld [vmem:[%s9503_s1 + $0x6a8] sm:$0xff]  ;;  %v7483_v58 = vld [vmem:[%s9503_s1 + $0x6a0] sm:$0xff] }
  0xa3   :  { %4552 = vmatpush.bf16.msrb.mxu1 %v7446_v52  ;;  %4521 = vmatmul.bf16.vlgmr.msra.gmra.mxu2 %v1087_v57  ;;  %v7492_v52 = vld [vmem:[%s9503_s1 + $0x6e8] sm:$0xff] }
  0xa4   :  { %4565 = vmatpush.bf16.msrb.mxu2 %v7454_v54  ;;  %4534 = vmatmul.bf16.vlgmr.msra.gmra.mxu3 %v1088_v59  ;;  %v7467_v54 = vld [vmem:[%s9503_s1 + $0x620] sm:$0xff]  ;;  %v7472_v12 = vld [vmem:[%s9503_s1 + $0x648] sm:$0xff] }
  0xa5   :  { %4578 = vmatpush.bf16.msrb.mxu3 %v7462_v55  ;;  %v7475_v55 = vld [vmem:[%s9503_s1 + $0x660] sm:$0xff]  ;;  %v7480_v13 = vld [vmem:[%s9503_s1 + $0x688] sm:$0xff] }
  0xa6   :  { %4540 = vmatpush.bf16.msrb.mxu0 %v7437_v60  ;;  %v4314_v21 = vpop.f32.mrf.mxu2  ;;  %v4290_v24 = vpop.f32.mrf.mxu0  ;;  %v7491_v59 = vld [vmem:[%s9503_s1 + $0x6e0] sm:$0xff] }
  0xa7   :  { %4553 = vmatpush.bf16.msrb.mxu1 %v7445_v61  ;;  %v4315_v22 = vadd.f32 %v4314_v21, %v4302_v16  ;;  %v4327_v23 = vpop.f32.mrf.mxu3  ;;  %v4303_v28 = vpop.f32.mrf.mxu1  ;;  %v7466_v61 = vld [vmem:[%s9503_s1 + $0x618] sm:$0xff] }
  0xa8   :  { %4566 = vmatpush.bf16.msrb.mxu2 %v7453_v62  ;;  %v7474_v62 = vld [vmem:[%s9503_s1 + $0x658] sm:$0xff]  ;;  %v1096_v28 = vld [vmem:[#allocation1 + $0x9] sm:$0xff] }
  0xa9   :  { %4579 = vmatpush.bf16.msrb.mxu3 %v7461_v63  ;;  %v4328_v27 = vadd.f32 %v4327_v23, %v4315_v22  ;;  %v7482_v63 = vld [vmem:[%s9503_s1 + $0x698] sm:$0xff]  ;;  %v31_v23 = vld [vmem:[%s9504_s0 + $0x20] sm:$0xff] }
  0xaa   :  { %4541 = vmatpush.bf16.msrb.mxu0 %v7436_v4  ;;  %v7502_v21 = vld [vmem:[%s9503_s1 + $0x738] sm:$0xff] }
  0xab   :  { %4554 = vmatpush.bf16.msrb.mxu1 %v7444_v5  ;;  %v7465_v5 = vld [vmem:[%s9503_s1 + $0x610] sm:$0xff]  ;;  %v7510_v22 = vld [vmem:[%s9503_s1 + $0x778] sm:$0xff] }
  0xac   :  { %4567 = vmatpush.bf16.msrb.mxu2 %v7452_v7  ;;  %v7518_v24 = vld [vmem:[%s9503_s1 + $0x7b8] sm:$0xff] }
  0xad   :  { %4580 = vmatpush.bf16.msrb.mxu3 %v7460_v8 }
  0xae   :  { %4542 = vmatpush.bf16.msrb.mxu0 %v7435_v10  ;;  %v4316_v35 = vpop.f32.mrf.mxu2  ;;  %v7489_v10 = vld [vmem:[%s9503_s1 + $0x6d0] sm:$0xff] }
  0xaf   :  { %4555 = vmatpush.bf16.msrb.mxu1 %v7443_v11  ;;  %v4329_v36 = vpop.f32.mrf.mxu3  ;;  %v7464_v11 = vld [vmem:[%s9503_s1 + $0x608] sm:$0xff]  ;;  %v8575_v35 = vld [vmem:[#allocation1 + $0x36] sm:$0xff] }
  0xb0   :  { %4568 = vmatpush.bf16.msrb.mxu2 %v7451_v14  ;;  %v7488_v14 = vld [vmem:[%s9503_s1 + $0x6c8] sm:$0xff] }
  0xb1   :  { %4581 = vmatpush.bf16.msrb.mxu3 %v7459_v15  ;;  %v8577_v36 = vld [vmem:[#allocation1 + $0x2d] sm:$0xff] }
  0xb2   :  { %4543 = vmatpush.bf16.msrb.mxu0 %v7434_v17  ;;  %v7463_v17 = vld [vmem:[%s9503_s1 + $0x600] sm:$0xff] }
  0xb3   :  { %4556 = vmatpush.bf16.msrb.mxu1 %v7442_v18  ;;  %v7471_v18 = vld [vmem:[%s9503_s1 + $0x640] sm:$0xff] }
  0xb4   :  { %4569 = vmatpush.bf16.msrb.mxu2 %v7450_v19  ;;  %v7479_v19 = vld [vmem:[%s9503_s1 + $0x680] sm:$0xff] }
  0xb5   :  { %4582 = vmatpush.bf16.msrb.mxu3 %v7458_v20  ;;  %v7487_v20 = vld [vmem:[%s9503_s1 + $0x6c0] sm:$0xff] }
  0xb6   :  { %4544 = vmatpush.bf16.msrb.mxu0 %v7433_v25  ;;  %v7526_v25 = vld [vmem:[%s9503_s1 + $0x7f8] sm:$0xff] }
  0xb7   :  { %4557 = vmatpush.bf16.msrb.mxu1 %v7441_v26  ;;  %v1095_v26 = vld [vmem:[#allocation1] sm:$0xff] }
  0xb8   :  { %4570 = vmatpush.bf16.msrb.mxu2 %v7449_v29  ;;  %v1098_v29 = vld [vmem:[#allocation1 + $0x1b] sm:$0xff] }
  0xb9   :  { %4583 = vmatpush.bf16.msrb.mxu3 %v7457_v30  ;;  %v7501_v30 = vld [vmem:[%s9503_s1 + $0x730] sm:$0xff] }
  0xba   :  { %4545 = vmatpush.bf16.msrb.mxu0 %v7432_v31  ;;  %v7509_v31 = vld [vmem:[%s9503_s1 + $0x770] sm:$0xff] }
  0xbb   :  { %4558 = vmatpush.bf16.msrb.mxu1 %v7440_v32  ;;  %v7517_v32 = vld [vmem:[%s9503_s1 + $0x7b0] sm:$0xff] }
  0xbc   :  { %4571 = vmatpush.bf16.msrb.mxu2 %v7448_v33  ;;  %v7525_v33 = vld [vmem:[%s9503_s1 + $0x7f0] sm:$0xff] }
  0xbd   :  { %4584 = vmatpush.bf16.msrb.mxu3 %v7456_v34  ;;  %v8573_v34 = vld [vmem:[#allocation1 + $0x24] sm:$0xff] }
  0xbe   :  { %4546 = vmatpush.bf16.msrb.mxu0 %v7431_v37  ;;  %v4340_v53 = vpop.f32.mrf.mxu0  ;;  %v8579_v37 = vld [vmem:[#allocation1 + $0x3f] sm:$0xff] }
  0xbf   :  { %4559 = vmatpush.bf16.msrb.mxu1 %v7439_v38  ;;  %v4341_v56 = vadd.f32 %v4340_v53, %v4328_v27  ;;  %v4353_v57 = vpop.f32.mrf.mxu1  ;;  %v1097_v27 = vld [vmem:[#allocation1 + $0x12] sm:$0xff]  ;;  %v7500_v38 = vld [vmem:[%s9503_s1 + $0x728] sm:$0xff] }
  0xc0   :  { %4572 = vmatpush.bf16.msrb.mxu2 %v7447_v39  ;;  %1104 = vst [vmem:[#allocation1] ss:$9 sm:$0xff] %v31_v23  ;;  %v7508_v39 = vld [vmem:[%s9503_s1 + $0x768] sm:$0xff]  ;;  %v7522_v53 = vld [vmem:[%s9503_s1 + $0x7d8] sm:$0xff] }
  0xc1   :  { %4585 = vmatpush.bf16.msrb.mxu3 %v7455_v40  ;;  %4547 = vmatmul.bf16.vlgmr.msrb.gmra.mxu0 %v8361_v0  ;;  %v4354_v60 = vadd.f32 %v4353_v57, %v4341_v56  ;;  %v7490_v0 = vld [vmem:[%s9503_s1 + $0x6d8] sm:$0xff]  ;;  %v7516_v40 = vld [vmem:[%s9503_s1 + $0x7a8] sm:$0xff] }
  0xc2   :  { %4591 = vmatpush.bf16.msra.mxu0 %v7470_v41  ;;  %4560 = vmatmul.bf16.vlgmr.msrb.gmra.mxu1 %v8365_v2  ;;  %v7524_v41 = vld [vmem:[%s9503_s1 + $0x7e8] sm:$0xff] }
  0xc3   :  { %4604 = vmatpush.bf16.msra.mxu1 %v7478_v42  ;;  %4573 = vmatmul.bf16.vlgmr.msrb.gmra.mxu2 %v8363_v1 }
  0xc4   :  { %4617 = vmatpush.bf16.msra.mxu2 %v7486_v43  ;;  %4586 = vmatmul.bf16.vlgmr.msrb.gmra.mxu3 %v8367_v3 }
  0xc5   :  { %4630 = vmatpush.bf16.msra.mxu3 %v7494_v44  ;;  %v7499_v44 = vld [vmem:[%s9503_s1 + $0x720] sm:$0xff] }
  0xc6   :  { %4592 = vmatpush.bf16.msra.mxu0 %v7469_v45  ;;  %v4366_v1 = vpop.f32.mrf.mxu2  ;;  %v4342_v4 = vpop.f32.mrf.mxu0  ;;  %v7507_v45 = vld [vmem:[%s9503_s1 + $0x760] sm:$0xff] }
  0xc7   :  { %4605 = vmatpush.bf16.msra.mxu1 %v7477_v46  ;;  %v4367_v2 = vadd.f32 %v4366_v1, %v4354_v60  ;;  %v4379_v3 = vpop.f32.mrf.mxu3  ;;  %v4355_v8 = vpop.f32.mrf.mxu1  ;;  %v7505_v60 = vld [vmem:[%s9503_s1 + $0x750] sm:$0xff]  ;;  %v7504_v1 = vld [vmem:[%s9503_s1 + $0x748] sm:$0xff] }
  0xc8   :  { %4618 = vmatpush.bf16.msra.mxu2 %v7485_v47  ;;  %v7515_v47 = vld [vmem:[%s9503_s1 + $0x7a0] sm:$0xff] }
  0xc9   :  { %4631 = vmatpush.bf16.msra.mxu3 %v7493_v48  ;;  %v8514_v7 = vadd.f32 %v4379_v3, %v4367_v2  ;;  %v7523_v48 = vld [vmem:[%s9503_s1 + $0x7e0] sm:$0xff]  ;;  %v7512_v2 = vld [vmem:[%s9503_s1 + $0x788] sm:$0xff] }
  0xca   :  { %4593 = vmatpush.bf16.msra.mxu0 %v7468_v49  ;;  %v7520_v3 = vld [vmem:[%s9503_s1 + $0x7c8] sm:$0xff]  ;;  %v7511_v8 = vld [vmem:[%s9503_s1 + $0x780] sm:$0xff] }
  0xcb   :  { %4606 = vmatpush.bf16.msra.mxu1 %v7476_v50  ;;  %v7498_v50 = vld [vmem:[%s9503_s1 + $0x718] sm:$0xff] }
  0xcc   :  { %4619 = vmatpush.bf16.msra.mxu2 %v7484_v51  ;;  %v7506_v51 = vld [vmem:[%s9503_s1 + $0x758] sm:$0xff] }
  0xcd   :  { %4632 = vmatpush.bf16.msra.mxu3 %v7492_v52  ;;  %v7514_v52 = vld [vmem:[%s9503_s1 + $0x798] sm:$0xff] }
  0xce   :  { %4594 = vmatpush.bf16.msra.mxu0 %v7467_v54  ;;  %v4368_v15 = vpop.f32.mrf.mxu2 }
  0xcf   :  { %4607 = vmatpush.bf16.msra.mxu1 %v7475_v55  ;;  %v4381_v16 = vpop.f32.mrf.mxu3  ;;  %v7541_v15 = vld [vmem:[%s9503_s1 + $0x870] sm:$0xff] }
  0xd0   :  { %4620 = vmatpush.bf16.msra.mxu2 %v7483_v58  ;;  %v7549_v16 = vld [vmem:[%s9503_s1 + $0x8b0] sm:$0xff] }
  0xd1   :  { %4633 = vmatpush.bf16.msra.mxu3 %v7491_v59  ;;  %v7497_v59 = vld [vmem:[%s9503_s1 + $0x710] sm:$0xff] }
  0xd2   :  { %4595 = vmatpush.bf16.msra.mxu0 %v7466_v61 }
  0xd3   :  { %4608 = vmatpush.bf16.msra.mxu1 %v7474_v62  ;;  %v7513_v62 = vld [vmem:[%s9503_s1 + $0x790] sm:$0xff] }
  0xd4   :  { %4621 = vmatpush.bf16.msra.mxu2 %v7482_v63  ;;  %v7521_v63 = vld [vmem:[%s9503_s1 + $0x7d0] sm:$0xff] }
  0xd5   :  { %4634 = vmatpush.bf16.msra.mxu3 %v7490_v0  ;;  %v7496_v0 = vld [vmem:[%s9503_s1 + $0x708] sm:$0xff] }
  0xd6   :  { %4596 = vmatpush.bf16.msra.mxu0 %v7465_v5 }
  0xd7   :  { %4609 = vmatpush.bf16.msra.mxu1 %v7473_v6  ;;  %v7495_v6 = vld [vmem:[%s9503_s1 + $0x700] sm:$0xff] }
  0xd8   :  { %4622 = vmatpush.bf16.msra.mxu2 %v7481_v9  ;;  %v7519_v9 = vld [vmem:[%s9503_s1 + $0x7c0] sm:$0xff] }
  0xd9   :  { %4635 = vmatpush.bf16.msra.mxu3 %v7489_v10  ;;  %v7534_v10 = vld [vmem:[%s9503_s1 + $0x838] sm:$0xff] }
  0xda   :  { %4597 = vmatpush.bf16.msra.mxu0 %v7464_v11  ;;  %v7542_v11 = vld [vmem:[%s9503_s1 + $0x878] sm:$0xff] }
  0xdb   :  { %4610 = vmatpush.bf16.msra.mxu1 %v7472_v12  ;;  %v7550_v12 = vld [vmem:[%s9503_s1 + $0x8b8] sm:$0xff] }
  0xdc   :  { %4623 = vmatpush.bf16.msra.mxu2 %v7480_v13  ;;  %v7558_v13 = vld [vmem:[%s9503_s1 + $0x8f8] sm:$0xff] }
  0xdd   :  { %4636 = vmatpush.bf16.msra.mxu3 %v7488_v14  ;;  %v7533_v14 = vld [vmem:[%s9503_s1 + $0x830] sm:$0xff] }
  0xde   :  { %4598 = vmatpush.bf16.msra.mxu0 %v7463_v17  ;;  %v4392_v42 = vpop.f32.mrf.mxu0  ;;  %v7557_v17 = vld [vmem:[%s9503_s1 + $0x8f0] sm:$0xff] }
  0xdf   :  { %4611 = vmatpush.bf16.msra.mxu1 %v7471_v18  ;;  %v4393_v43 = vadd.f32 %v4392_v42, %v8514_v7  ;;  %v4405_v46 = vpop.f32.mrf.mxu1  ;;  %v7503_v7 = vld [vmem:[%s9503_s1 + $0x740] sm:$0xff]  ;;  %v7532_v18 = vld [vmem:[%s9503_s1 + $0x828] sm:$0xff]  ;;  %v7545_v42 = vld [vmem:[%s9503_s1 + $0x890] sm:$0xff] }
  0xe0   :  { %4624 = vmatpush.bf16.msra.mxu2 %v7479_v19  ;;  %v7540_v19 = vld [vmem:[%s9503_s1 + $0x868] sm:$0xff] }
  0xe1   :  { %4637 = vmatpush.bf16.msra.mxu3 %v7487_v20  ;;  %4599 = vmatmul.bf16.vlgmr.msra.gmra.mxu0 %v1095_v26  ;;  %v4406_v49 = vadd.f32 %v4405_v46, %v4393_v43  ;;  %v7548_v20 = vld [vmem:[%s9503_s1 + $0x8a8] sm:$0xff]  ;;  %v7553_v43 = vld [vmem:[%s9503_s1 + $0x8d0] sm:$0xff] }
  0xe2   :  { %4643 = vmatpush.bf16.msrb.mxu0 %v7502_v21  ;;  %4612 = vmatmul.bf16.vlgmr.msra.gmra.mxu1 %v1096_v28  ;;  %v7556_v21 = vld [vmem:[%s9503_s1 + $0x8e8] sm:$0xff]  ;;  %v7555_v28 = vld [vmem:[%s9503_s1 + $0x8e0] sm:$0xff] }
  0xe3   :  { %4656 = vmatpush.bf16.msrb.mxu1 %v7510_v22  ;;  %4625 = vmatmul.bf16.vlgmr.msra.gmra.mxu2 %v1097_v27  ;;  %v7547_v27 = vld [vmem:[%s9503_s1 + $0x8a0] sm:$0xff]  ;;  %v7544_v46 = vld [vmem:[%s9503_s1 + $0x888] sm:$0xff] }
  0xe4   :  { %4669 = vmatpush.bf16.msrb.mxu2 %v7518_v24  ;;  %4638 = vmatmul.bf16.vlgmr.msra.gmra.mxu3 %v1098_v29  ;;  %v7531_v24 = vld [vmem:[%s9503_s1 + $0x820] sm:$0xff] }
  0xe5   :  { %4682 = vmatpush.bf16.msrb.mxu3 %v7526_v25  ;;  %v7539_v25 = vld [vmem:[%s9503_s1 + $0x860] sm:$0xff] }
  0xe6   :  { %4644 = vmatpush.bf16.msrb.mxu0 %v7501_v30  ;;  %v4418_v54 = vpop.f32.mrf.mxu2  ;;  %v4394_v57 = vpop.f32.mrf.mxu0  ;;  %v7530_v30 = vld [vmem:[%s9503_s1 + $0x818] sm:$0xff] }
  0xe7   :  { %4657 = vmatpush.bf16.msrb.mxu1 %v7509_v31  ;;  %v4419_v55 = vadd.f32 %v4418_v54, %v4406_v49  ;;  %v4431_v56 = vpop.f32.mrf.mxu3  ;;  %v4407_v61 = vpop.f32.mrf.mxu1  ;;  %v7538_v31 = vld [vmem:[%s9503_s1 + $0x858] sm:$0xff] }
  0xe8   :  { %4670 = vmatpush.bf16.msrb.mxu2 %v7517_v32  ;;  %v7546_v32 = vld [vmem:[%s9503_s1 + $0x898] sm:$0xff]  ;;  %v1106_v61 = vld [vmem:[#allocation1 + $0x9] sm:$0xff] }
  0xe9   :  { %4683 = vmatpush.bf16.msrb.mxu3 %v7525_v33  ;;  %v4432_v58 = vadd.f32 %v4431_v56, %v4419_v55  ;;  %v7554_v33 = vld [vmem:[%s9503_s1 + $0x8d8] sm:$0xff]  ;;  %v32_v56 = vld [vmem:[%s9504_s0 + $0x28] sm:$0xff] }
  0xea   :  { %4645 = vmatpush.bf16.msrb.mxu0 %v7500_v38  ;;  %v7566_v54 = vld [vmem:[%s9503_s1 + $0x938] sm:$0xff] }
  0xeb   :  { %4658 = vmatpush.bf16.msrb.mxu1 %v7508_v39  ;;  %v7529_v39 = vld [vmem:[%s9503_s1 + $0x810] sm:$0xff]  ;;  %v7574_v55 = vld [vmem:[%s9503_s1 + $0x978] sm:$0xff] }
  0xec   :  { %4671 = vmatpush.bf16.msrb.mxu2 %v7516_v40  ;;  %v7537_v40 = vld [vmem:[%s9503_s1 + $0x850] sm:$0xff]  ;;  %v7582_v57 = vld [vmem:[%s9503_s1 + $0x9b8] sm:$0xff] }
  0xed   :  { %4684 = vmatpush.bf16.msrb.mxu3 %v7524_v41 }
  0xee   :  { %4646 = vmatpush.bf16.msrb.mxu0 %v7499_v44  ;;  %v4420_v4 = vpop.f32.mrf.mxu2  ;;  %v7528_v44 = vld [vmem:[%s9503_s1 + $0x808] sm:$0xff] }
  0xef   :  { %4659 = vmatpush.bf16.msrb.mxu1 %v7507_v45  ;;  %v4433_v5 = vpop.f32.mrf.mxu3  ;;  %v7536_v45 = vld [vmem:[%s9503_s1 + $0x848] sm:$0xff]  ;;  %v8785_v4 = vld [vmem:[#allocation1 + $0x36] sm:$0xff] }
  0xf0   :  { %4672 = vmatpush.bf16.msrb.mxu2 %v7515_v47  ;;  %v7552_v47 = vld [vmem:[%s9503_s1 + $0x8c8] sm:$0xff] }
  0xf1   :  { %4685 = vmatpush.bf16.msrb.mxu3 %v7523_v48  ;;  %v8787_v5 = vld [vmem:[#allocation1 + $0x2d] sm:$0xff] }
  0xf2   :  { %4647 = vmatpush.bf16.msrb.mxu0 %v7498_v50  ;;  %v7527_v50 = vld [vmem:[%s9503_s1 + $0x800] sm:$0xff] }
  0xf3   :  { %4660 = vmatpush.bf16.msrb.mxu1 %v7506_v51  ;;  %v7535_v51 = vld [vmem:[%s9503_s1 + $0x840] sm:$0xff] }
  0xf4   :  { %4673 = vmatpush.bf16.msrb.mxu2 %v7514_v52  ;;  %v7543_v52 = vld [vmem:[%s9503_s1 + $0x880] sm:$0xff] }
  0xf5   :  { %4686 = vmatpush.bf16.msrb.mxu3 %v7522_v53  ;;  %v7551_v53 = vld [vmem:[%s9503_s1 + $0x8c0] sm:$0xff] }
  0xf6   :  { %4648 = vmatpush.bf16.msrb.mxu0 %v7497_v59  ;;  %v1105_v59 = vld [vmem:[#allocation1] sm:$0xff] }
  0xf7   :  { %4661 = vmatpush.bf16.msrb.mxu1 %v7505_v60  ;;  %v1107_v60 = vld [vmem:[#allocation1 + $0x12] sm:$0xff] }
  0xf8   :  { %4674 = vmatpush.bf16.msrb.mxu2 %v7513_v62  ;;  %v1108_v62 = vld [vmem:[#allocation1 + $0x1b] sm:$0xff] }
  0xf9   :  { %4687 = vmatpush.bf16.msrb.mxu3 %v7521_v63  ;;  %v7565_v63 = vld [vmem:[%s9503_s1 + $0x930] sm:$0xff] }
  0xfa   :  { %4649 = vmatpush.bf16.msrb.mxu0 %v7496_v0  ;;  %v7573_v0 = vld [vmem:[%s9503_s1 + $0x970] sm:$0xff] }
  0xfb   :  { %4662 = vmatpush.bf16.msrb.mxu1 %v7504_v1  ;;  %v7581_v1 = vld [vmem:[%s9503_s1 + $0x9b0] sm:$0xff] }
  0xfc   :  { %4675 = vmatpush.bf16.msrb.mxu2 %v7512_v2  ;;  %v7589_v2 = vld [vmem:[%s9503_s1 + $0x9f0] sm:$0xff] }
  0xfd   :  { %4688 = vmatpush.bf16.msrb.mxu3 %v7520_v3  ;;  %v8783_v3 = vld [vmem:[#allocation1 + $0x24] sm:$0xff] }
  0xfe   :  { %4650 = vmatpush.bf16.msrb.mxu0 %v7495_v6  ;;  %v4444_v22 = vpop.f32.mrf.mxu0  ;;  %v8789_v6 = vld [vmem:[#allocation1 + $0x3f] sm:$0xff] }
  0xff   :  { %4663 = vmatpush.bf16.msrb.mxu1 %v7503_v7  ;;  %v4445_v23 = vadd.f32 %v4444_v22, %v4432_v58  ;;  %v4457_v26 = vpop.f32.mrf.mxu1  ;;  %v7590_v58 = vld [vmem:[%s9503_s1 + $0x9f8] sm:$0xff]  ;;  %1114 = vst [vmem:[#allocation1] ss:$9 sm:$0xff] %v32_v56  ;;  %v7564_v7 = vld [vmem:[%s9503_s1 + $0x928] sm:$0xff] }
 0x100   :  { %4676 = vmatpush.bf16.msrb.mxu2 %v7511_v8  ;;  %v7572_v8 = vld [vmem:[%s9503_s1 + $0x968] sm:$0xff]  ;;  %v7586_v22 = vld [vmem:[%s9503_s1 + $0x9d8] sm:$0xff] }
 0x101   :  { %4689 = vmatpush.bf16.msrb.mxu3 %v7519_v9  ;;  %4651 = vmatmul.bf16.vlgmr.msrb.gmra.mxu0 %v8573_v34  ;;  %v4458_v29 = vadd.f32 %v4457_v26, %v4445_v23  ;;  %v7580_v9 = vld [vmem:[%s9503_s1 + $0x9a8] sm:$0xff] }
 0x102   :  { %4695 = vmatpush.bf16.msra.mxu0 %v7534_v10  ;;  %4664 = vmatmul.bf16.vlgmr.msrb.gmra.mxu1 %v8577_v36  ;;  %v7588_v10 = vld [vmem:[%s9503_s1 + $0x9e8] sm:$0xff] }
 0x103   :  { %4708 = vmatpush.bf16.msra.mxu1 %v7542_v11  ;;  %4677 = vmatmul.bf16.vlgmr.msrb.gmra.mxu2 %v8575_v35 }
 0x104   :  { %4721 = vmatpush.bf16.msra.mxu2 %v7550_v12  ;;  %4690 = vmatmul.bf16.vlgmr.msrb.gmra.mxu3 %v8579_v37 }
 0x105   :  { %4734 = vmatpush.bf16.msra.mxu3 %v7558_v13  ;;  %v7563_v13 = vld [vmem:[%s9503_s1 + $0x920] sm:$0xff] }
 0x106   :  { %4696 = vmatpush.bf16.msra.mxu0 %v7533_v14  ;;  %v4470_v34 = vpop.f32.mrf.mxu2  ;;  %v4446_v37 = vpop.f32.mrf.mxu0  ;;  %v7571_v14 = vld [vmem:[%s9503_s1 + $0x960] sm:$0xff] }
 0x107   :  { %4709 = vmatpush.bf16.msra.mxu1 %v7541_v15  ;;  %v4471_v35 = vadd.f32 %v4470_v34, %v4458_v29  ;;  %v4483_v36 = vpop.f32.mrf.mxu3  ;;  %v4459_v41 = vpop.f32.mrf.mxu1  ;;  %v7569_v29 = vld [vmem:[%s9503_s1 + $0x950] sm:$0xff]  ;;  %v7568_v34 = vld [vmem:[%s9503_s1 + $0x948] sm:$0xff] }
 0x108   :  { %4722 = vmatpush.bf16.msra.mxu2 %v7549_v16  ;;  %v7579_v16 = vld [vmem:[%s9503_s1 + $0x9a0] sm:$0xff] }
 0x109   :  { %4735 = vmatpush.bf16.msra.mxu3 %v7557_v17  ;;  %v8718_v38 = vadd.f32 %v4483_v36, %v4471_v35  ;;  %v7587_v17 = vld [vmem:[%s9503_s1 + $0x9e0] sm:$0xff]  ;;  %v7576_v35 = vld [vmem:[%s9503_s1 + $0x988] sm:$0xff] }
 0x10a   :  { %4697 = vmatpush.bf16.msra.mxu0 %v7532_v18  ;;  %v7584_v36 = vld [vmem:[%s9503_s1 + $0x9c8] sm:$0xff]  ;;  %v7575_v41 = vld [vmem:[%s9503_s1 + $0x980] sm:$0xff] }
 0x10b   :  { %4710 = vmatpush.bf16.msra.mxu1 %v7540_v19  ;;  %v7562_v19 = vld [vmem:[%s9503_s1 + $0x918] sm:$0xff] }
 0x10c   :  { %4723 = vmatpush.bf16.msra.mxu2 %v7548_v20  ;;  %v7570_v20 = vld [vmem:[%s9503_s1 + $0x958] sm:$0xff] }
 0x10d   :  { %4736 = vmatpush.bf16.msra.mxu3 %v7556_v21  ;;  %v7578_v21 = vld [vmem:[%s9503_s1 + $0x998] sm:$0xff] }
 0x10e   :  { %4698 = vmatpush.bf16.msra.mxu0 %v7531_v24  ;;  %v4472_v48 = vpop.f32.mrf.mxu2 }
 0x10f   :  { %4711 = vmatpush.bf16.msra.mxu1 %v7539_v25  ;;  %v4485_v49 = vpop.f32.mrf.mxu3  ;;  %v7605_v48 = vld [vmem:[%s9503_s1 + $0xa70] sm:$0xff] }
 0x110   :  { %4724 = vmatpush.bf16.msra.mxu2 %v7547_v27  ;;  %v7613_v49 = vld [vmem:[%s9503_s1 + $0xab0] sm:$0xff] }
 0x111   :  { %4737 = vmatpush.bf16.msra.mxu3 %v7555_v28  ;;  %v7561_v28 = vld [vmem:[%s9503_s1 + $0x910] sm:$0xff] }
 0x112   :  { %4699 = vmatpush.bf16.msra.mxu0 %v7530_v30 }
 0x113   :  { %4712 = vmatpush.bf16.msra.mxu1 %v7538_v31  ;;  %v7577_v31 = vld [vmem:[%s9503_s1 + $0x990] sm:$0xff] }
 0x114   :  { %4725 = vmatpush.bf16.msra.mxu2 %v7546_v32  ;;  %v7585_v32 = vld [vmem:[%s9503_s1 + $0x9d0] sm:$0xff] }
 0x115   :  { %4738 = vmatpush.bf16.msra.mxu3 %v7554_v33  ;;  %v7560_v33 = vld [vmem:[%s9503_s1 + $0x908] sm:$0xff] }
 0x116   :  { %4700 = vmatpush.bf16.msra.mxu0 %v7529_v39  ;;  %v7559_v39 = vld [vmem:[%s9503_s1 + $0x900] sm:$0xff] }
 0x117   :  { %4713 = vmatpush.bf16.msra.mxu1 %v7537_v40  ;;  %v7567_v40 = vld [vmem:[%s9503_s1 + $0x940] sm:$0xff] }
 0x118   :  { %4726 = vmatpush.bf16.msra.mxu2 %v7545_v42  ;;  %v7583_v42 = vld [vmem:[%s9503_s1 + $0x9c0] sm:$0xff] }
 0x119   :  { %4739 = vmatpush.bf16.msra.mxu3 %v7553_v43  ;;  %v7598_v43 = vld [vmem:[%s9503_s1 + $0xa38] sm:$0xff] }
 0x11a   :  { %4701 = vmatpush.bf16.msra.mxu0 %v7528_v44  ;;  %v7606_v44 = vld [vmem:[%s9503_s1 + $0xa78] sm:$0xff] }
 0x11b   :  { %4714 = vmatpush.bf16.msra.mxu1 %v7536_v45  ;;  %v7614_v45 = vld [vmem:[%s9503_s1 + $0xab8] sm:$0xff] }
 0x11c   :  { %4727 = vmatpush.bf16.msra.mxu2 %v7544_v46  ;;  %v7622_v46 = vld [vmem:[%s9503_s1 + $0xaf8] sm:$0xff] }
 0x11d   :  { %4740 = vmatpush.bf16.msra.mxu3 %v7552_v47  ;;  %v7597_v47 = vld [vmem:[%s9503_s1 + $0xa30] sm:$0xff] }
 0x11e   :  { %4702 = vmatpush.bf16.msra.mxu0 %v7527_v50  ;;  %v4496_v11 = vpop.f32.mrf.mxu0  ;;  %v7621_v50 = vld [vmem:[%s9503_s1 + $0xaf0] sm:$0xff] }
 0x11f   :  { %4715 = vmatpush.bf16.msra.mxu1 %v7535_v51  ;;  %v4497_v12 = vadd.f32 %v4496_v11, %v8718_v38  ;;  %v4509_v15 = vpop.f32.mrf.mxu1  ;;  %v7596_v51 = vld [vmem:[%s9503_s1 + $0xa28] sm:$0xff]  ;;  %v7609_v11 = vld [vmem:[%s9503_s1 + $0xa90] sm:$0xff] }
 0x120   :  { %4728 = vmatpush.bf16.msra.mxu2 %v7543_v52  ;;  %v7604_v52 = vld [vmem:[%s9503_s1 + $0xa68] sm:$0xff] }
 0x121   :  { %4741 = vmatpush.bf16.msra.mxu3 %v7551_v53  ;;  %4703 = vmatmul.bf16.vlgmr.msra.gmra.mxu0 %v1105_v59  ;;  %v4510_v18 = vadd.f32 %v4509_v15, %v4497_v12  ;;  %v7612_v53 = vld [vmem:[%s9503_s1 + $0xaa8] sm:$0xff]  ;;  %v7617_v12 = vld [vmem:[%s9503_s1 + $0xad0] sm:$0xff] }
 0x122   :  { %4747 = vmatpush.bf16.msrb.mxu0 %v7566_v54  ;;  %4716 = vmatmul.bf16.vlgmr.msra.gmra.mxu1 %v1106_v61  ;;  %v7620_v54 = vld [vmem:[%s9503_s1 + $0xae8] sm:$0xff]  ;;  %v7619_v61 = vld [vmem:[%s9503_s1 + $0xae0] sm:$0xff] }
 0x123   :  { %4760 = vmatpush.bf16.msrb.mxu1 %v7574_v55  ;;  %4729 = vmatmul.bf16.vlgmr.msra.gmra.mxu2 %v1107_v60  ;;  %v7611_v60 = vld [vmem:[%s9503_s1 + $0xaa0] sm:$0xff]  ;;  %v7608_v15 = vld [vmem:[%s9503_s1 + $0xa88] sm:$0xff] }
 0x124   :  { %4773 = vmatpush.bf16.msrb.mxu2 %v7582_v57  ;;  %4742 = vmatmul.bf16.vlgmr.msra.gmra.mxu3 %v1108_v62  ;;  %v7595_v57 = vld [vmem:[%s9503_s1 + $0xa20] sm:$0xff] }
 0x125   :  { %4786 = vmatpush.bf16.msrb.mxu3 %v7590_v58  ;;  %v7603_v58 = vld [vmem:[%s9503_s1 + $0xa60] sm:$0xff] }
 0x126   :  { %4748 = vmatpush.bf16.msrb.mxu0 %v7565_v63  ;;  %v4522_v23 = vpop.f32.mrf.mxu2  ;;  %v4498_v26 = vpop.f32.mrf.mxu0  ;;  %v7594_v63 = vld [vmem:[%s9503_s1 + $0xa18] sm:$0xff] }
 0x127   :  { %4761 = vmatpush.bf16.msrb.mxu1 %v7573_v0  ;;  %v4523_v24 = vadd.f32 %v4522_v23, %v4510_v18  ;;  %v4535_v25 = vpop.f32.mrf.mxu3  ;;  %v4511_v30 = vpop.f32.mrf.mxu1  ;;  %v7602_v0 = vld [vmem:[%s9503_s1 + $0xa58] sm:$0xff] }
 0x128   :  { %4774 = vmatpush.bf16.msrb.mxu2 %v7581_v1  ;;  %v7610_v1 = vld [vmem:[%s9503_s1 + $0xa98] sm:$0xff]  ;;  %v1116_v30 = vld [vmem:[#allocation1 + $0x9] sm:$0xff] }
 0x129   :  { %4787 = vmatpush.bf16.msrb.mxu3 %v7589_v2  ;;  %v4536_v27 = vadd.f32 %v4535_v25, %v4523_v24  ;;  %v7618_v2 = vld [vmem:[%s9503_s1 + $0xad8] sm:$0xff]  ;;  %v33_v25 = vld [vmem:[%s9504_s0 + $0x30] sm:$0xff] }
 0x12a   :  { %4749 = vmatpush.bf16.msrb.mxu0 %v7564_v7  ;;  %v7630_v23 = vld [vmem:[%s9503_s1 + $0xb38] sm:$0xff] }
 0x12b   :  { %4762 = vmatpush.bf16.msrb.mxu1 %v7572_v8  ;;  %v7593_v8 = vld [vmem:[%s9503_s1 + $0xa10] sm:$0xff]  ;;  %v7638_v24 = vld [vmem:[%s9503_s1 + $0xb78] sm:$0xff] }
 0x12c   :  { %4775 = vmatpush.bf16.msrb.mxu2 %v7580_v9  ;;  %v7601_v9 = vld [vmem:[%s9503_s1 + $0xa50] sm:$0xff]  ;;  %v7646_v26 = vld [vmem:[%s9503_s1 + $0xbb8] sm:$0xff] }
 0x12d   :  { %4788 = vmatpush.bf16.msrb.mxu3 %v7588_v10 }
 0x12e   :  { %4750 = vmatpush.bf16.msrb.mxu0 %v7563_v13  ;;  %v4524_v37 = vpop.f32.mrf.mxu2  ;;  %v7592_v13 = vld [vmem:[%s9503_s1 + $0xa08] sm:$0xff] }
 0x12f   :  { %4763 = vmatpush.bf16.msrb.mxu1 %v7571_v14  ;;  %v4537_v38 = vpop.f32.mrf.mxu3  ;;  %v7600_v14 = vld [vmem:[%s9503_s1 + $0xa48] sm:$0xff]  ;;  %v8995_v37 = vld [vmem:[#allocation1 + $0x36] sm:$0xff] }
 0x130   :  { %4776 = vmatpush.bf16.msrb.mxu2 %v7579_v16  ;;  %v7616_v16 = vld [vmem:[%s9503_s1 + $0xac8] sm:$0xff] }
 0x131   :  { %4789 = vmatpush.bf16.msrb.mxu3 %v7587_v17  ;;  %v8997_v38 = vld [vmem:[#allocation1 + $0x2d] sm:$0xff] }
 0x132   :  { %4751 = vmatpush.bf16.msrb.mxu0 %v7562_v19  ;;  %v7591_v19 = vld [vmem:[%s9503_s1 + $0xa00] sm:$0xff] }
 0x133   :  { %4764 = vmatpush.bf16.msrb.mxu1 %v7570_v20  ;;  %v7599_v20 = vld [vmem:[%s9503_s1 + $0xa40] sm:$0xff] }
 0x134   :  { %4777 = vmatpush.bf16.msrb.mxu2 %v7578_v21  ;;  %v7607_v21 = vld [vmem:[%s9503_s1 + $0xa80] sm:$0xff] }
 0x135   :  { %4790 = vmatpush.bf16.msrb.mxu3 %v7586_v22  ;;  %v7615_v22 = vld [vmem:[%s9503_s1 + $0xac0] sm:$0xff] }
 0x136   :  { %4752 = vmatpush.bf16.msrb.mxu0 %v7561_v28  ;;  %v1115_v28 = vld [vmem:[#allocation1] sm:$0xff] }
 0x137   :  { %4765 = vmatpush.bf16.msrb.mxu1 %v7569_v29  ;;  %v1117_v29 = vld [vmem:[#allocation1 + $0x12] sm:$0xff] }
 0x138   :  { %4778 = vmatpush.bf16.msrb.mxu2 %v7577_v31  ;;  %v1118_v31 = vld [vmem:[#allocation1 + $0x1b] sm:$0xff] }
 0x139   :  { %4791 = vmatpush.bf16.msrb.mxu3 %v7585_v32  ;;  %v7629_v32 = vld [vmem:[%s9503_s1 + $0xb30] sm:$0xff] }
 0x13a   :  { %4753 = vmatpush.bf16.msrb.mxu0 %v7560_v33  ;;  %v7637_v33 = vld [vmem:[%s9503_s1 + $0xb70] sm:$0xff] }
 0x13b   :  { %4766 = vmatpush.bf16.msrb.mxu1 %v7568_v34  ;;  %v7645_v34 = vld [vmem:[%s9503_s1 + $0xbb0] sm:$0xff] }
 0x13c   :  { %4779 = vmatpush.bf16.msrb.mxu2 %v7576_v35  ;;  %v7653_v35 = vld [vmem:[%s9503_s1 + $0xbf0] sm:$0xff] }
 0x13d   :  { %4792 = vmatpush.bf16.msrb.mxu3 %v7584_v36  ;;  %v8993_v36 = vld [vmem:[#allocation1 + $0x24] sm:$0xff] }
 0x13e   :  { %4754 = vmatpush.bf16.msrb.mxu0 %v7559_v39  ;;  %v4548_v55 = vpop.f32.mrf.mxu0  ;;  %v8999_v39 = vld [vmem:[#allocation1 + $0x3f] sm:$0xff] }
 0x13f   :  { %4767 = vmatpush.bf16.msrb.mxu1 %v7567_v40  ;;  %v4549_v56 = vadd.f32 %v4548_v55, %v4536_v27  ;;  %v4561_v59 = vpop.f32.mrf.mxu1  ;;  %v7654_v27 = vld [vmem:[%s9503_s1 + $0xbf8] sm:$0xff]  ;;  %1124 = vst [vmem:[#allocation1] ss:$9 sm:$0xff] %v33_v25  ;;  %v7628_v40 = vld [vmem:[%s9503_s1 + $0xb28] sm:$0xff] }
 0x140   :  { %4780 = vmatpush.bf16.msrb.mxu2 %v7575_v41  ;;  %v7636_v41 = vld [vmem:[%s9503_s1 + $0xb68] sm:$0xff]  ;;  %v7650_v55 = vld [vmem:[%s9503_s1 + $0xbd8] sm:$0xff] }
 0x141   :  { %4793 = vmatpush.bf16.msrb.mxu3 %v7583_v42  ;;  %4755 = vmatmul.bf16.vlgmr.msrb.gmra.mxu0 %v8783_v3  ;;  %v4562_v62 = vadd.f32 %v4561_v59, %v4549_v56  ;;  %v7644_v42 = vld [vmem:[%s9503_s1 + $0xba8] sm:$0xff] }
 0x142   :  { %4799 = vmatpush.bf16.msra.mxu0 %v7598_v43  ;;  %4768 = vmatmul.bf16.vlgmr.msrb.gmra.mxu1 %v8787_v5  ;;  %v7652_v43 = vld [vmem:[%s9503_s1 + $0xbe8] sm:$0xff] }
 0x143   :  { %4812 = vmatpush.bf16.msra.mxu1 %v7606_v44  ;;  %4781 = vmatmul.bf16.vlgmr.msrb.gmra.mxu2 %v8785_v4 }
 0x144   :  { %4825 = vmatpush.bf16.msra.mxu2 %v7614_v45  ;;  %4794 = vmatmul.bf16.vlgmr.msrb.gmra.mxu3 %v8789_v6 }
 0x145   :  { %4838 = vmatpush.bf16.msra.mxu3 %v7622_v46  ;;  %v7627_v46 = vld [vmem:[%s9503_s1 + $0xb20] sm:$0xff] }
 0x146   :  { %4800 = vmatpush.bf16.msra.mxu0 %v7597_v47  ;;  %v4574_v3 = vpop.f32.mrf.mxu2  ;;  %v4550_v6 = vpop.f32.mrf.mxu0  ;;  %v7635_v47 = vld [vmem:[%s9503_s1 + $0xb60] sm:$0xff] }
 0x147   :  { %4813 = vmatpush.bf16.msra.mxu1 %v7605_v48  ;;  %v4575_v4 = vadd.f32 %v4574_v3, %v4562_v62  ;;  %v4587_v5 = vpop.f32.mrf.mxu3  ;;  %v4563_v10 = vpop.f32.mrf.mxu1  ;;  %v7633_v62 = vld [vmem:[%s9503_s1 + $0xb50] sm:$0xff]  ;;  %v7632_v3 = vld [vmem:[%s9503_s1 + $0xb48] sm:$0xff] }
 0x148   :  { %4826 = vmatpush.bf16.msra.mxu2 %v7613_v49  ;;  %v7643_v49 = vld [vmem:[%s9503_s1 + $0xba0] sm:$0xff] }
 0x149   :  { %4839 = vmatpush.bf16.msra.mxu3 %v7621_v50  ;;  %v8928_v7 = vadd.f32 %v4587_v5, %v4575_v4  ;;  %v7651_v50 = vld [vmem:[%s9503_s1 + $0xbe0] sm:$0xff]  ;;  %v7640_v4 = vld [vmem:[%s9503_s1 + $0xb88] sm:$0xff] }
 0x14a   :  { %4801 = vmatpush.bf16.msra.mxu0 %v7596_v51  ;;  %v7648_v5 = vld [vmem:[%s9503_s1 + $0xbc8] sm:$0xff]  ;;  %v7639_v10 = vld [vmem:[%s9503_s1 + $0xb80] sm:$0xff] }
 0x14b   :  { %4814 = vmatpush.bf16.msra.mxu1 %v7604_v52  ;;  %v7626_v52 = vld [vmem:[%s9503_s1 + $0xb18] sm:$0xff] }
 0x14c   :  { %4827 = vmatpush.bf16.msra.mxu2 %v7612_v53  ;;  %v7634_v53 = vld [vmem:[%s9503_s1 + $0xb58] sm:$0xff] }
 0x14d   :  { %4840 = vmatpush.bf16.msra.mxu3 %v7620_v54  ;;  %v7642_v54 = vld [vmem:[%s9503_s1 + $0xb98] sm:$0xff] }
 0x14e   :  { %4802 = vmatpush.bf16.msra.mxu0 %v7595_v57  ;;  %v4576_v17 = vpop.f32.mrf.mxu2 }
 0x14f   :  { %4815 = vmatpush.bf16.msra.mxu1 %v7603_v58  ;;  %v4589_v18 = vpop.f32.mrf.mxu3  ;;  %v7669_v17 = vld [vmem:[%s9503_s1 + $0xc70] sm:$0xff] }
 0x150   :  { %4828 = vmatpush.bf16.msra.mxu2 %v7611_v60  ;;  %v7677_v18 = vld [vmem:[%s9503_s1 + $0xcb0] sm:$0xff] }
 0x151   :  { %4841 = vmatpush.bf16.msra.mxu3 %v7619_v61  ;;  %v7625_v61 = vld [vmem:[%s9503_s1 + $0xb10] sm:$0xff] }
 0x152   :  { %4803 = vmatpush.bf16.msra.mxu0 %v7594_v63 }
 0x153   :  { %4816 = vmatpush.bf16.msra.mxu1 %v7602_v0  ;;  %v7641_v0 = vld [vmem:[%s9503_s1 + $0xb90] sm:$0xff] }
 0x154   :  { %4829 = vmatpush.bf16.msra.mxu2 %v7610_v1  ;;  %v7649_v1 = vld [vmem:[%s9503_s1 + $0xbd0] sm:$0xff] }
 0x155   :  { %4842 = vmatpush.bf16.msra.mxu3 %v7618_v2  ;;  %v7624_v2 = vld [vmem:[%s9503_s1 + $0xb08] sm:$0xff] }
 0x156   :  { %4804 = vmatpush.bf16.msra.mxu0 %v7593_v8  ;;  %v7623_v8 = vld [vmem:[%s9503_s1 + $0xb00] sm:$0xff] }
 0x157   :  { %4817 = vmatpush.bf16.msra.mxu1 %v7601_v9  ;;  %v7631_v9 = vld [vmem:[%s9503_s1 + $0xb40] sm:$0xff] }
 0x158   :  { %4830 = vmatpush.bf16.msra.mxu2 %v7609_v11  ;;  %v7647_v11 = vld [vmem:[%s9503_s1 + $0xbc0] sm:$0xff] }
 0x159   :  { %4843 = vmatpush.bf16.msra.mxu3 %v7617_v12  ;;  %v7662_v12 = vld [vmem:[%s9503_s1 + $0xc38] sm:$0xff] }
 0x15a   :  { %4805 = vmatpush.bf16.msra.mxu0 %v7592_v13  ;;  %v7670_v13 = vld [vmem:[%s9503_s1 + $0xc78] sm:$0xff] }
 0x15b   :  { %4818 = vmatpush.bf16.msra.mxu1 %v7600_v14  ;;  %v7678_v14 = vld [vmem:[%s9503_s1 + $0xcb8] sm:$0xff] }
 0x15c   :  { %4831 = vmatpush.bf16.msra.mxu2 %v7608_v15  ;;  %v7686_v15 = vld [vmem:[%s9503_s1 + $0xcf8] sm:$0xff] }
 0x15d   :  { %4844 = vmatpush.bf16.msra.mxu3 %v7616_v16  ;;  %v7661_v16 = vld [vmem:[%s9503_s1 + $0xc30] sm:$0xff] }
 0x15e   :  { %4806 = vmatpush.bf16.msra.mxu0 %v7591_v19  ;;  %v4600_v44 = vpop.f32.mrf.mxu0  ;;  %v7685_v19 = vld [vmem:[%s9503_s1 + $0xcf0] sm:$0xff] }
 0x15f   :  { %4819 = vmatpush.bf16.msra.mxu1 %v7599_v20  ;;  %v4601_v45 = vadd.f32 %v4600_v44, %v8928_v7  ;;  %v4613_v48 = vpop.f32.mrf.mxu1  ;;  %v7660_v20 = vld [vmem:[%s9503_s1 + $0xc28] sm:$0xff]  ;;  %v7673_v44 = vld [vmem:[%s9503_s1 + $0xc90] sm:$0xff] }
 0x160   :  { %4832 = vmatpush.bf16.msra.mxu2 %v7607_v21  ;;  %v7668_v21 = vld [vmem:[%s9503_s1 + $0xc68] sm:$0xff] }
 0x161   :  { %4845 = vmatpush.bf16.msra.mxu3 %v7615_v22  ;;  %4807 = vmatmul.bf16.vlgmr.msra.gmra.mxu0 %v1115_v28  ;;  %v4614_v51 = vadd.f32 %v4613_v48, %v4601_v45  ;;  %v7676_v22 = vld [vmem:[%s9503_s1 + $0xca8] sm:$0xff]  ;;  %v7681_v45 = vld [vmem:[%s9503_s1 + $0xcd0] sm:$0xff] }
 0x162   :  { %4851 = vmatpush.bf16.msrb.mxu0 %v7630_v23  ;;  %4820 = vmatmul.bf16.vlgmr.msra.gmra.mxu1 %v1116_v30  ;;  %v7684_v23 = vld [vmem:[%s9503_s1 + $0xce8] sm:$0xff]  ;;  %v7683_v30 = vld [vmem:[%s9503_s1 + $0xce0] sm:$0xff] }
 0x163   :  { %4864 = vmatpush.bf16.msrb.mxu1 %v7638_v24  ;;  %4833 = vmatmul.bf16.vlgmr.msra.gmra.mxu2 %v1117_v29  ;;  %v7675_v29 = vld [vmem:[%s9503_s1 + $0xca0] sm:$0xff]  ;;  %v7672_v48 = vld [vmem:[%s9503_s1 + $0xc88] sm:$0xff] }
 0x164   :  { %4877 = vmatpush.bf16.msrb.mxu2 %v7646_v26  ;;  %4846 = vmatmul.bf16.vlgmr.msra.gmra.mxu3 %v1118_v31  ;;  %v7659_v26 = vld [vmem:[%s9503_s1 + $0xc20] sm:$0xff] }
 0x165   :  { %4890 = vmatpush.bf16.msrb.mxu3 %v7654_v27  ;;  %v7667_v27 = vld [vmem:[%s9503_s1 + $0xc60] sm:$0xff] }
 0x166   :  { %4852 = vmatpush.bf16.msrb.mxu0 %v7629_v32  ;;  %v4626_v56 = vpop.f32.mrf.mxu2  ;;  %v4602_v59 = vpop.f32.mrf.mxu0  ;;  %v7658_v32 = vld [vmem:[%s9503_s1 + $0xc18] sm:$0xff] }
 0x167   :  { %4865 = vmatpush.bf16.msrb.mxu1 %v7637_v33  ;;  %v4627_v57 = vadd.f32 %v4626_v56, %v4614_v51  ;;  %v4639_v58 = vpop.f32.mrf.mxu3  ;;  %v4615_v63 = vpop.f32.mrf.mxu1  ;;  %v7666_v33 = vld [vmem:[%s9503_s1 + $0xc58] sm:$0xff] }
 0x168   :  { %4878 = vmatpush.bf16.msrb.mxu2 %v7645_v34  ;;  %v7674_v34 = vld [vmem:[%s9503_s1 + $0xc98] sm:$0xff]  ;;  %v1126_v63 = vld [vmem:[#allocation1 + $0x9] sm:$0xff] }
 0x169   :  { %4891 = vmatpush.bf16.msrb.mxu3 %v7653_v35  ;;  %v4640_v60 = vadd.f32 %v4639_v58, %v4627_v57  ;;  %v7682_v35 = vld [vmem:[%s9503_s1 + $0xcd8] sm:$0xff] }
 0x16a   :  { %4853 = vmatpush.bf16.msrb.mxu0 %v7628_v40  ;;  %v7694_v56 = vld [vmem:[%s9503_s1 + $0xd38] sm:$0xff] }
 0x16b   :  { %4866 = vmatpush.bf16.msrb.mxu1 %v7636_v41  ;;  %v7657_v41 = vld [vmem:[%s9503_s1 + $0xc10] sm:$0xff]  ;;  %v7702_v57 = vld [vmem:[%s9503_s1 + $0xd78] sm:$0xff] }
 0x16c   :  { %4879 = vmatpush.bf16.msrb.mxu2 %v7644_v42  ;;  %v7665_v42 = vld [vmem:[%s9503_s1 + $0xc50] sm:$0xff]  ;;  %v34_v58 = vld [vmem:[%s9504_s0 + $0x38] sm:$0xff] }
 0x16d   :  { %4892 = vmatpush.bf16.msrb.mxu3 %v7652_v43  ;;  %v7710_v59 = vld [vmem:[%s9503_s1 + $0xdb8] sm:$0xff] }
 0x16e   :  { %4854 = vmatpush.bf16.msrb.mxu0 %v7627_v46  ;;  %v4628_v6 = vpop.f32.mrf.mxu2  ;;  %v7656_v46 = vld [vmem:[%s9503_s1 + $0xc08] sm:$0xff] }
 0x16f   :  { %4867 = vmatpush.bf16.msrb.mxu1 %v7635_v47  ;;  %v4641_v7 = vpop.f32.mrf.mxu3  ;;  %v7664_v47 = vld [vmem:[%s9503_s1 + $0xc48] sm:$0xff]  ;;  %v9205_v6 = vld [vmem:[#allocation1 + $0x36] sm:$0xff] }
 0x170   :  { %4880 = vmatpush.bf16.msrb.mxu2 %v7643_v49  ;;  %v7680_v49 = vld [vmem:[%s9503_s1 + $0xcc8] sm:$0xff] }
 0x171   :  { %4893 = vmatpush.bf16.msrb.mxu3 %v7651_v50  ;;  %v9207_v7 = vld [vmem:[#allocation1 + $0x2d] sm:$0xff] }
 0x172   :  { %4855 = vmatpush.bf16.msrb.mxu0 %v7626_v52  ;;  %v7655_v52 = vld [vmem:[%s9503_s1 + $0xc00] sm:$0xff] }
 0x173   :  { %4868 = vmatpush.bf16.msrb.mxu1 %v7634_v53  ;;  %v7663_v53 = vld [vmem:[%s9503_s1 + $0xc40] sm:$0xff] }
 0x174   :  { %4881 = vmatpush.bf16.msrb.mxu2 %v7642_v54  ;;  %v7671_v54 = vld [vmem:[%s9503_s1 + $0xc80] sm:$0xff] }
 0x175   :  { %4894 = vmatpush.bf16.msrb.mxu3 %v7650_v55  ;;  %v7679_v55 = vld [vmem:[%s9503_s1 + $0xcc0] sm:$0xff] }
 0x176   :  { %4856 = vmatpush.bf16.msrb.mxu0 %v7625_v61  ;;  %v1125_v61 = vld [vmem:[#allocation1] sm:$0xff] }
 0x177   :  { %4869 = vmatpush.bf16.msrb.mxu1 %v7633_v62  ;;  %v1127_v62 = vld [vmem:[#allocation1 + $0x12] sm:$0xff] }
 0x178   :  { %4882 = vmatpush.bf16.msrb.mxu2 %v7641_v0  ;;  %v1128_v0 = vld [vmem:[#allocation1 + $0x1b] sm:$0xff] }
 0x179   :  { %4895 = vmatpush.bf16.msrb.mxu3 %v7649_v1  ;;  %v7693_v1 = vld [vmem:[%s9503_s1 + $0xd30] sm:$0xff] }
 0x17a   :  { %4857 = vmatpush.bf16.msrb.mxu0 %v7624_v2  ;;  %v7701_v2 = vld [vmem:[%s9503_s1 + $0xd70] sm:$0xff] }
 0x17b   :  { %4870 = vmatpush.bf16.msrb.mxu1 %v7632_v3  ;;  %v7709_v3 = vld [vmem:[%s9503_s1 + $0xdb0] sm:$0xff] }
 0x17c   :  { %4883 = vmatpush.bf16.msrb.mxu2 %v7640_v4  ;;  %v7717_v4 = vld [vmem:[%s9503_s1 + $0xdf0] sm:$0xff] }
 0x17d   :  { %4896 = vmatpush.bf16.msrb.mxu3 %v7648_v5  ;;  %v9203_v5 = vld [vmem:[#allocation1 + $0x24] sm:$0xff] }
 0x17e   :  { %4858 = vmatpush.bf16.msrb.mxu0 %v7623_v8  ;;  %v4652_v24 = vpop.f32.mrf.mxu0  ;;  %v9209_v8 = vld [vmem:[#allocation1 + $0x3f] sm:$0xff] }
 0x17f   :  { %4871 = vmatpush.bf16.msrb.mxu1 %v7631_v9  ;;  %v4653_v25 = vadd.f32 %v4652_v24, %v4640_v60  ;;  %v4665_v28 = vpop.f32.mrf.mxu1  ;;  %v7718_v60 = vld [vmem:[%s9503_s1 + $0xdf8] sm:$0xff]  ;;  %1134 = vst [vmem:[#allocation1] ss:$9 sm:$0xff] %v34_v58  ;;  %v7692_v9 = vld [vmem:[%s9503_s1 + $0xd28] sm:$0xff] }
 0x180   :  { %4884 = vmatpush.bf16.msrb.mxu2 %v7639_v10  ;;  %v7700_v10 = vld [vmem:[%s9503_s1 + $0xd68] sm:$0xff]  ;;  %v7714_v24 = vld [vmem:[%s9503_s1 + $0xdd8] sm:$0xff] }
 0x181   :  { %4897 = vmatpush.bf16.msrb.mxu3 %v7647_v11  ;;  %4859 = vmatmul.bf16.vlgmr.msrb.gmra.mxu0 %v8993_v36  ;;  %v4666_v31 = vadd.f32 %v4665_v28, %v4653_v25  ;;  %v7708_v11 = vld [vmem:[%s9503_s1 + $0xda8] sm:$0xff] }
 0x182   :  { %4903 = vmatpush.bf16.msra.mxu0 %v7662_v12  ;;  %4872 = vmatmul.bf16.vlgmr.msrb.gmra.mxu1 %v8997_v38  ;;  %v7716_v12 = vld [vmem:[%s9503_s1 + $0xde8] sm:$0xff] }
 0x183   :  { %4916 = vmatpush.bf16.msra.mxu1 %v7670_v13  ;;  %4885 = vmatmul.bf16.vlgmr.msrb.gmra.mxu2 %v8995_v37 }
 0x184   :  { %4929 = vmatpush.bf16.msra.mxu2 %v7678_v14  ;;  %4898 = vmatmul.bf16.vlgmr.msrb.gmra.mxu3 %v8999_v39 }
 0x185   :  { %4942 = vmatpush.bf16.msra.mxu3 %v7686_v15  ;;  %v7691_v15 = vld [vmem:[%s9503_s1 + $0xd20] sm:$0xff] }
 0x186   :  { %4904 = vmatpush.bf16.msra.mxu0 %v7661_v16  ;;  %v4678_v36 = vpop.f32.mrf.mxu2  ;;  %v4654_v39 = vpop.f32.mrf.mxu0  ;;  %v7699_v16 = vld [vmem:[%s9503_s1 + $0xd60] sm:$0xff] }
 0x187   :  { %4917 = vmatpush.bf16.msra.mxu1 %v7669_v17  ;;  %v4679_v37 = vadd.f32 %v4678_v36, %v4666_v31  ;;  %v4691_v38 = vpop.f32.mrf.mxu3  ;;  %v4667_v43 = vpop.f32.mrf.mxu1  ;;  %v7697_v31 = vld [vmem:[%s9503_s1 + $0xd50] sm:$0xff]  ;;  %v7696_v36 = vld [vmem:[%s9503_s1 + $0xd48] sm:$0xff] }
 0x188   :  { %4930 = vmatpush.bf16.msra.mxu2 %v7677_v18  ;;  %v7707_v18 = vld [vmem:[%s9503_s1 + $0xda0] sm:$0xff] }
 0x189   :  { %4943 = vmatpush.bf16.msra.mxu3 %v7685_v19  ;;  %v9138_v40 = vadd.f32 %v4691_v38, %v4679_v37  ;;  %v7715_v19 = vld [vmem:[%s9503_s1 + $0xde0] sm:$0xff]  ;;  %v7704_v37 = vld [vmem:[%s9503_s1 + $0xd88] sm:$0xff] }
 0x18a   :  { %4905 = vmatpush.bf16.msra.mxu0 %v7660_v20  ;;  %v7712_v38 = vld [vmem:[%s9503_s1 + $0xdc8] sm:$0xff]  ;;  %v7703_v43 = vld [vmem:[%s9503_s1 + $0xd80] sm:$0xff] }
 0x18b   :  { %4918 = vmatpush.bf16.msra.mxu1 %v7668_v21  ;;  %v7690_v21 = vld [vmem:[%s9503_s1 + $0xd18] sm:$0xff] }
 0x18c   :  { %4931 = vmatpush.bf16.msra.mxu2 %v7676_v22  ;;  %v7698_v22 = vld [vmem:[%s9503_s1 + $0xd58] sm:$0xff] }
 0x18d   :  { %4944 = vmatpush.bf16.msra.mxu3 %v7684_v23  ;;  %v7706_v23 = vld [vmem:[%s9503_s1 + $0xd98] sm:$0xff] }
 0x18e   :  { %4906 = vmatpush.bf16.msra.mxu0 %v7659_v26  ;;  %v4680_v50 = vpop.f32.mrf.mxu2 }
 0x18f   :  { %4919 = vmatpush.bf16.msra.mxu1 %v7667_v27  ;;  %v4693_v51 = vpop.f32.mrf.mxu3  ;;  %v7733_v50 = vld [vmem:[%s9503_s1 + $0xe70] sm:$0xff] }
 0x190   :  { %4932 = vmatpush.bf16.msra.mxu2 %v7675_v29  ;;  %v7741_v51 = vld [vmem:[%s9503_s1 + $0xeb0] sm:$0xff] }
 0x191   :  { %4945 = vmatpush.bf16.msra.mxu3 %v7683_v30  ;;  %v7689_v30 = vld [vmem:[%s9503_s1 + $0xd10] sm:$0xff] }
 0x192   :  { %4907 = vmatpush.bf16.msra.mxu0 %v7658_v32 }
 0x193   :  { %4920 = vmatpush.bf16.msra.mxu1 %v7666_v33  ;;  %v7705_v33 = vld [vmem:[%s9503_s1 + $0xd90] sm:$0xff] }
 0x194   :  { %4933 = vmatpush.bf16.msra.mxu2 %v7674_v34  ;;  %v7713_v34 = vld [vmem:[%s9503_s1 + $0xdd0] sm:$0xff] }
 0x195   :  { %4946 = vmatpush.bf16.msra.mxu3 %v7682_v35  ;;  %v7688_v35 = vld [vmem:[%s9503_s1 + $0xd08] sm:$0xff] }
 0x196   :  { %4908 = vmatpush.bf16.msra.mxu0 %v7657_v41  ;;  %v7687_v41 = vld [vmem:[%s9503_s1 + $0xd00] sm:$0xff] }
 0x197   :  { %4921 = vmatpush.bf16.msra.mxu1 %v7665_v42  ;;  %v7695_v42 = vld [vmem:[%s9503_s1 + $0xd40] sm:$0xff] }
 0x198   :  { %4934 = vmatpush.bf16.msra.mxu2 %v7673_v44  ;;  %v7711_v44 = vld [vmem:[%s9503_s1 + $0xdc0] sm:$0xff] }
 0x199   :  { %4947 = vmatpush.bf16.msra.mxu3 %v7681_v45  ;;  %v7726_v45 = vld [vmem:[%s9503_s1 + $0xe38] sm:$0xff] }
 0x19a   :  { %4909 = vmatpush.bf16.msra.mxu0 %v7656_v46  ;;  %v7734_v46 = vld [vmem:[%s9503_s1 + $0xe78] sm:$0xff] }
 0x19b   :  { %4922 = vmatpush.bf16.msra.mxu1 %v7664_v47  ;;  %v7742_v47 = vld [vmem:[%s9503_s1 + $0xeb8] sm:$0xff] }
 0x19c   :  { %4935 = vmatpush.bf16.msra.mxu2 %v7672_v48  ;;  %v7750_v48 = vld [vmem:[%s9503_s1 + $0xef8] sm:$0xff] }
 0x19d   :  { %4948 = vmatpush.bf16.msra.mxu3 %v7680_v49  ;;  %v7725_v49 = vld [vmem:[%s9503_s1 + $0xe30] sm:$0xff] }
 0x19e   :  { %4910 = vmatpush.bf16.msra.mxu0 %v7655_v52  ;;  %v4704_v13 = vpop.f32.mrf.mxu0  ;;  %v7749_v52 = vld [vmem:[%s9503_s1 + $0xef0] sm:$0xff] }
 0x19f   :  { %4923 = vmatpush.bf16.msra.mxu1 %v7663_v53  ;;  %v4705_v14 = vadd.f32 %v4704_v13, %v9138_v40  ;;  %v4717_v17 = vpop.f32.mrf.mxu1  ;;  %v7724_v53 = vld [vmem:[%s9503_s1 + $0xe28] sm:$0xff]  ;;  %v7737_v13 = vld [vmem:[%s9503_s1 + $0xe90] sm:$0xff] }
 0x1a0   :  { %4936 = vmatpush.bf16.msra.mxu2 %v7671_v54  ;;  %v7732_v54 = vld [vmem:[%s9503_s1 + $0xe68] sm:$0xff] }
 0x1a1   :  { %4949 = vmatpush.bf16.msra.mxu3 %v7679_v55  ;;  %4911 = vmatmul.bf16.vlgmr.msra.gmra.mxu0 %v1125_v61  ;;  %v4718_v20 = vadd.f32 %v4717_v17, %v4705_v14  ;;  %v7740_v55 = vld [vmem:[%s9503_s1 + $0xea8] sm:$0xff]  ;;  %v7745_v14 = vld [vmem:[%s9503_s1 + $0xed0] sm:$0xff] }
 0x1a2   :  { %4955 = vmatpush.bf16.msrb.mxu0 %v7694_v56  ;;  %4924 = vmatmul.bf16.vlgmr.msra.gmra.mxu1 %v1126_v63  ;;  %v7748_v56 = vld [vmem:[%s9503_s1 + $0xee8] sm:$0xff]  ;;  %v7747_v63 = vld [vmem:[%s9503_s1 + $0xee0] sm:$0xff] }
 0x1a3   :  { %4968 = vmatpush.bf16.msrb.mxu1 %v7702_v57  ;;  %4937 = vmatmul.bf16.vlgmr.msra.gmra.mxu2 %v1127_v62  ;;  %v7739_v62 = vld [vmem:[%s9503_s1 + $0xea0] sm:$0xff]  ;;  %v7736_v17 = vld [vmem:[%s9503_s1 + $0xe88] sm:$0xff] }
 0x1a4   :  { %4981 = vmatpush.bf16.msrb.mxu2 %v7710_v59  ;;  %4950 = vmatmul.bf16.vlgmr.msra.gmra.mxu3 %v1128_v0  ;;  %v7723_v59 = vld [vmem:[%s9503_s1 + $0xe20] sm:$0xff] }
 0x1a5   :  { %4994 = vmatpush.bf16.msrb.mxu3 %v7718_v60  ;;  %v7731_v60 = vld [vmem:[%s9503_s1 + $0xe60] sm:$0xff] }
 0x1a6   :  { %4956 = vmatpush.bf16.msrb.mxu0 %v7693_v1  ;;  %v4730_v25 = vpop.f32.mrf.mxu2  ;;  %v4706_v28 = vpop.f32.mrf.mxu0  ;;  %v7722_v1 = vld [vmem:[%s9503_s1 + $0xe18] sm:$0xff] }
 0x1a7   :  { %4969 = vmatpush.bf16.msrb.mxu1 %v7701_v2  ;;  %v4731_v26 = vadd.f32 %v4730_v25, %v4718_v20  ;;  %v4743_v27 = vpop.f32.mrf.mxu3  ;;  %v4719_v32 = vpop.f32.mrf.mxu1  ;;  %v7730_v2 = vld [vmem:[%s9503_s1 + $0xe58] sm:$0xff] }
 0x1a8   :  { %4982 = vmatpush.bf16.msrb.mxu2 %v7709_v3  ;;  %v7738_v3 = vld [vmem:[%s9503_s1 + $0xe98] sm:$0xff] }
 0x1a9   :  { %4995 = vmatpush.bf16.msrb.mxu3 %v7717_v4  ;;  %v4744_v29 = vadd.f32 %v4743_v27, %v4731_v26  ;;  %v7746_v4 = vld [vmem:[%s9503_s1 + $0xed8] sm:$0xff] }
 0x1aa   :  { %4957 = vmatpush.bf16.msrb.mxu0 %v7692_v9  ;;  %v7758_v25 = vld [vmem:[%s9503_s1 + $0xf38] sm:$0xff] }
 0x1ab   :  { %4970 = vmatpush.bf16.msrb.mxu1 %v7700_v10  ;;  %v7721_v10 = vld [vmem:[%s9503_s1 + $0xe10] sm:$0xff]  ;;  %v7766_v26 = vld [vmem:[%s9503_s1 + $0xf78] sm:$0xff] }
 0x1ac   :  { %4983 = vmatpush.bf16.msrb.mxu2 %v7708_v11  ;;  %v7729_v11 = vld [vmem:[%s9503_s1 + $0xe50] sm:$0xff]  ;;  %v7774_v27 = vld [vmem:[%s9503_s1 + $0xfb8] sm:$0xff] }
 0x1ad   :  { %4996 = vmatpush.bf16.msrb.mxu3 %v7716_v12  ;;  %v7782_v28 = vld [vmem:[%s9503_s1 + $0xff8] sm:$0xff] }
 0x1ae   :  { %4958 = vmatpush.bf16.msrb.mxu0 %v7691_v15  ;;  %v4732_v39 = vpop.f32.mrf.mxu2  ;;  %v7720_v15 = vld [vmem:[%s9503_s1 + $0xe08] sm:$0xff]  ;;  %v1138_v32 = vld [vmem:[#allocation1 + $0x1b] sm:$0xff] }
 0x1af   :  { %4971 = vmatpush.bf16.msrb.mxu1 %v7699_v16  ;;  %v4745_v40 = vpop.f32.mrf.mxu3  ;;  %v7728_v16 = vld [vmem:[%s9503_s1 + $0xe48] sm:$0xff] }
 0x1b0   :  { %4984 = vmatpush.bf16.msrb.mxu2 %v7707_v18  ;;  %v7744_v18 = vld [vmem:[%s9503_s1 + $0xec8] sm:$0xff] }
 0x1b1   :  { %4997 = vmatpush.bf16.msrb.mxu3 %v7715_v19  ;;  %v7772_v39 = vld [vmem:[%s9503_s1 + $0xfa8] sm:$0xff] }
 0x1b2   :  { %4959 = vmatpush.bf16.msrb.mxu0 %v7690_v21  ;;  %v7719_v21 = vld [vmem:[%s9503_s1 + $0xe00] sm:$0xff]  ;;  %v7780_v40 = vld [vmem:[%s9503_s1 + $0xfe8] sm:$0xff] }
 0x1b3   :  { %4972 = vmatpush.bf16.msrb.mxu1 %v7698_v22  ;;  %v7727_v22 = vld [vmem:[%s9503_s1 + $0xe40] sm:$0xff] }
 0x1b4   :  { %4985 = vmatpush.bf16.msrb.mxu2 %v7706_v23  ;;  %v7735_v23 = vld [vmem:[%s9503_s1 + $0xe80] sm:$0xff] }
 0x1b5   :  { %4998 = vmatpush.bf16.msrb.mxu3 %v7714_v24  ;;  %v7743_v24 = vld [vmem:[%s9503_s1 + $0xec0] sm:$0xff] }
 0x1b6   :  { %4960 = vmatpush.bf16.msrb.mxu0 %v7689_v30  ;;  %v1137_v30 = vld [vmem:[#allocation1 + $0x12] sm:$0xff] }
 0x1b7   :  { %4973 = vmatpush.bf16.msrb.mxu1 %v7697_v31  ;;  %v1136_v31 = vld [vmem:[#allocation1 + $0x9] sm:$0xff] }
 0x1b8   :  { %4986 = vmatpush.bf16.msrb.mxu2 %v7705_v33  ;;  %v7757_v33 = vld [vmem:[%s9503_s1 + $0xf30] sm:$0xff] }
 0x1b9   :  { %4999 = vmatpush.bf16.msrb.mxu3 %v7713_v34  ;;  %v7765_v34 = vld [vmem:[%s9503_s1 + $0xf70] sm:$0xff] }
 0x1ba   :  { %4961 = vmatpush.bf16.msrb.mxu0 %v7688_v35  ;;  %v7773_v35 = vld [vmem:[%s9503_s1 + $0xfb0] sm:$0xff] }
 0x1bb   :  { %4974 = vmatpush.bf16.msrb.mxu1 %v7696_v36  ;;  %v7781_v36 = vld [vmem:[%s9503_s1 + $0xff0] sm:$0xff] }
 0x1bc   :  { %4987 = vmatpush.bf16.msrb.mxu2 %v7704_v37  ;;  %v7756_v37 = vld [vmem:[%s9503_s1 + $0xf28] sm:$0xff] }
 0x1bd   :  { %5000 = vmatpush.bf16.msrb.mxu3 %v7712_v38  ;;  %v7764_v38 = vld [vmem:[%s9503_s1 + $0xf68] sm:$0xff] }
 0x1be   :  { %4962 = vmatpush.bf16.msrb.mxu0 %v7687_v41  ;;  %v4756_v57 = vpop.f32.mrf.mxu0 }
 0x1bf   :  { %4975 = vmatpush.bf16.msrb.mxu1 %v7695_v42  ;;  %v4757_v58 = vadd.f32 %v4756_v57, %v4744_v29  ;;  %v4769_v61 = vpop.f32.mrf.mxu1  ;;  %v1135_v29 = vld [vmem:[#allocation1] sm:$0xff] }
 0x1c0   :  { %4988 = vmatpush.bf16.msrb.mxu2 %v7703_v43  ;;  %v7755_v43 = vld [vmem:[%s9503_s1 + $0xf20] sm:$0xff] }
 0x1c1   :  { %5001 = vmatpush.bf16.msrb.mxu3 %v7711_v44  ;;  %4963 = vmatmul.bf16.vlgmr.msrb.gmra.mxu0 %v9203_v5  ;;  %v4770_v0 = vadd.f32 %v4769_v61, %v4757_v58  ;;  %v7763_v44 = vld [vmem:[%s9503_s1 + $0xf60] sm:$0xff]  ;;  %v7753_v58 = vld [vmem:[%s9503_s1 + $0xf10] sm:$0xff] }
 0x1c2   :  { %5007 = vmatpush.bf16.msra.mxu0 %v7726_v45  ;;  %4976 = vmatmul.bf16.vlgmr.msrb.gmra.mxu1 %v9207_v7  ;;  %v7769_v61 = vld [vmem:[%s9503_s1 + $0xf90] sm:$0xff] }
 0x1c3   :  { %5020 = vmatpush.bf16.msra.mxu1 %v7734_v46  ;;  %4989 = vmatmul.bf16.vlgmr.msrb.gmra.mxu2 %v9205_v6  ;;  %v7771_v46 = vld [vmem:[%s9503_s1 + $0xfa0] sm:$0xff] }
 0x1c4   :  { %5033 = vmatpush.bf16.msra.mxu2 %v7742_v47  ;;  %5002 = vmatmul.bf16.vlgmr.msrb.gmra.mxu3 %v9209_v8  ;;  %v7779_v47 = vld [vmem:[%s9503_s1 + $0xfe0] sm:$0xff] }
 0x1c5   :  { %5046 = vmatpush.bf16.msra.mxu3 %v7750_v48 }
 0x1c6   :  { %5008 = vmatpush.bf16.msra.mxu0 %v7725_v49  ;;  %v4782_v5 = vpop.f32.mrf.mxu2  ;;  %v4758_v8 = vpop.f32.mrf.mxu0  ;;  %v7754_v49 = vld [vmem:[%s9503_s1 + $0xf18] sm:$0xff] }
 0x1c7   :  { %5021 = vmatpush.bf16.msra.mxu1 %v7733_v50  ;;  %v4783_v6 = vadd.f32 %v4782_v5, %v4770_v0  ;;  %v4795_v7 = vpop.f32.mrf.mxu3  ;;  %v4771_v12 = vpop.f32.mrf.mxu1  ;;  %v7762_v50 = vld [vmem:[%s9503_s1 + $0xf58] sm:$0xff]  ;;  %v7760_v0 = vld [vmem:[%s9503_s1 + $0xf48] sm:$0xff]  ;;  %v7751_v5 = vld [vmem:[%s9503_s1 + $0xf00] sm:$0xff] }
 0x1c8   :  { %5034 = vmatpush.bf16.msra.mxu2 %v7741_v51  ;;  %v7770_v51 = vld [vmem:[%s9503_s1 + $0xf98] sm:$0xff]  ;;  %v7775_v8 = vld [vmem:[%s9503_s1 + $0xfc0] sm:$0xff] }
 0x1c9   :  { %5047 = vmatpush.bf16.msra.mxu3 %v7749_v52  ;;  %v4796_v9 = vadd.f32 %v4795_v7, %v4783_v6  ;;  %v7778_v52 = vld [vmem:[%s9503_s1 + $0xfd8] sm:$0xff]  ;;  %v7759_v6 = vld [vmem:[%s9503_s1 + $0xf40] sm:$0xff] }
 0x1ca   :  { %5009 = vmatpush.bf16.msra.mxu0 %v7724_v53  ;;  %v7767_v7 = vld [vmem:[%s9503_s1 + $0xf80] sm:$0xff] }
 0x1cb   :  { %5022 = vmatpush.bf16.msra.mxu1 %v7732_v54  ;;  %v1142_v12 = vld [vmem:[#allocation1 + $0x3f] sm:$0xff] }
 0x1cc   :  { %5035 = vmatpush.bf16.msra.mxu2 %v7740_v55 }
 0x1cd   :  { %5048 = vmatpush.bf16.msra.mxu3 %v7748_v56 }
 0x1ce   :  { %5010 = vmatpush.bf16.msra.mxu0 %v7723_v59  ;;  %v4784_v19 = vpop.f32.mrf.mxu2  ;;  %v7761_v59 = vld [vmem:[%s9503_s1 + $0xf50] sm:$0xff] }
 0x1cf   :  { %5023 = vmatpush.bf16.msra.mxu1 %v7731_v60  ;;  %v4797_v20 = vpop.f32.mrf.mxu3 }
 0x1d0   :  { %5036 = vmatpush.bf16.msra.mxu2 %v7739_v62  ;;  %v7777_v62 = vld [vmem:[%s9503_s1 + $0xfd0] sm:$0xff] }
 0x1d1   :  { %5049 = vmatpush.bf16.msra.mxu3 %v7747_v63  ;;  %v7752_v63 = vld [vmem:[%s9503_s1 + $0xf08] sm:$0xff] }
 0x1d2   :  { %5011 = vmatpush.bf16.msra.mxu0 %v7722_v1  ;;  %v7768_v1 = vld [vmem:[%s9503_s1 + $0xf88] sm:$0xff] }
 0x1d3   :  { %5024 = vmatpush.bf16.msra.mxu1 %v7730_v2  ;;  %v7776_v2 = vld [vmem:[%s9503_s1 + $0xfc8] sm:$0xff] }
 0x1d4   :  { %5037 = vmatpush.bf16.msra.mxu2 %v7738_v3 }
 0x1d5   :  { %5050 = vmatpush.bf16.msra.mxu3 %v7746_v4 }
 0x1d6   :  { %5012 = vmatpush.bf16.msra.mxu0 %v7721_v10  ;;  %v1140_v10 = vld [vmem:[#allocation1 + $0x2d] sm:$0xff] }
 0x1d7   :  { %5025 = vmatpush.bf16.msra.mxu1 %v7729_v11  ;;  %v1141_v11 = vld [vmem:[#allocation1 + $0x36] sm:$0xff] }
 0x1d8   :  { %5038 = vmatpush.bf16.msra.mxu2 %v7737_v13 }
 0x1d9   :  { %5051 = vmatpush.bf16.msra.mxu3 %v7745_v14 }
 0x1da   :  { %5013 = vmatpush.bf16.msra.mxu0 %v7720_v15 }
 0x1db   :  { %5026 = vmatpush.bf16.msra.mxu1 %v7728_v16 }
 0x1dc   :  { %5039 = vmatpush.bf16.msra.mxu2 %v7736_v17 }
 0x1dd   :  { %5052 = vmatpush.bf16.msra.mxu3 %v7744_v18 }
 0x1de   :  { %5014 = vmatpush.bf16.msra.mxu0 %v7719_v21  ;;  %v4808_v41 = vpop.f32.mrf.mxu0 }
 0x1df   :  { %5027 = vmatpush.bf16.msra.mxu1 %v7727_v22  ;;  %v4809_v42 = vadd.f32 %v4808_v41, %v4796_v9  ;;  %v4821_v45 = vpop.f32.mrf.mxu1  ;;  %v1139_v9 = vld [vmem:[#allocation1 + $0x24] sm:$0xff] }
 0x1e0   :  { %5040 = vmatpush.bf16.msra.mxu2 %v7735_v23 }
 0x1e1   :  { %5053 = vmatpush.bf16.msra.mxu3 %v7743_v24  ;;  %5015 = vmatmul.bf16.vlgmr.msra.gmra.mxu0 %v1135_v29  ;;  %v4822_v48 = vadd.f32 %v4821_v45, %v4809_v42 }
 0x1e2   :  { %5059 = vmatpush.bf16.msrb.mxu0 %v7758_v25  ;;  %5028 = vmatmul.bf16.vlgmr.msra.gmra.mxu1 %v1136_v31 }
 0x1e3   :  { %5072 = vmatpush.bf16.msrb.mxu1 %v7766_v26  ;;  %5041 = vmatmul.bf16.vlgmr.msra.gmra.mxu2 %v1137_v30 }
 0x1e4   :  { %5085 = vmatpush.bf16.msrb.mxu2 %v7774_v27  ;;  %5054 = vmatmul.bf16.vlgmr.msra.gmra.mxu3 %v1138_v32 }
 0x1e5   :  { %5098 = vmatpush.bf16.msrb.mxu3 %v7782_v28 }
 0x1e6   :  { %5060 = vmatpush.bf16.msrb.mxu0 %v7757_v33  ;;  %v4834_v53 = vpop.f32.mrf.mxu2  ;;  %v4810_v56 = vpop.f32.mrf.mxu0 }
 0x1e7   :  { %5073 = vmatpush.bf16.msrb.mxu1 %v7765_v34  ;;  %v4835_v54 = vadd.f32 %v4834_v53, %v4822_v48  ;;  %v4847_v55 = vpop.f32.mrf.mxu3  ;;  %v4823_v60 = vpop.f32.mrf.mxu1  ;;  %v7792_v53 = vmov 32  }
 0x1e8   :  { %5086 = vmatpush.bf16.msrb.mxu2 %v7773_v35  ;;  %7788 = vset.pattern.permute.xlu0 %v7792_v53 }
 0x1e9   :  { %5099 = vmatpush.bf16.msrb.mxu3 %v7781_v36  ;;  %v4848_v57 = vadd.f32 %v4847_v55, %v4835_v54 }
 0x1ea   :  { %5061 = vmatpush.bf16.msrb.mxu0 %v7756_v37 }
 0x1eb   :  { %5074 = vmatpush.bf16.msrb.mxu1 %v7764_v38 }
 0x1ec   :  { %5087 = vmatpush.bf16.msrb.mxu2 %v7772_v39 }
 0x1ed   :  { %5100 = vmatpush.bf16.msrb.mxu3 %v7780_v40 }
 0x1ee   :  { %5062 = vmatpush.bf16.msrb.mxu0 %v7755_v43  ;;  %v4836_v3 = vpop.f32.mrf.mxu2  ;;  %v7784_v43 = vld [vmem:[%s9506_s3 + $0x8] sm:$0xff] }
 0x1ef   :  { %5075 = vmatpush.bf16.msrb.mxu1 %v7763_v44  ;;  %v4849_v4 = vpop.f32.mrf.mxu3 }
 0x1f0   :  { %5088 = vmatpush.bf16.msrb.mxu2 %v7771_v46 }
 0x1f1   :  { %5101 = vmatpush.bf16.msrb.mxu3 %v7779_v47 }
 0x1f2   :  { %5063 = vmatpush.bf16.msrb.mxu0 %v7754_v49 }
 0x1f3   :  { %5076 = vmatpush.bf16.msrb.mxu1 %v7762_v50 }
 0x1f4   :  { %5089 = vmatpush.bf16.msrb.mxu2 %v7770_v51 }
 0x1f5   :  { %5102 = vmatpush.bf16.msrb.mxu3 %v7778_v52  ;;  %v7783_v52 = vld [vmem:[%s9506_s3] sm:$0xff] }
 0x1f6   :  { %5064 = vmatpush.bf16.msrb.mxu0 %v7753_v58 }
 0x1f7   :  { %5077 = vmatpush.bf16.msrb.mxu1 %v7761_v59 }
 0x1f8   :  { %5090 = vmatpush.bf16.msrb.mxu2 %v7769_v61 }
 0x1f9   :  { %5103 = vmatpush.bf16.msrb.mxu3 %v7777_v62 }
 0x1fa   :  { %5065 = vmatpush.bf16.msrb.mxu0 %v7752_v63 }
 0x1fb   :  { %5078 = vmatpush.bf16.msrb.mxu1 %v7760_v0 }
 0x1fc   :  { %5091 = vmatpush.bf16.msrb.mxu2 %v7768_v1 }
 0x1fd   :  { %5104 = vmatpush.bf16.msrb.mxu3 %v7776_v2 }
 0x1fe   :  { %5066 = vmatpush.bf16.msrb.mxu0 %v7751_v5  ;;  %v4860_v13 = vpop.f32.mrf.mxu0 }
 0x1ff   :  { %5079 = vmatpush.bf16.msrb.mxu1 %v7759_v6  ;;  %v4861_v14 = vadd.f32 %v4860_v13, %v4848_v57  ;;  %v4873_v15 = vpop.f32.mrf.mxu1 }
 0x200   :  { %5092 = vmatpush.bf16.msrb.mxu2 %v7767_v7 }
 0x201   :  { %5105 = vmatpush.bf16.msrb.mxu3 %v7775_v8  ;;  %5067 = vmatmul.bf16.vlgmr.msrb.gmra.mxu0 %v1139_v9  ;;  %v4874_v16 = vadd.f32 %v4873_v15, %v4861_v14  ;;  %v7786_v14 = vld [vmem:[%s9509_s5 + $0x8] sm:$0xff]  ;;  %v7785_v15 = vld [vmem:[%s9509_s5] sm:$0xff] }
 0x202   :  { %5080 = vmatmul.bf16.vlgmr.msrb.gmra.mxu1 %v1140_v10  ;;  %5143 = vmatpush.bf16.msra.mxu0 %v7784_v43 }
 0x203   :  { %5093 = vmatmul.bf16.vlgmr.msrb.gmra.mxu2 %v1141_v11  ;;  %5181 = vmatpush.bf16.msra.mxu1 %v7786_v14 }
 0x204   :  { %5106 = vmatmul.bf16.vlgmr.msrb.gmra.mxu3 %v1142_v12 }
 0x206   :  { %v4886_v17 = vpop.f32.mrf.mxu2  ;;  %v4862_v20 = vpop.f32.mrf.mxu0  ;;  %5144 = vmatpush.bf16.msra.mxu0 %v7783_v52 }
 0x207   :  { %v4887_v18 = vadd.f32 %v4886_v17, %v4874_v16  ;;  %v4899_v19 = vpop.f32.mrf.mxu3  ;;  %v4875_v22 = vpop.f32.mrf.mxu1  ;;  %5182 = vmatpush.bf16.msra.mxu1 %v7785_v15  ;;  %v7790_v16 = vld [vmem:[%s9507_s4] ss:$0 sm:$0xff] }
 0x208   :  { %v5188_v22 = vlaneseq }
 0x209   :  { %v4900_v21 = vadd.f32 %v4899_v19, %v4887_v18 }
 0x20e   :  { %v4888_v23 = vpop.f32.mrf.mxu2 }
 0x20f   :  { %v4901_v24 = vpop.f32.mrf.mxu3  ;;  %v5189_v23 = vand.u32 127, %v5188_v22 }
 0x210   :  { %v7791_v24 = vld [vmem:[%s9508_s6] ss:$0 sm:$0xff] }
 0x211   :  { %vm5190_vm1 = vcmp.eq.s32.totalorder %v5189_v23, 4 }
 0x21e   :  { %v4912_v25 = vpop.f32.mrf.mxu0 }
 0x21f   :  { %v4913_v26 = vadd.f32 %v4912_v25, %v4900_v21  ;;  %v4925_v27 = vpop.f32.mrf.mxu1 }
 0x221   :  { %v4926_v28 = vadd.f32 %v4925_v27, %v4913_v26 }
 0x226   :  { %v4938_v29 = vpop.f32.mrf.mxu2  ;;  %v4914_v32 = vpop.f32.mrf.mxu0 }
 0x227   :  { %v4939_v30 = vadd.f32 %v4938_v29, %v4926_v28  ;;  %v4951_v31 = vpop.f32.mrf.mxu3  ;;  %v4927_v34 = vpop.f32.mrf.mxu1 }
 0x229   :  { %v4952_v33 = vadd.f32 %v4951_v31, %v4939_v30 }
 0x22e   :  { %v4940_v35 = vpop.f32.mrf.mxu2 }
 0x22f   :  { %v4953_v36 = vpop.f32.mrf.mxu3 }
 0x23e   :  { %v4964_v37 = vpop.f32.mrf.mxu0 }
 0x23f   :  { %v4977_v38 = vpop.f32.mrf.mxu1  ;;  %v4965_v49 = vadd.f32 %v4964_v37, %v4952_v33 }
 0x241   :  { %v4978_v55 = vadd.f32 %v4977_v38, %v4965_v49 }
 0x246   :  { %v4990_v39 = vpop.f32.mrf.mxu2  ;;  %v4966_v41 = vpop.f32.mrf.mxu0 }
 0x247   :  { %v5003_v40 = vpop.f32.mrf.mxu3  ;;  %v4979_v42 = vpop.f32.mrf.mxu1  ;;  %v4991_v56 = vadd.f32 %v4990_v39, %v4978_v55 }
 0x249   :  { %v5004_v59 = vadd.f32 %v5003_v40, %v4991_v56 }
 0x24e   :  { %v4992_v44 = vpop.f32.mrf.mxu2 }
 0x24f   :  { %v5005_v45 = vpop.f32.mrf.mxu3 }
 0x25e   :  { %v5016_v46 = vpop.f32.mrf.mxu0 }
 0x25f   :  { %v5029_v47 = vpop.f32.mrf.mxu1  ;;  %v5017_v60 = vadd.f32 %v5016_v46, %v5004_v59 }
 0x261   :  { %v5030_v61 = vadd.f32 %v5029_v47, %v5017_v60 }
 0x266   :  { %v5042_v48 = vpop.f32.mrf.mxu2  ;;  %v5018_v51 = vpop.f32.mrf.mxu0 }
 0x267   :  { %v5055_v50 = vpop.f32.mrf.mxu3  ;;  %v5031_v54 = vpop.f32.mrf.mxu1  ;;  %v5043_v62 = vadd.f32 %v5042_v48, %v5030_v61 }
 0x269   :  { %v5056_v63 = vadd.f32 %v5055_v50, %v5043_v62 }
 0x26e   :  { %v5044_v57 = vpop.f32.mrf.mxu2 }
 0x26f   :  { %v5057_v58 = vpop.f32.mrf.mxu3 }
 0x27e   :  { %v5068_v0 = vpop.f32.mrf.mxu0 }
 0x27f   :  { %v5081_v1 = vpop.f32.mrf.mxu1  ;;  %v5069_v2 = vadd.f32 %v5068_v0, %v5056_v63 }
 0x281   :  { %v5082_v3 = vadd.f32 %v5081_v1, %v5069_v2 }
 0x286   :  { %v5094_v4 = vpop.f32.mrf.mxu2  ;;  %v5070_v7 = vpop.f32.mrf.mxu0 }
 0x287   :  { %v5107_v5 = vpop.f32.mrf.mxu3  ;;  %v5095_v6 = vadd.f32 %v5094_v4, %v5082_v3  ;;  %v5083_v8 = vpop.f32.mrf.mxu1 }
 0x289   :  { %v5108_v9 = vadd.f32 %v5107_v5, %v5095_v6 }
 0x28b   :  { %v5111_v10 = vmax.f32 %v5108_v9, 0.0  ;;  %5195 = vperm.xlu0 %7788, %v5108_v9  }
 0x28d   :  { %v5112_v11 = vpack.c.bf16 %v5111_v10, %v5111_v10 }
 0x28e   :  { %v5096_v12 = vpop.f32.mrf.mxu2 }
 0x28f   :  { %v5109_v13 = vpop.f32.mrf.mxu3  ;;  %7261 = vmatmul.msk.bf16.vlgmr.msra.gmra.mxu0 %vm5133_vm0, %v5112_v11 }
 0x2fd   :  { %v5196_v25 = vpop.permute.xlu0 %5195 }
 0x2fe   :  { %v5198_v28 = vsel %vm5190_vm1, %v5196_v25, 0.0 }
 0x30c   :  { %v5146_v17 = vpop.f32.mrf.mxu0 }
 0x30d   :  { %v5147_v18 = vadd.f32 %v7790_v16, %v5146_v17 }
 0x30f   :  { %v5150_v19 = vmax.f32 %v5147_v18, 0.0 }
 0x311   :  { %v5151_v20 = vpack.c.bf16 %v5150_v19, %v5150_v19 }
 0x313   :  { %7270 = vmatmul.msk.bf16.vlgmr.msra.gmra.mxu1 %vm5133_vm0, %v5151_v20 }
 0x314   :  { %v5148_v21 = vpop.f32.mrf.mxu0 }
 0x390   :  { %v5184_v26 = vpop.f32.mrf.mxu1 }
 0x391   :  { %v5185_v27 = vadd.f32 %v7791_v24, %v5184_v26 }
 0x393   :  { %v5199_v29 = vadd.f32 %v5198_v28, %v5185_v27 }
 0x395   :  { %5200 = vst [vmem:[%s9510_s7] sm:$0x3] %v5199_v29 }
 0x398   :  { %v5186_v30 = vpop.f32.mrf.mxu1 }

</bundles_post_ra>
